<compile_context>
chip_gen: v5e
topology: v5e:2x2
jax: 0.10.0
libtpu: 0.0.40
codegen_flags: <defaults>
</compile_context>

<pallas_src>
import math
import functools

import jax
import jax.numpy as jnp
from jax.experimental import pallas as pl
from jax.experimental.pallas import tpu as pltpu

# ---- small config consistent with the module's structure ----
d_model = 128
d_k = d_v = 32
n_heads = 4
d_ff = 256
n_layer = 2
src_vocab_size = 32
tgt_vocab_size = 40
PROJ_PAD = 128          # vocab padded to a lane-dense 128-wide output
LN_EPS = 1e-5


# -------------------- Pallas kernels --------------------

def _layernorm(y):
    mean = jnp.mean(y, axis=-1, keepdims=True)
    var = jnp.mean((y - mean) * (y - mean), axis=-1, keepdims=True)
    return (y - mean) * jax.lax.rsqrt(var + LN_EPS)


def _mha_kernel(xq_ref, xkv_ref, mask_ref, wq_ref, wkv_ref, wo_ref,
                out_ref, attn_ref):
    """Fused MHA for one batch element.

    xq_ref:   [Lq, D]        (also the residual)
    xkv_ref:  [Lk, D]        (K and V share the same input in this model)
    mask_ref: [Lq, Lk]       float32, >0 means masked
    wq_ref:   [D, H*dk]      bf16
    wkv_ref:  [D, 2*H*dk]    bf16 (W_K | W_V concatenated on the lane axis)
    wo_ref:   [H*dv, D]      bf16
    out_ref:  [Lq, D]        LayerNorm(attn_out + residual)
    attn_ref: [Lq, H*Lk]     softmax probabilities packed per head on the lane axis
    """
    xq = xq_ref[...]                                    # f32
    xkv = xkv_ref[...]
    mask = mask_ref[...]

    # d_model-contraction matmuls on the MXU in bf16, accumulate f32.
    q = jnp.dot(xq.astype(jnp.bfloat16), wq_ref[...],
                preferred_element_type=jnp.float32)      # [Lq, H*dk]
    kv = jnp.dot(xkv.astype(jnp.bfloat16), wkv_ref[...],
                 preferred_element_type=jnp.float32)     # [Lk, 2*H*dk]

    scale = 1.0 / math.sqrt(d_k)
    ctx_heads = []
    attn_heads = []
    for h in range(n_heads):                             # unrolled, static slices
        qh = q[:, h * d_k:(h + 1) * d_k]                 # [Lq, dk]
        kh = kv[:, h * d_k:(h + 1) * d_k]                # [Lk, dk]
        vh = kv[:, n_heads * d_k + h * d_v:
                   n_heads * d_k + (h + 1) * d_v]        # [Lk, dv]
        # scores: contract the head dim of q and k (f32 for accuracy, tiny op).
        s = jax.lax.dot_general(qh, kh, (((1,), (1,)), ((), ())),
                                preferred_element_type=jnp.float32) * scale
        s = jnp.where(mask > 0.0, -1e9, s)               # masked_fill_(mask, -1e9)
        s = s - jnp.max(s, axis=-1, keepdims=True)
        e = jnp.exp(s)
        a = e / jnp.sum(e, axis=-1, keepdims=True)       # softmax(dim=-1), f32
        attn_heads.append(a)
        ctx_heads.append(jnp.dot(a, vh, preferred_element_type=jnp.float32))

    ctx = jnp.concatenate(ctx_heads, axis=-1)            # [Lq, H*dv] (=128 lanes)
    out = jnp.dot(ctx.astype(jnp.bfloat16), wo_ref[...],
                  preferred_element_type=jnp.float32)    # [Lq, D]

    out_ref[...] = _layernorm(out + xq)                  # residual + LayerNorm (f32)
    attn_ref[...] = jnp.concatenate(attn_heads, axis=-1)  # [Lq, H*Lk]


def _ffn_ln_kernel(x_ref, w1_ref, w2_ref, o_ref):
    """Linear(d_model->d_ff) -> ReLU -> Linear(d_ff->d_model) + residual + LN."""
    x = x_ref[...]                                       # [L, D] f32
    h = jnp.dot(x.astype(jnp.bfloat16), w1_ref[...],
                preferred_element_type=jnp.float32)      # [L, d_ff]
    h = jnp.maximum(h, 0.0)
    out = jnp.dot(h.astype(jnp.bfloat16), w2_ref[...],
                  preferred_element_type=jnp.float32)    # [L, D]
    o_ref[...] = _layernorm(out + x)


def _proj_kernel(x_ref, w_ref, o_ref):
    o_ref[...] = jnp.dot(x_ref[...].astype(jnp.bfloat16), w_ref[...],
                         preferred_element_type=jnp.float32)


# -------------------- Pallas wrappers --------------------

def mha_fused(p, x_q, x_kv, mask):
    """Fused multi-head attention block (QKV+attn+proj+residual+LN)."""
    B, Lq, D = x_q.shape
    Lk = x_kv.shape[1]
    mask_f = mask.astype(jnp.float32)

    out, attn_packed = pl.pallas_call(
        _mha_kernel,
        grid=(B,),
        in_specs=[
            pl.BlockSpec((None, Lq, D), lambda b: (b, 0, 0)),
            pl.BlockSpec((None, Lk, D), lambda b: (b, 0, 0)),
            pl.BlockSpec((None, Lq, Lk), lambda b: (b, 0, 0)),
            pl.BlockSpec((D, n_heads * d_k), lambda b: (0, 0)),
            pl.BlockSpec((D, 2 * n_heads * d_k), lambda b: (0, 0)),
            pl.BlockSpec((n_heads * d_v, D), lambda b: (0, 0)),
        ],
        out_specs=[
            pl.BlockSpec((None, Lq, D), lambda b: (b, 0, 0)),
            pl.BlockSpec((None, Lq, n_heads * Lk), lambda b: (b, 0, 0)),
        ],
        out_shape=(jax.ShapeDtypeStruct((B, Lq, D), jnp.float32),
                   jax.ShapeDtypeStruct((B, Lq, n_heads * Lk), jnp.float32)),
        compiler_params=pltpu.CompilerParams(
            dimension_semantics=("parallel",)),
    )(x_q, x_kv, mask_f, p['W_Q'], p['W_KV'], p['fc'])

    # unpack [B, Lq, H*Lk] -> [B, H, Lq, Lk] to match the reference layout
    attn = attn_packed.reshape(B, Lq, n_heads, Lk).transpose(0, 2, 1, 3)
    return out, attn


def pos_ffn(p, x):
    """Fused position-wise FFN + residual + LayerNorm."""
    B, L, D = x.shape
    return pl.pallas_call(
        _ffn_ln_kernel,
        grid=(B,),
        in_specs=[
            pl.BlockSpec((None, L, D), lambda b: (b, 0, 0)),
            pl.BlockSpec((D, d_ff), lambda b: (0, 0)),
            pl.BlockSpec((d_ff, D), lambda b: (0, 0)),
        ],
        out_specs=pl.BlockSpec((None, L, D), lambda b: (b, 0, 0)),
        out_shape=jax.ShapeDtypeStruct((B, L, D), jnp.float32),
        compiler_params=pltpu.CompilerParams(
            dimension_semantics=("parallel",)),
    )(x, p['w1'], p['w2'])


def project_logits(x2d, w_pad):
    """Final projection with a lane-dense (padded-to-128) weight."""
    M, K = x2d.shape
    Np = w_pad.shape[1]
    out = pl.pallas_call(
        _proj_kernel,
        grid=(1,),
        in_specs=[pl.BlockSpec((M, K), lambda i: (0, 0)),
                  pl.BlockSpec((K, Np), lambda i: (0, 0))],
        out_specs=pl.BlockSpec((M, Np), lambda i: (0, 0)),
        out_shape=jax.ShapeDtypeStruct((M, Np), jnp.float32),
    )(x2d, w_pad)
    return out[:, :tgt_vocab_size]


# -------------------- model glue (plain JAX, under jit) --------------------

def get_attn_pad_mask(seq_q, seq_k):
    B, Lq = seq_q.shape
    Lk = seq_k.shape[1]
    pad = (seq_k == 0)[:, None, :]
    return jnp.broadcast_to(pad, (B, Lq, Lk))


def get_attn_subsequence_mask(seq):
    B, L = seq.shape
    sub = jnp.triu(jnp.ones((L, L), jnp.int32), k=1)
    return jnp.broadcast_to(sub[None], (B, L, L))


def positional_encoding(L, D):
    position = jnp.arange(L, dtype=jnp.float32)[:, None]
    div_term = jnp.exp(jnp.arange(0, D, 2, dtype=jnp.float32) *
                       (-math.log(10000.0) / D))
    pe = jnp.zeros((L, D), jnp.float32)
    pe = pe.at[:, 0::2].set(jnp.sin(position * div_term))
    pe = pe.at[:, 1::2].set(jnp.cos(position * div_term))
    return pe


def encoder(params, enc_inputs):
    B, L = enc_inputs.shape
    x = jnp.take(params['src_emb'], enc_inputs, axis=0)
    x = x + positional_encoding(L, d_model)[None]
    # TODO(synk): nn.Dropout in PositionalEncoding treated as identity (eval semantics).
    mask = get_attn_pad_mask(enc_inputs, enc_inputs)
    attns = []
    for lp in params['enc_layers']:
        x, a = mha_fused(lp['self_attn'], x, x, mask)
        x = pos_ffn(lp['ffn'], x)
        attns.append(a)
    return x, attns


def decoder(params, dec_inputs, enc_inputs, enc_outputs):
    B, L = dec_inputs.shape
    x = jnp.take(params['tgt_emb'], dec_inputs, axis=0)
    x = x + positional_encoding(L, d_model)[None]
    self_pad = get_attn_pad_mask(dec_inputs, dec_inputs)
    sub = get_attn_subsequence_mask(dec_inputs)
    self_mask = (self_pad.astype(jnp.int32) + sub) > 0
    enc_mask = get_attn_pad_mask(dec_inputs, enc_inputs)
    self_attns, enc_attns = [], []
    for lp in params['dec_layers']:
        x, sa = mha_fused(lp['self_attn'], x, x, self_mask)
        x, ea = mha_fused(lp['enc_attn'], x, enc_outputs, enc_mask)
        x = pos_ffn(lp['ffn'], x)
        self_attns.append(sa)
        enc_attns.append(ea)
    return x, self_attns, enc_attns


def _transformer_forward(params, enc_inputs, dec_inputs):
    enc_out, enc_self_attns = encoder(params, enc_inputs)
    dec_out, dec_self_attns, dec_enc_attns = decoder(
        params, dec_inputs, enc_inputs, enc_out)
    B, L, D = dec_out.shape
    logits = project_logits(dec_out.reshape(B * L, D), params['projection'])
    return logits, enc_self_attns, dec_self_attns, dec_enc_attns


transformer_forward = jax.jit(_transformer_forward)


# -------------------- deterministic param init --------------------

def init_params(key):
    keys = iter(jax.random.split(key, 256))

    def w(shape, scale=0.02, dtype=jnp.bfloat16):
        return (scale * jax.random.normal(next(keys), shape, jnp.float32)).astype(dtype)

    def mha():
        # W_K and W_V concatenated on the output axis -> one MXU matmul for K|V.
        return {'W_Q': w((d_model, n_heads * d_k)),
                'W_KV': w((d_model, 2 * n_heads * d_k)),
                'fc': w((n_heads * d_v, d_model))}

    def ffn_p():
        return {'w1': w((d_model, d_ff)),
                'w2': w((d_ff, d_model))}

    proj = 0.02 * jax.random.normal(next(keys), (d_model, tgt_vocab_size), jnp.float32)
    proj_pad = jnp.zeros((d_model, PROJ_PAD), jnp.float32)
    proj_pad = proj_pad.at[:, :tgt_vocab_size].set(proj).astype(jnp.bfloat16)

    params = {
        'src_emb': w((src_vocab_size, d_model), 1.0, jnp.float32),
        'tgt_emb': w((tgt_vocab_size, d_model), 1.0, jnp.float32),
        'enc_layers': [{'self_attn': mha(), 'ffn': ffn_p()} for _ in range(n_layer)],
        'dec_layers': [{'self_attn': mha(), 'enc_attn': mha(), 'ffn': ffn_p()}
                       for _ in range(n_layer)],
        'projection': proj_pad,
    }
    return params


if __name__ == "__main__":
    B, src_len, tgt_len = 2, 8, 8
    key = jax.random.PRNGKey(0)
    kp, ke, kd = jax.random.split(key, 3)

    params = init_params(kp)

    enc_inputs = jax.random.randint(ke, (B, src_len), 1, src_vocab_size, dtype=jnp.int32)
    dec_inputs = jax.random.randint(kd, (B, tgt_len), 1, tgt_vocab_size, dtype=jnp.int32)
    # introduce padding (token id 0) to exercise the pad masks
    enc_inputs = enc_inputs.at[1, -2:].set(0)
    dec_inputs = dec_inputs.at[1, -1:].set(0)

    logits, enc_self_attns, dec_self_attns, dec_enc_attns = transformer_forward(
        params, enc_inputs, dec_inputs)

    jax.block_until_ready(logits)
    jax.block_until_ready(enc_self_attns)
    jax.block_until_ready(dec_self_attns)
    jax.block_until_ready(dec_enc_attns)

    assert logits.shape == (B * tgt_len, tgt_vocab_size)
    assert len(enc_self_attns) == n_layer and len(dec_self_attns) == n_layer
    assert enc_self_attns[0].shape == (B, n_heads, src_len, src_len)
    assert dec_enc_attns[0].shape == (B, n_heads, tgt_len, src_len)
    print("KERNEL_OK")
</pallas_src>

<mosaic_0001>
module attributes {stable_mosaic.version = 11 : i64} {
  func.func @_mha_kernel(%arg0: i32, %arg1: memref<1x8x128xf32, #tpu.memory_space<vmem>>, %arg2: memref<1x8x128xf32, #tpu.memory_space<vmem>>, %arg3: memref<1x8x8xf32, #tpu.memory_space<vmem>>, %arg4: memref<128x128xbf16, #tpu.memory_space<vmem>>, %arg5: memref<128x256xbf16, #tpu.memory_space<vmem>>, %arg6: memref<128x128xbf16, #tpu.memory_space<vmem>>, %arg7: memref<1x8x128xf32, #tpu.memory_space<vmem>>, %arg8: memref<1x8x32xf32, #tpu.memory_space<vmem>>) attributes {dimension_semantics = [#tpu.dimension_semantics<parallel>], iteration_bounds = array<i64: 2>, scalar_prefetch = 0 : i64, scratch_operands = 0 : i64, tpu.core_type = #tpu.core_type<tc>, window_params = [{transform_indices = @transform_0, window_bounds = array<i64: 1, 8, 128>}, {transform_indices = @transform_1, window_bounds = array<i64: 1, 8, 128>}, {transform_indices = @transform_2, window_bounds = array<i64: 1, 8, 8>}, {pipeline_mode = #tpu.pipeline_mode<synchronous>, transform_indices = @transform_3, window_bounds = array<i64: 128, 128>}, {pipeline_mode = #tpu.pipeline_mode<synchronous>, transform_indices = @transform_4, window_bounds = array<i64: 128, 256>}, {pipeline_mode = #tpu.pipeline_mode<synchronous>, transform_indices = @transform_5, window_bounds = array<i64: 128, 128>}, {transform_indices = @transform_6, window_bounds = array<i64: 1, 8, 128>}, {transform_indices = @transform_7, window_bounds = array<i64: 1, 8, 32>}]} {
    %c0 = arith.constant 0 : index
    %c0_0 = arith.constant 0 : index
    %c0_1 = arith.constant 0 : index
    %0 = vector.load %arg1[%c0, %c0_0, %c0_1] : memref<1x8x128xf32, #tpu.memory_space<vmem>>, vector<1x8x128xf32>
    %1 = vector.shape_cast %0 : vector<1x8x128xf32> to vector<8x128xf32>
    %c0_2 = arith.constant 0 : index
    %c0_3 = arith.constant 0 : index
    %c0_4 = arith.constant 0 : index
    %2 = vector.load %arg2[%c0_2, %c0_3, %c0_4] : memref<1x8x128xf32, #tpu.memory_space<vmem>>, vector<1x8x128xf32>
    %3 = vector.shape_cast %2 : vector<1x8x128xf32> to vector<8x128xf32>
    %c0_5 = arith.constant 0 : index
    %c0_6 = arith.constant 0 : index
    %c0_7 = arith.constant 0 : index
    %4 = vector.load %arg3[%c0_5, %c0_6, %c0_7] : memref<1x8x8xf32, #tpu.memory_space<vmem>>, vector<1x8x8xf32>
    %5 = vector.shape_cast %4 : vector<1x8x8xf32> to vector<8x8xf32>
    %6 = arith.truncf %1 : vector<8x128xf32> to vector<8x128xbf16>
    %c0_8 = arith.constant 0 : index
    %c0_9 = arith.constant 0 : index
    %7 = vector.load %arg4[%c0_8, %c0_9] : memref<128x128xbf16, #tpu.memory_space<vmem>>, vector<128x128xbf16>
    %cst = arith.constant dense<0.000000e+00> : vector<8x128xf32>
    %8 = tpu.matmul %6, %7, %cst {dimension_numbers = #tpu.dot_dimension_numbers<[1], [0], [0], [1], [0, 0, 1, 1], [], []>} : vector<8x128xbf16>, vector<128x128xbf16>, vector<8x128xf32> -> vector<8x128xf32>
    %9 = arith.truncf %3 : vector<8x128xf32> to vector<8x128xbf16>
    %c0_10 = arith.constant 0 : index
    %c0_11 = arith.constant 0 : index
    %10 = vector.load %arg5[%c0_10, %c0_11] : memref<128x256xbf16, #tpu.memory_space<vmem>>, vector<128x256xbf16>
    %cst_12 = arith.constant dense<0.000000e+00> : vector<8x256xf32>
    %11 = tpu.matmul %9, %10, %cst_12 {dimension_numbers = #tpu.dot_dimension_numbers<[1], [0], [0], [1], [0, 0, 1, 1], [], []>} : vector<8x128xbf16>, vector<128x256xbf16>, vector<8x256xf32> -> vector<8x256xf32>
    %12 = vector.extract_strided_slice %8 {offsets = [0, 0], sizes = [8, 32], strides = [1, 1]} : vector<8x128xf32> to vector<8x32xf32>
    %13 = vector.extract_strided_slice %11 {offsets = [0, 0], sizes = [8, 32], strides = [1, 1]} : vector<8x256xf32> to vector<8x32xf32>
    %14 = vector.extract_strided_slice %11 {offsets = [0, 128], sizes = [8, 32], strides = [1, 1]} : vector<8x256xf32> to vector<8x32xf32>
    %cst_13 = arith.constant dense<0.000000e+00> : vector<8x8xf32>
    %15 = tpu.matmul %12, %13, %cst_13 {dimension_numbers = #tpu.dot_dimension_numbers<[1], [1], [0], [0], [0, 0, 1, 0], [], []>} : vector<8x32xf32>, vector<8x32xf32>, vector<8x8xf32> -> vector<8x8xf32>
    %cst_14 = arith.constant 0.176776692 : f32
    %16 = vector.broadcast %cst_14 : f32 to vector<8x8xf32>
    %17 = arith.mulf %15, %16 : vector<8x8xf32>
    %cst_15 = arith.constant 0.000000e+00 : f32
    %18 = vector.broadcast %cst_15 : f32 to vector<8x8xf32>
    %19 = arith.cmpf ogt, %5, %18 : vector<8x8xf32>
    %cst_16 = arith.constant -1.000000e+09 : f32
    %20 = vector.broadcast %cst_16 : f32 to vector<8x8xf32>
    %21 = arith.select %19, %20, %17 : vector<8x8xi1>, vector<8x8xf32>
    %cst_17 = arith.constant dense<0xFF800000> : vector<8xf32>
    %22 = vector.multi_reduction <maximumf>, %21, %cst_17 [1] : vector<8x8xf32> to vector<8xf32>
    %23 = vector.shape_cast %22 : vector<8xf32> to vector<8x1xf32>
    %24 = vector.broadcast %23 : vector<8x1xf32> to vector<8x8xf32>
    %25 = arith.subf %21, %24 : vector<8x8xf32>
    %26 = math.exp %25 : vector<8x8xf32>
    %cst_18 = arith.constant dense<0.000000e+00> : vector<8xf32>
    %27 = vector.multi_reduction <add>, %26, %cst_18 [1] : vector<8x8xf32> to vector<8xf32>
    %28 = vector.shape_cast %27 : vector<8xf32> to vector<8x1xf32>
    %29 = vector.broadcast %28 : vector<8x1xf32> to vector<8x8xf32>
    %30 = arith.divf %26, %29 : vector<8x8xf32>
    %cst_19 = arith.constant dense<0.000000e+00> : vector<8x32xf32>
    %31 = tpu.matmul %30, %14, %cst_19 {dimension_numbers = #tpu.dot_dimension_numbers<[1], [0], [0], [1], [0, 0, 1, 1], [], []>} : vector<8x8xf32>, vector<8x32xf32>, vector<8x32xf32> -> vector<8x32xf32>
    %32 = vector.extract_strided_slice %8 {offsets = [0, 32], sizes = [8, 32], strides = [1, 1]} : vector<8x128xf32> to vector<8x32xf32>
    %33 = vector.extract_strided_slice %11 {offsets = [0, 32], sizes = [8, 32], strides = [1, 1]} : vector<8x256xf32> to vector<8x32xf32>
    %34 = vector.extract_strided_slice %11 {offsets = [0, 160], sizes = [8, 32], strides = [1, 1]} : vector<8x256xf32> to vector<8x32xf32>
    %cst_20 = arith.constant dense<0.000000e+00> : vector<8x8xf32>
    %35 = tpu.matmul %32, %33, %cst_20 {dimension_numbers = #tpu.dot_dimension_numbers<[1], [1], [0], [0], [0, 0, 1, 0], [], []>} : vector<8x32xf32>, vector<8x32xf32>, vector<8x8xf32> -> vector<8x8xf32>
    %cst_21 = arith.constant 0.176776692 : f32
    %36 = vector.broadcast %cst_21 : f32 to vector<8x8xf32>
    %37 = arith.mulf %35, %36 : vector<8x8xf32>
    %cst_22 = arith.constant 0.000000e+00 : f32
    %38 = vector.broadcast %cst_22 : f32 to vector<8x8xf32>
    %39 = arith.cmpf ogt, %5, %38 : vector<8x8xf32>
    %cst_23 = arith.constant -1.000000e+09 : f32
    %40 = vector.broadcast %cst_23 : f32 to vector<8x8xf32>
    %41 = arith.select %39, %40, %37 : vector<8x8xi1>, vector<8x8xf32>
    %cst_24 = arith.constant dense<0xFF800000> : vector<8xf32>
    %42 = vector.multi_reduction <maximumf>, %41, %cst_24 [1] : vector<8x8xf32> to vector<8xf32>
    %43 = vector.shape_cast %42 : vector<8xf32> to vector<8x1xf32>
    %44 = vector.broadcast %43 : vector<8x1xf32> to vector<8x8xf32>
    %45 = arith.subf %41, %44 : vector<8x8xf32>
    %46 = math.exp %45 : vector<8x8xf32>
    %cst_25 = arith.constant dense<0.000000e+00> : vector<8xf32>
    %47 = vector.multi_reduction <add>, %46, %cst_25 [1] : vector<8x8xf32> to vector<8xf32>
    %48 = vector.shape_cast %47 : vector<8xf32> to vector<8x1xf32>
    %49 = vector.broadcast %48 : vector<8x1xf32> to vector<8x8xf32>
    %50 = arith.divf %46, %49 : vector<8x8xf32>
    %cst_26 = arith.constant dense<0.000000e+00> : vector<8x32xf32>
    %51 = tpu.matmul %50, %34, %cst_26 {dimension_numbers = #tpu.dot_dimension_numbers<[1], [0], [0], [1], [0, 0, 1, 1], [], []>} : vector<8x8xf32>, vector<8x32xf32>, vector<8x32xf32> -> vector<8x32xf32>
    %52 = vector.extract_strided_slice %8 {offsets = [0, 64], sizes = [8, 32], strides = [1, 1]} : vector<8x128xf32> to vector<8x32xf32>
    %53 = vector.extract_strided_slice %11 {offsets = [0, 64], sizes = [8, 32], strides = [1, 1]} : vector<8x256xf32> to vector<8x32xf32>
    %54 = vector.extract_strided_slice %11 {offsets = [0, 192], sizes = [8, 32], strides = [1, 1]} : vector<8x256xf32> to vector<8x32xf32>
    %cst_27 = arith.constant dense<0.000000e+00> : vector<8x8xf32>
    %55 = tpu.matmul %52, %53, %cst_27 {dimension_numbers = #tpu.dot_dimension_numbers<[1], [1], [0], [0], [0, 0, 1, 0], [], []>} : vector<8x32xf32>, vector<8x32xf32>, vector<8x8xf32> -> vector<8x8xf32>
    %cst_28 = arith.constant 0.176776692 : f32
    %56 = vector.broadcast %cst_28 : f32 to vector<8x8xf32>
    %57 = arith.mulf %55, %56 : vector<8x8xf32>
    %cst_29 = arith.constant 0.000000e+00 : f32
    %58 = vector.broadcast %cst_29 : f32 to vector<8x8xf32>
    %59 = arith.cmpf ogt, %5, %58 : vector<8x8xf32>
    %cst_30 = arith.constant -1.000000e+09 : f32
    %60 = vector.broadcast %cst_30 : f32 to vector<8x8xf32>
    %61 = arith.select %59, %60, %57 : vector<8x8xi1>, vector<8x8xf32>
    %cst_31 = arith.constant dense<0xFF800000> : vector<8xf32>
    %62 = vector.multi_reduction <maximumf>, %61, %cst_31 [1] : vector<8x8xf32> to vector<8xf32>
    %63 = vector.shape_cast %62 : vector<8xf32> to vector<8x1xf32>
    %64 = vector.broadcast %63 : vector<8x1xf32> to vector<8x8xf32>
    %65 = arith.subf %61, %64 : vector<8x8xf32>
    %66 = math.exp %65 : vector<8x8xf32>
    %cst_32 = arith.constant dense<0.000000e+00> : vector<8xf32>
    %67 = vector.multi_reduction <add>, %66, %cst_32 [1] : vector<8x8xf32> to vector<8xf32>
    %68 = vector.shape_cast %67 : vector<8xf32> to vector<8x1xf32>
    %69 = vector.broadcast %68 : vector<8x1xf32> to vector<8x8xf32>
    %70 = arith.divf %66, %69 : vector<8x8xf32>
    %cst_33 = arith.constant dense<0.000000e+00> : vector<8x32xf32>
    %71 = tpu.matmul %70, %54, %cst_33 {dimension_numbers = #tpu.dot_dimension_numbers<[1], [0], [0], [1], [0, 0, 1, 1], [], []>} : vector<8x8xf32>, vector<8x32xf32>, vector<8x32xf32> -> vector<8x32xf32>
    %72 = vector.extract_strided_slice %8 {offsets = [0, 96], sizes = [8, 32], strides = [1, 1]} : vector<8x128xf32> to vector<8x32xf32>
    %73 = vector.extract_strided_slice %11 {offsets = [0, 96], sizes = [8, 32], strides = [1, 1]} : vector<8x256xf32> to vector<8x32xf32>
    %74 = vector.extract_strided_slice %11 {offsets = [0, 224], sizes = [8, 32], strides = [1, 1]} : vector<8x256xf32> to vector<8x32xf32>
    %cst_34 = arith.constant dense<0.000000e+00> : vector<8x8xf32>
    %75 = tpu.matmul %72, %73, %cst_34 {dimension_numbers = #tpu.dot_dimension_numbers<[1], [1], [0], [0], [0, 0, 1, 0], [], []>} : vector<8x32xf32>, vector<8x32xf32>, vector<8x8xf32> -> vector<8x8xf32>
    %cst_35 = arith.constant 0.176776692 : f32
    %76 = vector.broadcast %cst_35 : f32 to vector<8x8xf32>
    %77 = arith.mulf %75, %76 : vector<8x8xf32>
    %cst_36 = arith.constant 0.000000e+00 : f32
    %78 = vector.broadcast %cst_36 : f32 to vector<8x8xf32>
    %79 = arith.cmpf ogt, %5, %78 : vector<8x8xf32>
    %cst_37 = arith.constant -1.000000e+09 : f32
    %80 = vector.broadcast %cst_37 : f32 to vector<8x8xf32>
    %81 = arith.select %79, %80, %77 : vector<8x8xi1>, vector<8x8xf32>
    %cst_38 = arith.constant dense<0xFF800000> : vector<8xf32>
    %82 = vector.multi_reduction <maximumf>, %81, %cst_38 [1] : vector<8x8xf32> to vector<8xf32>
    %83 = vector.shape_cast %82 : vector<8xf32> to vector<8x1xf32>
    %84 = vector.broadcast %83 : vector<8x1xf32> to vector<8x8xf32>
    %85 = arith.subf %81, %84 : vector<8x8xf32>
    %86 = math.exp %85 : vector<8x8xf32>
    %cst_39 = arith.constant dense<0.000000e+00> : vector<8xf32>
    %87 = vector.multi_reduction <add>, %86, %cst_39 [1] : vector<8x8xf32> to vector<8xf32>
    %88 = vector.shape_cast %87 : vector<8xf32> to vector<8x1xf32>
    %89 = vector.broadcast %88 : vector<8x1xf32> to vector<8x8xf32>
    %90 = arith.divf %86, %89 : vector<8x8xf32>
    %cst_40 = arith.constant dense<0.000000e+00> : vector<8x32xf32>
    %91 = tpu.matmul %90, %74, %cst_40 {dimension_numbers = #tpu.dot_dimension_numbers<[1], [0], [0], [1], [0, 0, 1, 1], [], []>} : vector<8x8xf32>, vector<8x32xf32>, vector<8x32xf32> -> vector<8x32xf32>
    %92 = tpu.concatenate %31, %51, %71, %91 in 1 : vector<8x32xf32>, vector<8x32xf32>, vector<8x32xf32>, vector<8x32xf32> -> vector<8x128xf32>
    %93 = arith.truncf %92 : vector<8x128xf32> to vector<8x128xbf16>
    %c0_41 = arith.constant 0 : index
    %c0_42 = arith.constant 0 : index
    %94 = vector.load %arg6[%c0_41, %c0_42] : memref<128x128xbf16, #tpu.memory_space<vmem>>, vector<128x128xbf16>
    %cst_43 = arith.constant dense<0.000000e+00> : vector<8x128xf32>
    %95 = tpu.matmul %93, %94, %cst_43 {dimension_numbers = #tpu.dot_dimension_numbers<[1], [0], [0], [1], [0, 0, 1, 1], [], []>} : vector<8x128xbf16>, vector<128x128xbf16>, vector<8x128xf32> -> vector<8x128xf32>
    %96 = arith.addf %95, %1 : vector<8x128xf32>
    %cst_44 = arith.constant dense<0.000000e+00> : vector<8xf32>
    %97 = vector.multi_reduction <add>, %96, %cst_44 [1] : vector<8x128xf32> to vector<8xf32>
    %98 = vector.shape_cast %97 : vector<8xf32> to vector<8x1xf32>
    %cst_45 = arith.constant 1.280000e+02 : f32
    %99 = vector.broadcast %cst_45 : f32 to vector<8x1xf32>
    %100 = arith.divf %98, %99 : vector<8x1xf32>
    %101 = vector.broadcast %100 : vector<8x1xf32> to vector<8x128xf32>
    %102 = arith.subf %96, %101 : vector<8x128xf32>
    %103 = vector.broadcast %100 : vector<8x1xf32> to vector<8x128xf32>
    %104 = arith.subf %96, %103 : vector<8x128xf32>
    %105 = arith.mulf %102, %104 : vector<8x128xf32>
    %cst_46 = arith.constant dense<0.000000e+00> : vector<8xf32>
    %106 = vector.multi_reduction <add>, %105, %cst_46 [1] : vector<8x128xf32> to vector<8xf32>
    %107 = vector.shape_cast %106 : vector<8xf32> to vector<8x1xf32>
    %cst_47 = arith.constant 1.280000e+02 : f32
    %108 = vector.broadcast %cst_47 : f32 to vector<8x1xf32>
    %109 = arith.divf %107, %108 : vector<8x1xf32>
    %110 = vector.broadcast %100 : vector<8x1xf32> to vector<8x128xf32>
    %111 = arith.subf %96, %110 : vector<8x128xf32>
    %cst_48 = arith.constant 9.99999974E-6 : f32
    %112 = vector.broadcast %cst_48 : f32 to vector<8x1xf32>
    %113 = arith.addf %109, %112 : vector<8x1xf32>
    %114 = math.rsqrt %113 : vector<8x1xf32>
    %115 = vector.broadcast %114 : vector<8x1xf32> to vector<8x128xf32>
    %116 = arith.mulf %111, %115 : vector<8x128xf32>
    %c0_49 = arith.constant 0 : index
    %c0_50 = arith.constant 0 : index
    %c0_51 = arith.constant 0 : index
    %117 = vector.load %arg7[%c0_49, %c0_50, %c0_51] : memref<1x8x128xf32, #tpu.memory_space<vmem>>, vector<1x8x128xf32>
    %118 = vector.shape_cast %117 : vector<1x8x128xf32> to vector<8x128xf32>
    %119 = vector.shape_cast %116 : vector<8x128xf32> to vector<1x8x128xf32>
    tpu.vector_store %arg7[%c0_49, %c0_50, %c0_51], %119 {strides = array<i32>} : memref<1x8x128xf32, #tpu.memory_space<vmem>>, vector<1x8x128xf32>,
    %120 = tpu.concatenate %30, %50, %70, %90 in 1 : vector<8x8xf32>, vector<8x8xf32>, vector<8x8xf32>, vector<8x8xf32> -> vector<8x32xf32>
    %c0_52 = arith.constant 0 : index
    %c0_53 = arith.constant 0 : index
    %c0_54 = arith.constant 0 : index
    %121 = vector.load %arg8[%c0_52, %c0_53, %c0_54] : memref<1x8x32xf32, #tpu.memory_space<vmem>>, vector<1x8x32xf32>
    %122 = vector.shape_cast %121 : vector<1x8x32xf32> to vector<8x32xf32>
    %123 = vector.shape_cast %120 : vector<8x32xf32> to vector<1x8x32xf32>
    tpu.vector_store %arg8[%c0_52, %c0_53, %c0_54], %123 {strides = array<i32>} : memref<1x8x32xf32, #tpu.memory_space<vmem>>, vector<1x8x32xf32>,
    return
  }
  func.func @transform_0(%arg0: i32) -> (i32, i32, i32) {
    %c0_i32 = arith.constant 0 : i32
    %c0_i32_0 = arith.constant 0 : i32
    %c0_i32_1 = arith.constant 0 : i32
    return %arg0, %c0_i32, %c0_i32_0 : i32, i32, i32
  }
  func.func @transform_1(%arg0: i32) -> (i32, i32, i32) {
    %c0_i32 = arith.constant 0 : i32
    %c0_i32_0 = arith.constant 0 : i32
    %c0_i32_1 = arith.constant 0 : i32
    return %arg0, %c0_i32, %c0_i32_0 : i32, i32, i32
  }
  func.func @transform_2(%arg0: i32) -> (i32, i32, i32) {
    %c0_i32 = arith.constant 0 : i32
    %c0_i32_0 = arith.constant 0 : i32
    %c0_i32_1 = arith.constant 0 : i32
    return %arg0, %c0_i32, %c0_i32_0 : i32, i32, i32
  }
  func.func @transform_3(%arg0: i32) -> (i32, i32) {
    %c0_i32 = arith.constant 0 : i32
    %c0_i32_0 = arith.constant 0 : i32
    %c0_i32_1 = arith.constant 0 : i32
    return %c0_i32, %c0_i32_0 : i32, i32
  }
  func.func @transform_4(%arg0: i32) -> (i32, i32) {
    %c0_i32 = arith.constant 0 : i32
    %c0_i32_0 = arith.constant 0 : i32
    %c0_i32_1 = arith.constant 0 : i32
    return %c0_i32, %c0_i32_0 : i32, i32
  }
  func.func @transform_5(%arg0: i32) -> (i32, i32) {
    %c0_i32 = arith.constant 0 : i32
    %c0_i32_0 = arith.constant 0 : i32
    %c0_i32_1 = arith.constant 0 : i32
    return %c0_i32, %c0_i32_0 : i32, i32
  }
  func.func @transform_6(%arg0: i32) -> (i32, i32, i32) {
    %c0_i32 = arith.constant 0 : i32
    %c0_i32_0 = arith.constant 0 : i32
    %c0_i32_1 = arith.constant 0 : i32
    return %arg0, %c0_i32, %c0_i32_0 : i32, i32, i32
  }
  func.func @transform_7(%arg0: i32) -> (i32, i32, i32) {
    %c0_i32 = arith.constant 0 : i32
    %c0_i32_0 = arith.constant 0 : i32
    %c0_i32_1 = arith.constant 0 : i32
    return %arg0, %c0_i32, %c0_i32_0 : i32, i32, i32
  }
}

module attributes {stable_mosaic.version = 11 : i64} {
  func.func @_ffn_ln_kernel(%arg0: i32, %arg1: memref<1x8x128xf32, #tpu.memory_space<vmem>>, %arg2: memref<128x256xbf16, #tpu.memory_space<vmem>>, %arg3: memref<256x128xbf16, #tpu.memory_space<vmem>>, %arg4: memref<1x8x128xf32, #tpu.memory_space<vmem>>) attributes {dimension_semantics = [#tpu.dimension_semantics<parallel>], iteration_bounds = array<i64: 2>, scalar_prefetch = 0 : i64, scratch_operands = 0 : i64, tpu.core_type = #tpu.core_type<tc>, window_params = [{transform_indices = @transform_0, window_bounds = array<i64: 1, 8, 128>}, {pipeline_mode = #tpu.pipeline_mode<synchronous>, transform_indices = @transform_1, window_bounds = array<i64: 128, 256>}, {pipeline_mode = #tpu.pipeline_mode<synchronous>, transform_indices = @transform_2, window_bounds = array<i64: 256, 128>}, {transform_indices = @transform_3, window_bounds = array<i64: 1, 8, 128>}]} {
    %c0 = arith.constant 0 : index
    %c0_0 = arith.constant 0 : index
    %c0_1 = arith.constant 0 : index
    %0 = vector.load %arg1[%c0, %c0_0, %c0_1] : memref<1x8x128xf32, #tpu.memory_space<vmem>>, vector<1x8x128xf32>
    %1 = vector.shape_cast %0 : vector<1x8x128xf32> to vector<8x128xf32>
    %2 = arith.truncf %1 : vector<8x128xf32> to vector<8x128xbf16>
    %c0_2 = arith.constant 0 : index
    %c0_3 = arith.constant 0 : index
    %3 = vector.load %arg2[%c0_2, %c0_3] : memref<128x256xbf16, #tpu.memory_space<vmem>>, vector<128x256xbf16>
    %cst = arith.constant dense<0.000000e+00> : vector<8x256xf32>
    %4 = tpu.matmul %2, %3, %cst {dimension_numbers = #tpu.dot_dimension_numbers<[1], [0], [0], [1], [0, 0, 1, 1], [], []>} : vector<8x128xbf16>, vector<128x256xbf16>, vector<8x256xf32> -> vector<8x256xf32>
    %cst_4 = arith.constant 0.000000e+00 : f32
    %5 = vector.broadcast %cst_4 : f32 to vector<8x256xf32>
    %6 = arith.maximumf %4, %5 : vector<8x256xf32>
    %7 = arith.truncf %6 : vector<8x256xf32> to vector<8x256xbf16>
    %c0_5 = arith.constant 0 : index
    %c0_6 = arith.constant 0 : index
    %8 = vector.load %arg3[%c0_5, %c0_6] : memref<256x128xbf16, #tpu.memory_space<vmem>>, vector<256x128xbf16>
    %cst_7 = arith.constant dense<0.000000e+00> : vector<8x128xf32>
    %9 = tpu.matmul %7, %8, %cst_7 {dimension_numbers = #tpu.dot_dimension_numbers<[1], [0], [0], [1], [0, 0, 1, 1], [], []>} : vector<8x256xbf16>, vector<256x128xbf16>, vector<8x128xf32> -> vector<8x128xf32>
    %10 = arith.addf %9, %1 : vector<8x128xf32>
    %cst_8 = arith.constant dense<0.000000e+00> : vector<8xf32>
    %11 = vector.multi_reduction <add>, %10, %cst_8 [1] : vector<8x128xf32> to vector<8xf32>
    %12 = vector.shape_cast %11 : vector<8xf32> to vector<8x1xf32>
    %cst_9 = arith.constant 1.280000e+02 : f32
    %13 = vector.broadcast %cst_9 : f32 to vector<8x1xf32>
    %14 = arith.divf %12, %13 : vector<8x1xf32>
    %15 = vector.broadcast %14 : vector<8x1xf32> to vector<8x128xf32>
    %16 = arith.subf %10, %15 : vector<8x128xf32>
    %17 = vector.broadcast %14 : vector<8x1xf32> to vector<8x128xf32>
    %18 = arith.subf %10, %17 : vector<8x128xf32>
    %19 = arith.mulf %16, %18 : vector<8x128xf32>
    %cst_10 = arith.constant dense<0.000000e+00> : vector<8xf32>
    %20 = vector.multi_reduction <add>, %19, %cst_10 [1] : vector<8x128xf32> to vector<8xf32>
    %21 = vector.shape_cast %20 : vector<8xf32> to vector<8x1xf32>
    %cst_11 = arith.constant 1.280000e+02 : f32
    %22 = vector.broadcast %cst_11 : f32 to vector<8x1xf32>
    %23 = arith.divf %21, %22 : vector<8x1xf32>
    %24 = vector.broadcast %14 : vector<8x1xf32> to vector<8x128xf32>
    %25 = arith.subf %10, %24 : vector<8x128xf32>
    %cst_12 = arith.constant 9.99999974E-6 : f32
    %26 = vector.broadcast %cst_12 : f32 to vector<8x1xf32>
    %27 = arith.addf %23, %26 : vector<8x1xf32>
    %28 = math.rsqrt %27 : vector<8x1xf32>
    %29 = vector.broadcast %28 : vector<8x1xf32> to vector<8x128xf32>
    %30 = arith.mulf %25, %29 : vector<8x128xf32>
    %c0_13 = arith.constant 0 : index
    %c0_14 = arith.constant 0 : index
    %c0_15 = arith.constant 0 : index
    %31 = vector.load %arg4[%c0_13, %c0_14, %c0_15] : memref<1x8x128xf32, #tpu.memory_space<vmem>>, vector<1x8x128xf32>
    %32 = vector.shape_cast %31 : vector<1x8x128xf32> to vector<8x128xf32>
    %33 = vector.shape_cast %30 : vector<8x128xf32> to vector<1x8x128xf32>
    tpu.vector_store %arg4[%c0_13, %c0_14, %c0_15], %33 {strides = array<i32>} : memref<1x8x128xf32, #tpu.memory_space<vmem>>, vector<1x8x128xf32>,
    return
  }
  func.func @transform_0(%arg0: i32) -> (i32, i32, i32) {
    %c0_i32 = arith.constant 0 : i32
    %c0_i32_0 = arith.constant 0 : i32
    %c0_i32_1 = arith.constant 0 : i32
    return %arg0, %c0_i32, %c0_i32_0 : i32, i32, i32
  }
  func.func @transform_1(%arg0: i32) -> (i32, i32) {
    %c0_i32 = arith.constant 0 : i32
    %c0_i32_0 = arith.constant 0 : i32
    %c0_i32_1 = arith.constant 0 : i32
    return %c0_i32, %c0_i32_0 : i32, i32
  }
  func.func @transform_2(%arg0: i32) -> (i32, i32) {
    %c0_i32 = arith.constant 0 : i32
    %c0_i32_0 = arith.constant 0 : i32
    %c0_i32_1 = arith.constant 0 : i32
    return %c0_i32, %c0_i32_0 : i32, i32
  }
  func.func @transform_3(%arg0: i32) -> (i32, i32, i32) {
    %c0_i32 = arith.constant 0 : i32
    %c0_i32_0 = arith.constant 0 : i32
    %c0_i32_1 = arith.constant 0 : i32
    return %arg0, %c0_i32, %c0_i32_0 : i32, i32, i32
  }
}

module attributes {stable_mosaic.version = 11 : i64} {
  func.func @_ffn_ln_kernel(%arg0: i32, %arg1: memref<1x8x128xf32, #tpu.memory_space<vmem>>, %arg2: memref<128x256xbf16, #tpu.memory_space<vmem>>, %arg3: memref<256x128xbf16, #tpu.memory_space<vmem>>, %arg4: memref<1x8x128xf32, #tpu.memory_space<vmem>>) attributes {dimension_semantics = [#tpu.dimension_semantics<parallel>], iteration_bounds = array<i64: 2>, scalar_prefetch = 0 : i64, scratch_operands = 0 : i64, tpu.core_type = #tpu.core_type<tc>, window_params = [{transform_indices = @transform_0, window_bounds = array<i64: 1, 8, 128>}, {pipeline_mode = #tpu.pipeline_mode<synchronous>, transform_indices = @transform_1, window_bounds = array<i64: 128, 256>}, {pipeline_mode = #tpu.pipeline_mode<synchronous>, transform_indices = @transform_2, window_bounds = array<i64: 256, 128>}, {transform_indices = @transform_3, window_bounds = array<i64: 1, 8, 128>}]} {
    %c0 = arith.constant 0 : index
    %c0_0 = arith.constant 0 : index
    %c0_1 = arith.constant 0 : index
    %0 = vector.load %arg1[%c0, %c0_0, %c0_1] : memref<1x8x128xf32, #tpu.memory_space<vmem>>, vector<1x8x128xf32>
    %1 = vector.shape_cast %0 : vector<1x8x128xf32> to vector<8x128xf32>
    %2 = arith.truncf %1 : vector<8x128xf32> to vector<8x128xbf16>
    %c0_2 = arith.constant 0 : index
    %c0_3 = arith.constant 0 : index
    %3 = vector.load %arg2[%c0_2, %c0_3] : memref<128x256xbf16, #tpu.memory_space<vmem>>, vector<128x256xbf16>
    %cst = arith.constant dense<0.000000e+00> : vector<8x256xf32>
    %4 = tpu.matmul %2, %3, %cst {dimension_numbers = #tpu.dot_dimension_numbers<[1], [0], [0], [1], [0, 0, 1, 1], [], []>} : vector<8x128xbf16>, vector<128x256xbf16>, vector<8x256xf32> -> vector<8x256xf32>
    %cst_4 = arith.constant 0.000000e+00 : f32
    %5 = vector.broadcast %cst_4 : f32 to vector<8x256xf32>
    %6 = arith.maximumf %4, %5 : vector<8x256xf32>
    %7 = arith.truncf %6 : vector<8x256xf32> to vector<8x256xbf16>
    %c0_5 = arith.constant 0 : index
    %c0_6 = arith.constant 0 : index
    %8 = vector.load %arg3[%c0_5, %c0_6] : memref<256x128xbf16, #tpu.memory_space<vmem>>, vector<256x128xbf16>
    %cst_7 = arith.constant dense<0.000000e+00> : vector<8x128xf32>
    %9 = tpu.matmul %7, %8, %cst_7 {dimension_numbers = #tpu.dot_dimension_numbers<[1], [0], [0], [1], [0, 0, 1, 1], [], []>} : vector<8x256xbf16>, vector<256x128xbf16>, vector<8x128xf32> -> vector<8x128xf32>
    %10 = arith.addf %9, %1 : vector<8x128xf32>
    %cst_8 = arith.constant dense<0.000000e+00> : vector<8xf32>
    %11 = vector.multi_reduction <add>, %10, %cst_8 [1] : vector<8x128xf32> to vector<8xf32>
    %12 = vector.shape_cast %11 : vector<8xf32> to vector<8x1xf32>
    %cst_9 = arith.constant 1.280000e+02 : f32
    %13 = vector.broadcast %cst_9 : f32 to vector<8x1xf32>
    %14 = arith.divf %12, %13 : vector<8x1xf32>
    %15 = vector.broadcast %14 : vector<8x1xf32> to vector<8x128xf32>
    %16 = arith.subf %10, %15 : vector<8x128xf32>
    %17 = vector.broadcast %14 : vector<8x1xf32> to vector<8x128xf32>
    %18 = arith.subf %10, %17 : vector<8x128xf32>
    %19 = arith.mulf %16, %18 : vector<8x128xf32>
    %cst_10 = arith.constant dense<0.000000e+00> : vector<8xf32>
    %20 = vector.multi_reduction <add>, %19, %cst_10 [1] : vector<8x128xf32> to vector<8xf32>
    %21 = vector.shape_cast %20 : vector<8xf32> to vector<8x1xf32>
    %cst_11 = arith.constant 1.280000e+02 : f32
    %22 = vector.broadcast %cst_11 : f32 to vector<8x1xf32>
    %23 = arith.divf %21, %22 : vector<8x1xf32>
    %24 = vector.broadcast %14 : vector<8x1xf32> to vector<8x128xf32>
    %25 = arith.subf %10, %24 : vector<8x128xf32>
    %cst_12 = arith.constant 9.99999974E-6 : f32
    %26 = vector.broadcast %cst_12 : f32 to vector<8x1xf32>
    %27 = arith.addf %23, %26 : vector<8x1xf32>
    %28 = math.rsqrt %27 : vector<8x1xf32>
    %29 = vector.broadcast %28 : vector<8x1xf32> to vector<8x128xf32>
    %30 = arith.mulf %25, %29 : vector<8x128xf32>
    %c0_13 = arith.constant 0 : index
    %c0_14 = arith.constant 0 : index
    %c0_15 = arith.constant 0 : index
    %31 = vector.load %arg4[%c0_13, %c0_14, %c0_15] : memref<1x8x128xf32, #tpu.memory_space<vmem>>, vector<1x8x128xf32>
    %32 = vector.shape_cast %31 : vector<1x8x128xf32> to vector<8x128xf32>
    %33 = vector.shape_cast %30 : vector<8x128xf32> to vector<1x8x128xf32>
    tpu.vector_store %arg4[%c0_13, %c0_14, %c0_15], %33 {strides = array<i32>} : memref<1x8x128xf32, #tpu.memory_space<vmem>>, vector<1x8x128xf32>,
    return
  }
  func.func @transform_0(%arg0: i32) -> (i32, i32, i32) {
    %c0_i32 = arith.constant 0 : i32
    %c0_i32_0 = arith.constant 0 : i32
    %c0_i32_1 = arith.constant 0 : i32
    return %arg0, %c0_i32, %c0_i32_0 : i32, i32, i32
  }
  func.func @transform_1(%arg0: i32) -> (i32, i32) {
    %c0_i32 = arith.constant 0 : i32
    %c0_i32_0 = arith.constant 0 : i32
    %c0_i32_1 = arith.constant 0 : i32
    return %c0_i32, %c0_i32_0 : i32, i32
  }
  func.func @transform_2(%arg0: i32) -> (i32, i32) {
    %c0_i32 = arith.constant 0 : i32
    %c0_i32_0 = arith.constant 0 : i32
    %c0_i32_1 = arith.constant 0 : i32
    return %c0_i32, %c0_i32_0 : i32, i32
  }
  func.func @transform_3(%arg0: i32) -> (i32, i32, i32) {
    %c0_i32 = arith.constant 0 : i32
    %c0_i32_0 = arith.constant 0 : i32
    %c0_i32_1 = arith.constant 0 : i32
    return %arg0, %c0_i32, %c0_i32_0 : i32, i32, i32
  }
}

module attributes {stable_mosaic.version = 11 : i64} {
  func.func @_mha_kernel(%arg0: i32, %arg1: memref<1x8x128xf32, #tpu.memory_space<vmem>>, %arg2: memref<1x8x128xf32, #tpu.memory_space<vmem>>, %arg3: memref<1x8x8xf32, #tpu.memory_space<vmem>>, %arg4: memref<128x128xbf16, #tpu.memory_space<vmem>>, %arg5: memref<128x256xbf16, #tpu.memory_space<vmem>>, %arg6: memref<128x128xbf16, #tpu.memory_space<vmem>>, %arg7: memref<1x8x128xf32, #tpu.memory_space<vmem>>, %arg8: memref<1x8x32xf32, #tpu.memory_space<vmem>>) attributes {dimension_semantics = [#tpu.dimension_semantics<parallel>], iteration_bounds = array<i64: 2>, scalar_prefetch = 0 : i64, scratch_operands = 0 : i64, tpu.core_type = #tpu.core_type<tc>, window_params = [{transform_indices = @transform_0, window_bounds = array<i64: 1, 8, 128>}, {transform_indices = @transform_1, window_bounds = array<i64: 1, 8, 128>}, {transform_indices = @transform_2, window_bounds = array<i64: 1, 8, 8>}, {pipeline_mode = #tpu.pipeline_mode<synchronous>, transform_indices = @transform_3, window_bounds = array<i64: 128, 128>}, {pipeline_mode = #tpu.pipeline_mode<synchronous>, transform_indices = @transform_4, window_bounds = array<i64: 128, 256>}, {pipeline_mode = #tpu.pipeline_mode<synchronous>, transform_indices = @transform_5, window_bounds = array<i64: 128, 128>}, {transform_indices = @transform_6, window_bounds = array<i64: 1, 8, 128>}, {transform_indices = @transform_7, window_bounds = array<i64: 1, 8, 32>}]} {
    %c0 = arith.constant 0 : index
    %c0_0 = arith.constant 0 : index
    %c0_1 = arith.constant 0 : index
    %0 = vector.load %arg1[%c0, %c0_0, %c0_1] : memref<1x8x128xf32, #tpu.memory_space<vmem>>, vector<1x8x128xf32>
    %1 = vector.shape_cast %0 : vector<1x8x128xf32> to vector<8x128xf32>
    %c0_2 = arith.constant 0 : index
    %c0_3 = arith.constant 0 : index
    %c0_4 = arith.constant 0 : index
    %2 = vector.load %arg2[%c0_2, %c0_3, %c0_4] : memref<1x8x128xf32, #tpu.memory_space<vmem>>, vector<1x8x128xf32>
    %3 = vector.shape_cast %2 : vector<1x8x128xf32> to vector<8x128xf32>
    %c0_5 = arith.constant 0 : index
    %c0_6 = arith.constant 0 : index
    %c0_7 = arith.constant 0 : index
    %4 = vector.load %arg3[%c0_5, %c0_6, %c0_7] : memref<1x8x8xf32, #tpu.memory_space<vmem>>, vector<1x8x8xf32>
    %5 = vector.shape_cast %4 : vector<1x8x8xf32> to vector<8x8xf32>
    %6 = arith.truncf %1 : vector<8x128xf32> to vector<8x128xbf16>
    %c0_8 = arith.constant 0 : index
    %c0_9 = arith.constant 0 : index
    %7 = vector.load %arg4[%c0_8, %c0_9] : memref<128x128xbf16, #tpu.memory_space<vmem>>, vector<128x128xbf16>
    %cst = arith.constant dense<0.000000e+00> : vector<8x128xf32>
    %8 = tpu.matmul %6, %7, %cst {dimension_numbers = #tpu.dot_dimension_numbers<[1], [0], [0], [1], [0, 0, 1, 1], [], []>} : vector<8x128xbf16>, vector<128x128xbf16>, vector<8x128xf32> -> vector<8x128xf32>
    %9 = arith.truncf %3 : vector<8x128xf32> to vector<8x128xbf16>
    %c0_10 = arith.constant 0 : index
    %c0_11 = arith.constant 0 : index
    %10 = vector.load %arg5[%c0_10, %c0_11] : memref<128x256xbf16, #tpu.memory_space<vmem>>, vector<128x256xbf16>
    %cst_12 = arith.constant dense<0.000000e+00> : vector<8x256xf32>
    %11 = tpu.matmul %9, %10, %cst_12 {dimension_numbers = #tpu.dot_dimension_numbers<[1], [0], [0], [1], [0, 0, 1, 1], [], []>} : vector<8x128xbf16>, vector<128x256xbf16>, vector<8x256xf32> -> vector<8x256xf32>
    %12 = vector.extract_strided_slice %8 {offsets = [0, 0], sizes = [8, 32], strides = [1, 1]} : vector<8x128xf32> to vector<8x32xf32>
    %13 = vector.extract_strided_slice %11 {offsets = [0, 0], sizes = [8, 32], strides = [1, 1]} : vector<8x256xf32> to vector<8x32xf32>
    %14 = vector.extract_strided_slice %11 {offsets = [0, 128], sizes = [8, 32], strides = [1, 1]} : vector<8x256xf32> to vector<8x32xf32>
    %cst_13 = arith.constant dense<0.000000e+00> : vector<8x8xf32>
    %15 = tpu.matmul %12, %13, %cst_13 {dimension_numbers = #tpu.dot_dimension_numbers<[1], [1], [0], [0], [0, 0, 1, 0], [], []>} : vector<8x32xf32>, vector<8x32xf32>, vector<8x8xf32> -> vector<8x8xf32>
    %cst_14 = arith.constant 0.176776692 : f32
    %16 = vector.broadcast %cst_14 : f32 to vector<8x8xf32>
    %17 = arith.mulf %15, %16 : vector<8x8xf32>
    %cst_15 = arith.constant 0.000000e+00 : f32
    %18 = vector.broadcast %cst_15 : f32 to vector<8x8xf32>
    %19 = arith.cmpf ogt, %5, %18 : vector<8x8xf32>
    %cst_16 = arith.constant -1.000000e+09 : f32
    %20 = vector.broadcast %cst_16 : f32 to vector<8x8xf32>
    %21 = arith.select %19, %20, %17 : vector<8x8xi1>, vector<8x8xf32>
    %cst_17 = arith.constant dense<0xFF800000> : vector<8xf32>
    %22 = vector.multi_reduction <maximumf>, %21, %cst_17 [1] : vector<8x8xf32> to vector<8xf32>
    %23 = vector.shape_cast %22 : vector<8xf32> to vector<8x1xf32>
    %24 = vector.broadcast %23 : vector<8x1xf32> to vector<8x8xf32>
    %25 = arith.subf %21, %24 : vector<8x8xf32>
    %26 = math.exp %25 : vector<8x8xf32>
    %cst_18 = arith.constant dense<0.000000e+00> : vector<8xf32>
    %27 = vector.multi_reduction <add>, %26, %cst_18 [1] : vector<8x8xf32> to vector<8xf32>
    %28 = vector.shape_cast %27 : vector<8xf32> to vector<8x1xf32>
    %29 = vector.broadcast %28 : vector<8x1xf32> to vector<8x8xf32>
    %30 = arith.divf %26, %29 : vector<8x8xf32>
    %cst_19 = arith.constant dense<0.000000e+00> : vector<8x32xf32>
    %31 = tpu.matmul %30, %14, %cst_19 {dimension_numbers = #tpu.dot_dimension_numbers<[1], [0], [0], [1], [0, 0, 1, 1], [], []>} : vector<8x8xf32>, vector<8x32xf32>, vector<8x32xf32> -> vector<8x32xf32>
    %32 = vector.extract_strided_slice %8 {offsets = [0, 32], sizes = [8, 32], strides = [1, 1]} : vector<8x128xf32> to vector<8x32xf32>
    %33 = vector.extract_strided_slice %11 {offsets = [0, 32], sizes = [8, 32], strides = [1, 1]} : vector<8x256xf32> to vector<8x32xf32>
    %34 = vector.extract_strided_slice %11 {offsets = [0, 160], sizes = [8, 32], strides = [1, 1]} : vector<8x256xf32> to vector<8x32xf32>
    %cst_20 = arith.constant dense<0.000000e+00> : vector<8x8xf32>
    %35 = tpu.matmul %32, %33, %cst_20 {dimension_numbers = #tpu.dot_dimension_numbers<[1], [1], [0], [0], [0, 0, 1, 0], [], []>} : vector<8x32xf32>, vector<8x32xf32>, vector<8x8xf32> -> vector<8x8xf32>
    %cst_21 = arith.constant 0.176776692 : f32
    %36 = vector.broadcast %cst_21 : f32 to vector<8x8xf32>
    %37 = arith.mulf %35, %36 : vector<8x8xf32>
    %cst_22 = arith.constant 0.000000e+00 : f32
    %38 = vector.broadcast %cst_22 : f32 to vector<8x8xf32>
    %39 = arith.cmpf ogt, %5, %38 : vector<8x8xf32>
    %cst_23 = arith.constant -1.000000e+09 : f32
    %40 = vector.broadcast %cst_23 : f32 to vector<8x8xf32>
    %41 = arith.select %39, %40, %37 : vector<8x8xi1>, vector<8x8xf32>
    %cst_24 = arith.constant dense<0xFF800000> : vector<8xf32>
    %42 = vector.multi_reduction <maximumf>, %41, %cst_24 [1] : vector<8x8xf32> to vector<8xf32>
    %43 = vector.shape_cast %42 : vector<8xf32> to vector<8x1xf32>
    %44 = vector.broadcast %43 : vector<8x1xf32> to vector<8x8xf32>
    %45 = arith.subf %41, %44 : vector<8x8xf32>
    %46 = math.exp %45 : vector<8x8xf32>
    %cst_25 = arith.constant dense<0.000000e+00> : vector<8xf32>
    %47 = vector.multi_reduction <add>, %46, %cst_25 [1] : vector<8x8xf32> to vector<8xf32>
    %48 = vector.shape_cast %47 : vector<8xf32> to vector<8x1xf32>
    %49 = vector.broadcast %48 : vector<8x1xf32> to vector<8x8xf32>
    %50 = arith.divf %46, %49 : vector<8x8xf32>
    %cst_26 = arith.constant dense<0.000000e+00> : vector<8x32xf32>
    %51 = tpu.matmul %50, %34, %cst_26 {dimension_numbers = #tpu.dot_dimension_numbers<[1], [0], [0], [1], [0, 0, 1, 1], [], []>} : vector<8x8xf32>, vector<8x32xf32>, vector<8x32xf32> -> vector<8x32xf32>
    %52 = vector.extract_strided_slice %8 {offsets = [0, 64], sizes = [8, 32], strides = [1, 1]} : vector<8x128xf32> to vector<8x32xf32>
    %53 = vector.extract_strided_slice %11 {offsets = [0, 64], sizes = [8, 32], strides = [1, 1]} : vector<8x256xf32> to vector<8x32xf32>
    %54 = vector.extract_strided_slice %11 {offsets = [0, 192], sizes = [8, 32], strides = [1, 1]} : vector<8x256xf32> to vector<8x32xf32>
    %cst_27 = arith.constant dense<0.000000e+00> : vector<8x8xf32>
    %55 = tpu.matmul %52, %53, %cst_27 {dimension_numbers = #tpu.dot_dimension_numbers<[1], [1], [0], [0], [0, 0, 1, 0], [], []>} : vector<8x32xf32>, vector<8x32xf32>, vector<8x8xf32> -> vector<8x8xf32>
    %cst_28 = arith.constant 0.176776692 : f32
    %56 = vector.broadcast %cst_28 : f32 to vector<8x8xf32>
    %57 = arith.mulf %55, %56 : vector<8x8xf32>
    %cst_29 = arith.constant 0.000000e+00 : f32
    %58 = vector.broadcast %cst_29 : f32 to vector<8x8xf32>
    %59 = arith.cmpf ogt, %5, %58 : vector<8x8xf32>
    %cst_30 = arith.constant -1.000000e+09 : f32
    %60 = vector.broadcast %cst_30 : f32 to vector<8x8xf32>
    %61 = arith.select %59, %60, %57 : vector<8x8xi1>, vector<8x8xf32>
    %cst_31 = arith.constant dense<0xFF800000> : vector<8xf32>
    %62 = vector.multi_reduction <maximumf>, %61, %cst_31 [1] : vector<8x8xf32> to vector<8xf32>
    %63 = vector.shape_cast %62 : vector<8xf32> to vector<8x1xf32>
    %64 = vector.broadcast %63 : vector<8x1xf32> to vector<8x8xf32>
    %65 = arith.subf %61, %64 : vector<8x8xf32>
    %66 = math.exp %65 : vector<8x8xf32>
    %cst_32 = arith.constant dense<0.000000e+00> : vector<8xf32>
    %67 = vector.multi_reduction <add>, %66, %cst_32 [1] : vector<8x8xf32> to vector<8xf32>
    %68 = vector.shape_cast %67 : vector<8xf32> to vector<8x1xf32>
    %69 = vector.broadcast %68 : vector<8x1xf32> to vector<8x8xf32>
    %70 = arith.divf %66, %69 : vector<8x8xf32>
    %cst_33 = arith.constant dense<0.000000e+00> : vector<8x32xf32>
    %71 = tpu.matmul %70, %54, %cst_33 {dimension_numbers = #tpu.dot_dimension_numbers<[1], [0], [0], [1], [0, 0, 1, 1], [], []>} : vector<8x8xf32>, vector<8x32xf32>, vector<8x32xf32> -> vector<8x32xf32>
    %72 = vector.extract_strided_slice %8 {offsets = [0, 96], sizes = [8, 32], strides = [1, 1]} : vector<8x128xf32> to vector<8x32xf32>
    %73 = vector.extract_strided_slice %11 {offsets = [0, 96], sizes = [8, 32], strides = [1, 1]} : vector<8x256xf32> to vector<8x32xf32>
    %74 = vector.extract_strided_slice %11 {offsets = [0, 224], sizes = [8, 32], strides = [1, 1]} : vector<8x256xf32> to vector<8x32xf32>
    %cst_34 = arith.constant dense<0.000000e+00> : vector<8x8xf32>
    %75 = tpu.matmul %72, %73, %cst_34 {dimension_numbers = #tpu.dot_dimension_numbers<[1], [1], [0], [0], [0, 0, 1, 0], [], []>} : vector<8x32xf32>, vector<8x32xf32>, vector<8x8xf32> -> vector<8x8xf32>
    %cst_35 = arith.constant 0.176776692 : f32
    %76 = vector.broadcast %cst_35 : f32 to vector<8x8xf32>
    %77 = arith.mulf %75, %76 : vector<8x8xf32>
    %cst_36 = arith.constant 0.000000e+00 : f32
    %78 = vector.broadcast %cst_36 : f32 to vector<8x8xf32>
    %79 = arith.cmpf ogt, %5, %78 : vector<8x8xf32>
    %cst_37 = arith.constant -1.000000e+09 : f32
    %80 = vector.broadcast %cst_37 : f32 to vector<8x8xf32>
    %81 = arith.select %79, %80, %77 : vector<8x8xi1>, vector<8x8xf32>
    %cst_38 = arith.constant dense<0xFF800000> : vector<8xf32>
    %82 = vector.multi_reduction <maximumf>, %81, %cst_38 [1] : vector<8x8xf32> to vector<8xf32>
    %83 = vector.shape_cast %82 : vector<8xf32> to vector<8x1xf32>
    %84 = vector.broadcast %83 : vector<8x1xf32> to vector<8x8xf32>
    %85 = arith.subf %81, %84 : vector<8x8xf32>
    %86 = math.exp %85 : vector<8x8xf32>
    %cst_39 = arith.constant dense<0.000000e+00> : vector<8xf32>
    %87 = vector.multi_reduction <add>, %86, %cst_39 [1] : vector<8x8xf32> to vector<8xf32>
    %88 = vector.shape_cast %87 : vector<8xf32> to vector<8x1xf32>
    %89 = vector.broadcast %88 : vector<8x1xf32> to vector<8x8xf32>
    %90 = arith.divf %86, %89 : vector<8x8xf32>
    %cst_40 = arith.constant dense<0.000000e+00> : vector<8x32xf32>
    %91 = tpu.matmul %90, %74, %cst_40 {dimension_numbers = #tpu.dot_dimension_numbers<[1], [0], [0], [1], [0, 0, 1, 1], [], []>} : vector<8x8xf32>, vector<8x32xf32>, vector<8x32xf32> -> vector<8x32xf32>
    %92 = tpu.concatenate %31, %51, %71, %91 in 1 : vector<8x32xf32>, vector<8x32xf32>, vector<8x32xf32>, vector<8x32xf32> -> vector<8x128xf32>
    %93 = arith.truncf %92 : vector<8x128xf32> to vector<8x128xbf16>
    %c0_41 = arith.constant 0 : index
    %c0_42 = arith.constant 0 : index
    %94 = vector.load %arg6[%c0_41, %c0_42] : memref<128x128xbf16, #tpu.memory_space<vmem>>, vector<128x128xbf16>
    %cst_43 = arith.constant dense<0.000000e+00> : vector<8x128xf32>
    %95 = tpu.matmul %93, %94, %cst_43 {dimension_numbers = #tpu.dot_dimension_numbers<[1], [0], [0], [1], [0, 0, 1, 1], [], []>} : vector<8x128xbf16>, vector<128x128xbf16>, vector<8x128xf32> -> vector<8x128xf32>
    %96 = arith.addf %95, %1 : vector<8x128xf32>
    %cst_44 = arith.constant dense<0.000000e+00> : vector<8xf32>
    %97 = vector.multi_reduction <add>, %96, %cst_44 [1] : vector<8x128xf32> to vector<8xf32>
    %98 = vector.shape_cast %97 : vector<8xf32> to vector<8x1xf32>
    %cst_45 = arith.constant 1.280000e+02 : f32
    %99 = vector.broadcast %cst_45 : f32 to vector<8x1xf32>
    %100 = arith.divf %98, %99 : vector<8x1xf32>
    %101 = vector.broadcast %100 : vector<8x1xf32> to vector<8x128xf32>
    %102 = arith.subf %96, %101 : vector<8x128xf32>
    %103 = vector.broadcast %100 : vector<8x1xf32> to vector<8x128xf32>
    %104 = arith.subf %96, %103 : vector<8x128xf32>
    %105 = arith.mulf %102, %104 : vector<8x128xf32>
    %cst_46 = arith.constant dense<0.000000e+00> : vector<8xf32>
    %106 = vector.multi_reduction <add>, %105, %cst_46 [1] : vector<8x128xf32> to vector<8xf32>
    %107 = vector.shape_cast %106 : vector<8xf32> to vector<8x1xf32>
    %cst_47 = arith.constant 1.280000e+02 : f32
    %108 = vector.broadcast %cst_47 : f32 to vector<8x1xf32>
    %109 = arith.divf %107, %108 : vector<8x1xf32>
    %110 = vector.broadcast %100 : vector<8x1xf32> to vector<8x128xf32>
    %111 = arith.subf %96, %110 : vector<8x128xf32>
    %cst_48 = arith.constant 9.99999974E-6 : f32
    %112 = vector.broadcast %cst_48 : f32 to vector<8x1xf32>
    %113 = arith.addf %109, %112 : vector<8x1xf32>
    %114 = math.rsqrt %113 : vector<8x1xf32>
    %115 = vector.broadcast %114 : vector<8x1xf32> to vector<8x128xf32>
    %116 = arith.mulf %111, %115 : vector<8x128xf32>
    %c0_49 = arith.constant 0 : index
    %c0_50 = arith.constant 0 : index
    %c0_51 = arith.constant 0 : index
    %117 = vector.load %arg7[%c0_49, %c0_50, %c0_51] : memref<1x8x128xf32, #tpu.memory_space<vmem>>, vector<1x8x128xf32>
    %118 = vector.shape_cast %117 : vector<1x8x128xf32> to vector<8x128xf32>
    %119 = vector.shape_cast %116 : vector<8x128xf32> to vector<1x8x128xf32>
    tpu.vector_store %arg7[%c0_49, %c0_50, %c0_51], %119 {strides = array<i32>} : memref<1x8x128xf32, #tpu.memory_space<vmem>>, vector<1x8x128xf32>,
    %120 = tpu.concatenate %30, %50, %70, %90 in 1 : vector<8x8xf32>, vector<8x8xf32>, vector<8x8xf32>, vector<8x8xf32> -> vector<8x32xf32>
    %c0_52 = arith.constant 0 : index
    %c0_53 = arith.constant 0 : index
    %c0_54 = arith.constant 0 : index
    %121 = vector.load %arg8[%c0_52, %c0_53, %c0_54] : memref<1x8x32xf32, #tpu.memory_space<vmem>>, vector<1x8x32xf32>
    %122 = vector.shape_cast %121 : vector<1x8x32xf32> to vector<8x32xf32>
    %123 = vector.shape_cast %120 : vector<8x32xf32> to vector<1x8x32xf32>
    tpu.vector_store %arg8[%c0_52, %c0_53, %c0_54], %123 {strides = array<i32>} : memref<1x8x32xf32, #tpu.memory_space<vmem>>, vector<1x8x32xf32>,
    return
  }
  func.func @transform_0(%arg0: i32) -> (i32, i32, i32) {
    %c0_i32 = arith.constant 0 : i32
    %c0_i32_0 = arith.constant 0 : i32
    %c0_i32_1 = arith.constant 0 : i32
    return %arg0, %c0_i32, %c0_i32_0 : i32, i32, i32
  }
  func.func @transform_1(%arg0: i32) -> (i32, i32, i32) {
    %c0_i32 = arith.constant 0 : i32
    %c0_i32_0 = arith.constant 0 : i32
    %c0_i32_1 = arith.constant 0 : i32
    return %arg0, %c0_i32, %c0_i32_0 : i32, i32, i32
  }
  func.func @transform_2(%arg0: i32) -> (i32, i32, i32) {
    %c0_i32 = arith.constant 0 : i32
    %c0_i32_0 = arith.constant 0 : i32
    %c0_i32_1 = arith.constant 0 : i32
    return %arg0, %c0_i32, %c0_i32_0 : i32, i32, i32
  }
  func.func @transform_3(%arg0: i32) -> (i32, i32) {
    %c0_i32 = arith.constant 0 : i32
    %c0_i32_0 = arith.constant 0 : i32
    %c0_i32_1 = arith.constant 0 : i32
    return %c0_i32, %c0_i32_0 : i32, i32
  }
  func.func @transform_4(%arg0: i32) -> (i32, i32) {
    %c0_i32 = arith.constant 0 : i32
    %c0_i32_0 = arith.constant 0 : i32
    %c0_i32_1 = arith.constant 0 : i32
    return %c0_i32, %c0_i32_0 : i32, i32
  }
  func.func @transform_5(%arg0: i32) -> (i32, i32) {
    %c0_i32 = arith.constant 0 : i32
    %c0_i32_0 = arith.constant 0 : i32
    %c0_i32_1 = arith.constant 0 : i32
    return %c0_i32, %c0_i32_0 : i32, i32
  }
  func.func @transform_6(%arg0: i32) -> (i32, i32, i32) {
    %c0_i32 = arith.constant 0 : i32
    %c0_i32_0 = arith.constant 0 : i32
    %c0_i32_1 = arith.constant 0 : i32
    return %arg0, %c0_i32, %c0_i32_0 : i32, i32, i32
  }
  func.func @transform_7(%arg0: i32) -> (i32, i32, i32) {
    %c0_i32 = arith.constant 0 : i32
    %c0_i32_0 = arith.constant 0 : i32
    %c0_i32_1 = arith.constant 0 : i32
    return %arg0, %c0_i32, %c0_i32_0 : i32, i32, i32
  }
}

module attributes {stable_mosaic.version = 11 : i64} {
  func.func @_mha_kernel(%arg0: i32, %arg1: memref<1x8x128xf32, #tpu.memory_space<vmem>>, %arg2: memref<1x8x128xf32, #tpu.memory_space<vmem>>, %arg3: memref<1x8x8xf32, #tpu.memory_space<vmem>>, %arg4: memref<128x128xbf16, #tpu.memory_space<vmem>>, %arg5: memref<128x256xbf16, #tpu.memory_space<vmem>>, %arg6: memref<128x128xbf16, #tpu.memory_space<vmem>>, %arg7: memref<1x8x128xf32, #tpu.memory_space<vmem>>, %arg8: memref<1x8x32xf32, #tpu.memory_space<vmem>>) attributes {dimension_semantics = [#tpu.dimension_semantics<parallel>], iteration_bounds = array<i64: 2>, scalar_prefetch = 0 : i64, scratch_operands = 0 : i64, tpu.core_type = #tpu.core_type<tc>, window_params = [{transform_indices = @transform_0, window_bounds = array<i64: 1, 8, 128>}, {transform_indices = @transform_1, window_bounds = array<i64: 1, 8, 128>}, {transform_indices = @transform_2, window_bounds = array<i64: 1, 8, 8>}, {pipeline_mode = #tpu.pipeline_mode<synchronous>, transform_indices = @transform_3, window_bounds = array<i64: 128, 128>}, {pipeline_mode = #tpu.pipeline_mode<synchronous>, transform_indices = @transform_4, window_bounds = array<i64: 128, 256>}, {pipeline_mode = #tpu.pipeline_mode<synchronous>, transform_indices = @transform_5, window_bounds = array<i64: 128, 128>}, {transform_indices = @transform_6, window_bounds = array<i64: 1, 8, 128>}, {transform_indices = @transform_7, window_bounds = array<i64: 1, 8, 32>}]} {
    %c0 = arith.constant 0 : index
    %c0_0 = arith.constant 0 : index
    %c0_1 = arith.constant 0 : index
    %0 = vector.load %arg1[%c0, %c0_0, %c0_1] : memref<1x8x128xf32, #tpu.memory_space<vmem>>, vector<1x8x128xf32>
    %1 = vector.shape_cast %0 : vector<1x8x128xf32> to vector<8x128xf32>
    %c0_2 = arith.constant 0 : index
    %c0_3 = arith.constant 0 : index
    %c0_4 = arith.constant 0 : index
    %2 = vector.load %arg2[%c0_2, %c0_3, %c0_4] : memref<1x8x128xf32, #tpu.memory_space<vmem>>, vector<1x8x128xf32>
    %3 = vector.shape_cast %2 : vector<1x8x128xf32> to vector<8x128xf32>
    %c0_5 = arith.constant 0 : index
    %c0_6 = arith.constant 0 : index
    %c0_7 = arith.constant 0 : index
    %4 = vector.load %arg3[%c0_5, %c0_6, %c0_7] : memref<1x8x8xf32, #tpu.memory_space<vmem>>, vector<1x8x8xf32>
    %5 = vector.shape_cast %4 : vector<1x8x8xf32> to vector<8x8xf32>
    %6 = arith.truncf %1 : vector<8x128xf32> to vector<8x128xbf16>
    %c0_8 = arith.constant 0 : index
    %c0_9 = arith.constant 0 : index
    %7 = vector.load %arg4[%c0_8, %c0_9] : memref<128x128xbf16, #tpu.memory_space<vmem>>, vector<128x128xbf16>
    %cst = arith.constant dense<0.000000e+00> : vector<8x128xf32>
    %8 = tpu.matmul %6, %7, %cst {dimension_numbers = #tpu.dot_dimension_numbers<[1], [0], [0], [1], [0, 0, 1, 1], [], []>} : vector<8x128xbf16>, vector<128x128xbf16>, vector<8x128xf32> -> vector<8x128xf32>
    %9 = arith.truncf %3 : vector<8x128xf32> to vector<8x128xbf16>
    %c0_10 = arith.constant 0 : index
    %c0_11 = arith.constant 0 : index
    %10 = vector.load %arg5[%c0_10, %c0_11] : memref<128x256xbf16, #tpu.memory_space<vmem>>, vector<128x256xbf16>
    %cst_12 = arith.constant dense<0.000000e+00> : vector<8x256xf32>
    %11 = tpu.matmul %9, %10, %cst_12 {dimension_numbers = #tpu.dot_dimension_numbers<[1], [0], [0], [1], [0, 0, 1, 1], [], []>} : vector<8x128xbf16>, vector<128x256xbf16>, vector<8x256xf32> -> vector<8x256xf32>
    %12 = vector.extract_strided_slice %8 {offsets = [0, 0], sizes = [8, 32], strides = [1, 1]} : vector<8x128xf32> to vector<8x32xf32>
    %13 = vector.extract_strided_slice %11 {offsets = [0, 0], sizes = [8, 32], strides = [1, 1]} : vector<8x256xf32> to vector<8x32xf32>
    %14 = vector.extract_strided_slice %11 {offsets = [0, 128], sizes = [8, 32], strides = [1, 1]} : vector<8x256xf32> to vector<8x32xf32>
    %cst_13 = arith.constant dense<0.000000e+00> : vector<8x8xf32>
    %15 = tpu.matmul %12, %13, %cst_13 {dimension_numbers = #tpu.dot_dimension_numbers<[1], [1], [0], [0], [0, 0, 1, 0], [], []>} : vector<8x32xf32>, vector<8x32xf32>, vector<8x8xf32> -> vector<8x8xf32>
    %cst_14 = arith.constant 0.176776692 : f32
    %16 = vector.broadcast %cst_14 : f32 to vector<8x8xf32>
    %17 = arith.mulf %15, %16 : vector<8x8xf32>
    %cst_15 = arith.constant 0.000000e+00 : f32
    %18 = vector.broadcast %cst_15 : f32 to vector<8x8xf32>
    %19 = arith.cmpf ogt, %5, %18 : vector<8x8xf32>
    %cst_16 = arith.constant -1.000000e+09 : f32
    %20 = vector.broadcast %cst_16 : f32 to vector<8x8xf32>
    %21 = arith.select %19, %20, %17 : vector<8x8xi1>, vector<8x8xf32>
    %cst_17 = arith.constant dense<0xFF800000> : vector<8xf32>
    %22 = vector.multi_reduction <maximumf>, %21, %cst_17 [1] : vector<8x8xf32> to vector<8xf32>
    %23 = vector.shape_cast %22 : vector<8xf32> to vector<8x1xf32>
    %24 = vector.broadcast %23 : vector<8x1xf32> to vector<8x8xf32>
    %25 = arith.subf %21, %24 : vector<8x8xf32>
    %26 = math.exp %25 : vector<8x8xf32>
    %cst_18 = arith.constant dense<0.000000e+00> : vector<8xf32>
    %27 = vector.multi_reduction <add>, %26, %cst_18 [1] : vector<8x8xf32> to vector<8xf32>
    %28 = vector.shape_cast %27 : vector<8xf32> to vector<8x1xf32>
    %29 = vector.broadcast %28 : vector<8x1xf32> to vector<8x8xf32>
    %30 = arith.divf %26, %29 : vector<8x8xf32>
    %cst_19 = arith.constant dense<0.000000e+00> : vector<8x32xf32>
    %31 = tpu.matmul %30, %14, %cst_19 {dimension_numbers = #tpu.dot_dimension_numbers<[1], [0], [0], [1], [0, 0, 1, 1], [], []>} : vector<8x8xf32>, vector<8x32xf32>, vector<8x32xf32> -> vector<8x32xf32>
    %32 = vector.extract_strided_slice %8 {offsets = [0, 32], sizes = [8, 32], strides = [1, 1]} : vector<8x128xf32> to vector<8x32xf32>
    %33 = vector.extract_strided_slice %11 {offsets = [0, 32], sizes = [8, 32], strides = [1, 1]} : vector<8x256xf32> to vector<8x32xf32>
    %34 = vector.extract_strided_slice %11 {offsets = [0, 160], sizes = [8, 32], strides = [1, 1]} : vector<8x256xf32> to vector<8x32xf32>
    %cst_20 = arith.constant dense<0.000000e+00> : vector<8x8xf32>
    %35 = tpu.matmul %32, %33, %cst_20 {dimension_numbers = #tpu.dot_dimension_numbers<[1], [1], [0], [0], [0, 0, 1, 0], [], []>} : vector<8x32xf32>, vector<8x32xf32>, vector<8x8xf32> -> vector<8x8xf32>
    %cst_21 = arith.constant 0.176776692 : f32
    %36 = vector.broadcast %cst_21 : f32 to vector<8x8xf32>
    %37 = arith.mulf %35, %36 : vector<8x8xf32>
    %cst_22 = arith.constant 0.000000e+00 : f32
    %38 = vector.broadcast %cst_22 : f32 to vector<8x8xf32>
    %39 = arith.cmpf ogt, %5, %38 : vector<8x8xf32>
    %cst_23 = arith.constant -1.000000e+09 : f32
    %40 = vector.broadcast %cst_23 : f32 to vector<8x8xf32>
    %41 = arith.select %39, %40, %37 : vector<8x8xi1>, vector<8x8xf32>
    %cst_24 = arith.constant dense<0xFF800000> : vector<8xf32>
    %42 = vector.multi_reduction <maximumf>, %41, %cst_24 [1] : vector<8x8xf32> to vector<8xf32>
    %43 = vector.shape_cast %42 : vector<8xf32> to vector<8x1xf32>
    %44 = vector.broadcast %43 : vector<8x1xf32> to vector<8x8xf32>
    %45 = arith.subf %41, %44 : vector<8x8xf32>
    %46 = math.exp %45 : vector<8x8xf32>
    %cst_25 = arith.constant dense<0.000000e+00> : vector<8xf32>
    %47 = vector.multi_reduction <add>, %46, %cst_25 [1] : vector<8x8xf32> to vector<8xf32>
    %48 = vector.shape_cast %47 : vector<8xf32> to vector<8x1xf32>
    %49 = vector.broadcast %48 : vector<8x1xf32> to vector<8x8xf32>
    %50 = arith.divf %46, %49 : vector<8x8xf32>
    %cst_26 = arith.constant dense<0.000000e+00> : vector<8x32xf32>
    %51 = tpu.matmul %50, %34, %cst_26 {dimension_numbers = #tpu.dot_dimension_numbers<[1], [0], [0], [1], [0, 0, 1, 1], [], []>} : vector<8x8xf32>, vector<8x32xf32>, vector<8x32xf32> -> vector<8x32xf32>
    %52 = vector.extract_strided_slice %8 {offsets = [0, 64], sizes = [8, 32], strides = [1, 1]} : vector<8x128xf32> to vector<8x32xf32>
    %53 = vector.extract_strided_slice %11 {offsets = [0, 64], sizes = [8, 32], strides = [1, 1]} : vector<8x256xf32> to vector<8x32xf32>
    %54 = vector.extract_strided_slice %11 {offsets = [0, 192], sizes = [8, 32], strides = [1, 1]} : vector<8x256xf32> to vector<8x32xf32>
    %cst_27 = arith.constant dense<0.000000e+00> : vector<8x8xf32>
    %55 = tpu.matmul %52, %53, %cst_27 {dimension_numbers = #tpu.dot_dimension_numbers<[1], [1], [0], [0], [0, 0, 1, 0], [], []>} : vector<8x32xf32>, vector<8x32xf32>, vector<8x8xf32> -> vector<8x8xf32>
    %cst_28 = arith.constant 0.176776692 : f32
    %56 = vector.broadcast %cst_28 : f32 to vector<8x8xf32>
    %57 = arith.mulf %55, %56 : vector<8x8xf32>
    %cst_29 = arith.constant 0.000000e+00 : f32
    %58 = vector.broadcast %cst_29 : f32 to vector<8x8xf32>
    %59 = arith.cmpf ogt, %5, %58 : vector<8x8xf32>
    %cst_30 = arith.constant -1.000000e+09 : f32
    %60 = vector.broadcast %cst_30 : f32 to vector<8x8xf32>
    %61 = arith.select %59, %60, %57 : vector<8x8xi1>, vector<8x8xf32>
    %cst_31 = arith.constant dense<0xFF800000> : vector<8xf32>
    %62 = vector.multi_reduction <maximumf>, %61, %cst_31 [1] : vector<8x8xf32> to vector<8xf32>
    %63 = vector.shape_cast %62 : vector<8xf32> to vector<8x1xf32>
    %64 = vector.broadcast %63 : vector<8x1xf32> to vector<8x8xf32>
    %65 = arith.subf %61, %64 : vector<8x8xf32>
    %66 = math.exp %65 : vector<8x8xf32>
    %cst_32 = arith.constant dense<0.000000e+00> : vector<8xf32>
    %67 = vector.multi_reduction <add>, %66, %cst_32 [1] : vector<8x8xf32> to vector<8xf32>
    %68 = vector.shape_cast %67 : vector<8xf32> to vector<8x1xf32>
    %69 = vector.broadcast %68 : vector<8x1xf32> to vector<8x8xf32>
    %70 = arith.divf %66, %69 : vector<8x8xf32>
    %cst_33 = arith.constant dense<0.000000e+00> : vector<8x32xf32>
    %71 = tpu.matmul %70, %54, %cst_33 {dimension_numbers = #tpu.dot_dimension_numbers<[1], [0], [0], [1], [0, 0, 1, 1], [], []>} : vector<8x8xf32>, vector<8x32xf32>, vector<8x32xf32> -> vector<8x32xf32>
    %72 = vector.extract_strided_slice %8 {offsets = [0, 96], sizes = [8, 32], strides = [1, 1]} : vector<8x128xf32> to vector<8x32xf32>
    %73 = vector.extract_strided_slice %11 {offsets = [0, 96], sizes = [8, 32], strides = [1, 1]} : vector<8x256xf32> to vector<8x32xf32>
    %74 = vector.extract_strided_slice %11 {offsets = [0, 224], sizes = [8, 32], strides = [1, 1]} : vector<8x256xf32> to vector<8x32xf32>
    %cst_34 = arith.constant dense<0.000000e+00> : vector<8x8xf32>
    %75 = tpu.matmul %72, %73, %cst_34 {dimension_numbers = #tpu.dot_dimension_numbers<[1], [1], [0], [0], [0, 0, 1, 0], [], []>} : vector<8x32xf32>, vector<8x32xf32>, vector<8x8xf32> -> vector<8x8xf32>
    %cst_35 = arith.constant 0.176776692 : f32
    %76 = vector.broadcast %cst_35 : f32 to vector<8x8xf32>
    %77 = arith.mulf %75, %76 : vector<8x8xf32>
    %cst_36 = arith.constant 0.000000e+00 : f32
    %78 = vector.broadcast %cst_36 : f32 to vector<8x8xf32>
    %79 = arith.cmpf ogt, %5, %78 : vector<8x8xf32>
    %cst_37 = arith.constant -1.000000e+09 : f32
    %80 = vector.broadcast %cst_37 : f32 to vector<8x8xf32>
    %81 = arith.select %79, %80, %77 : vector<8x8xi1>, vector<8x8xf32>
    %cst_38 = arith.constant dense<0xFF800000> : vector<8xf32>
    %82 = vector.multi_reduction <maximumf>, %81, %cst_38 [1] : vector<8x8xf32> to vector<8xf32>
    %83 = vector.shape_cast %82 : vector<8xf32> to vector<8x1xf32>
    %84 = vector.broadcast %83 : vector<8x1xf32> to vector<8x8xf32>
    %85 = arith.subf %81, %84 : vector<8x8xf32>
    %86 = math.exp %85 : vector<8x8xf32>
    %cst_39 = arith.constant dense<0.000000e+00> : vector<8xf32>
    %87 = vector.multi_reduction <add>, %86, %cst_39 [1] : vector<8x8xf32> to vector<8xf32>
    %88 = vector.shape_cast %87 : vector<8xf32> to vector<8x1xf32>
    %89 = vector.broadcast %88 : vector<8x1xf32> to vector<8x8xf32>
    %90 = arith.divf %86, %89 : vector<8x8xf32>
    %cst_40 = arith.constant dense<0.000000e+00> : vector<8x32xf32>
    %91 = tpu.matmul %90, %74, %cst_40 {dimension_numbers = #tpu.dot_dimension_numbers<[1], [0], [0], [1], [0, 0, 1, 1], [], []>} : vector<8x8xf32>, vector<8x32xf32>, vector<8x32xf32> -> vector<8x32xf32>
    %92 = tpu.concatenate %31, %51, %71, %91 in 1 : vector<8x32xf32>, vector<8x32xf32>, vector<8x32xf32>, vector<8x32xf32> -> vector<8x128xf32>
    %93 = arith.truncf %92 : vector<8x128xf32> to vector<8x128xbf16>
    %c0_41 = arith.constant 0 : index
    %c0_42 = arith.constant 0 : index
    %94 = vector.load %arg6[%c0_41, %c0_42] : memref<128x128xbf16, #tpu.memory_space<vmem>>, vector<128x128xbf16>
    %cst_43 = arith.constant dense<0.000000e+00> : vector<8x128xf32>
    %95 = tpu.matmul %93, %94, %cst_43 {dimension_numbers = #tpu.dot_dimension_numbers<[1], [0], [0], [1], [0, 0, 1, 1], [], []>} : vector<8x128xbf16>, vector<128x128xbf16>, vector<8x128xf32> -> vector<8x128xf32>
    %96 = arith.addf %95, %1 : vector<8x128xf32>
    %cst_44 = arith.constant dense<0.000000e+00> : vector<8xf32>
    %97 = vector.multi_reduction <add>, %96, %cst_44 [1] : vector<8x128xf32> to vector<8xf32>
    %98 = vector.shape_cast %97 : vector<8xf32> to vector<8x1xf32>
    %cst_45 = arith.constant 1.280000e+02 : f32
    %99 = vector.broadcast %cst_45 : f32 to vector<8x1xf32>
    %100 = arith.divf %98, %99 : vector<8x1xf32>
    %101 = vector.broadcast %100 : vector<8x1xf32> to vector<8x128xf32>
    %102 = arith.subf %96, %101 : vector<8x128xf32>
    %103 = vector.broadcast %100 : vector<8x1xf32> to vector<8x128xf32>
    %104 = arith.subf %96, %103 : vector<8x128xf32>
    %105 = arith.mulf %102, %104 : vector<8x128xf32>
    %cst_46 = arith.constant dense<0.000000e+00> : vector<8xf32>
    %106 = vector.multi_reduction <add>, %105, %cst_46 [1] : vector<8x128xf32> to vector<8xf32>
    %107 = vector.shape_cast %106 : vector<8xf32> to vector<8x1xf32>
    %cst_47 = arith.constant 1.280000e+02 : f32
    %108 = vector.broadcast %cst_47 : f32 to vector<8x1xf32>
    %109 = arith.divf %107, %108 : vector<8x1xf32>
    %110 = vector.broadcast %100 : vector<8x1xf32> to vector<8x128xf32>
    %111 = arith.subf %96, %110 : vector<8x128xf32>
    %cst_48 = arith.constant 9.99999974E-6 : f32
    %112 = vector.broadcast %cst_48 : f32 to vector<8x1xf32>
    %113 = arith.addf %109, %112 : vector<8x1xf32>
    %114 = math.rsqrt %113 : vector<8x1xf32>
    %115 = vector.broadcast %114 : vector<8x1xf32> to vector<8x128xf32>
    %116 = arith.mulf %111, %115 : vector<8x128xf32>
    %c0_49 = arith.constant 0 : index
    %c0_50 = arith.constant 0 : index
    %c0_51 = arith.constant 0 : index
    %117 = vector.load %arg7[%c0_49, %c0_50, %c0_51] : memref<1x8x128xf32, #tpu.memory_space<vmem>>, vector<1x8x128xf32>
    %118 = vector.shape_cast %117 : vector<1x8x128xf32> to vector<8x128xf32>
    %119 = vector.shape_cast %116 : vector<8x128xf32> to vector<1x8x128xf32>
    tpu.vector_store %arg7[%c0_49, %c0_50, %c0_51], %119 {strides = array<i32>} : memref<1x8x128xf32, #tpu.memory_space<vmem>>, vector<1x8x128xf32>,
    %120 = tpu.concatenate %30, %50, %70, %90 in 1 : vector<8x8xf32>, vector<8x8xf32>, vector<8x8xf32>, vector<8x8xf32> -> vector<8x32xf32>
    %c0_52 = arith.constant 0 : index
    %c0_53 = arith.constant 0 : index
    %c0_54 = arith.constant 0 : index
    %121 = vector.load %arg8[%c0_52, %c0_53, %c0_54] : memref<1x8x32xf32, #tpu.memory_space<vmem>>, vector<1x8x32xf32>
    %122 = vector.shape_cast %121 : vector<1x8x32xf32> to vector<8x32xf32>
    %123 = vector.shape_cast %120 : vector<8x32xf32> to vector<1x8x32xf32>
    tpu.vector_store %arg8[%c0_52, %c0_53, %c0_54], %123 {strides = array<i32>} : memref<1x8x32xf32, #tpu.memory_space<vmem>>, vector<1x8x32xf32>,
    return
  }
  func.func @transform_0(%arg0: i32) -> (i32, i32, i32) {
    %c0_i32 = arith.constant 0 : i32
    %c0_i32_0 = arith.constant 0 : i32
    %c0_i32_1 = arith.constant 0 : i32
    return %arg0, %c0_i32, %c0_i32_0 : i32, i32, i32
  }
  func.func @transform_1(%arg0: i32) -> (i32, i32, i32) {
    %c0_i32 = arith.constant 0 : i32
    %c0_i32_0 = arith.constant 0 : i32
    %c0_i32_1 = arith.constant 0 : i32
    return %arg0, %c0_i32, %c0_i32_0 : i32, i32, i32
  }
  func.func @transform_2(%arg0: i32) -> (i32, i32, i32) {
    %c0_i32 = arith.constant 0 : i32
    %c0_i32_0 = arith.constant 0 : i32
    %c0_i32_1 = arith.constant 0 : i32
    return %arg0, %c0_i32, %c0_i32_0 : i32, i32, i32
  }
  func.func @transform_3(%arg0: i32) -> (i32, i32) {
    %c0_i32 = arith.constant 0 : i32
    %c0_i32_0 = arith.constant 0 : i32
    %c0_i32_1 = arith.constant 0 : i32
    return %c0_i32, %c0_i32_0 : i32, i32
  }
  func.func @transform_4(%arg0: i32) -> (i32, i32) {
    %c0_i32 = arith.constant 0 : i32
    %c0_i32_0 = arith.constant 0 : i32
    %c0_i32_1 = arith.constant 0 : i32
    return %c0_i32, %c0_i32_0 : i32, i32
  }
  func.func @transform_5(%arg0: i32) -> (i32, i32) {
    %c0_i32 = arith.constant 0 : i32
    %c0_i32_0 = arith.constant 0 : i32
    %c0_i32_1 = arith.constant 0 : i32
    return %c0_i32, %c0_i32_0 : i32, i32
  }
  func.func @transform_6(%arg0: i32) -> (i32, i32, i32) {
    %c0_i32 = arith.constant 0 : i32
    %c0_i32_0 = arith.constant 0 : i32
    %c0_i32_1 = arith.constant 0 : i32
    return %arg0, %c0_i32, %c0_i32_0 : i32, i32, i32
  }
  func.func @transform_7(%arg0: i32) -> (i32, i32, i32) {
    %c0_i32 = arith.constant 0 : i32
    %c0_i32_0 = arith.constant 0 : i32
    %c0_i32_1 = arith.constant 0 : i32
    return %arg0, %c0_i32, %c0_i32_0 : i32, i32, i32
  }
}

module attributes {stable_mosaic.version = 11 : i64} {
  func.func @_proj_kernel(%arg0: i32, %arg1: memref<16x128xf32, #tpu.memory_space<vmem>>, %arg2: memref<128x128xbf16, #tpu.memory_space<vmem>>, %arg3: memref<16x128xf32, #tpu.memory_space<vmem>>) attributes {dimension_semantics = [#tpu.dimension_semantics<arbitrary>], iteration_bounds = array<i64: 1>, scalar_prefetch = 0 : i64, scratch_operands = 0 : i64, tpu.core_type = #tpu.core_type<tc>, window_params = [{pipeline_mode = #tpu.pipeline_mode<synchronous>, transform_indices = @transform_0, window_bounds = array<i64: 16, 128>}, {pipeline_mode = #tpu.pipeline_mode<synchronous>, transform_indices = @transform_1, window_bounds = array<i64: 128, 128>}, {pipeline_mode = #tpu.pipeline_mode<synchronous>, transform_indices = @transform_2, window_bounds = array<i64: 16, 128>}]} {
    %c0 = arith.constant 0 : index
    %c0_0 = arith.constant 0 : index
    %0 = vector.load %arg1[%c0, %c0_0] : memref<16x128xf32, #tpu.memory_space<vmem>>, vector<16x128xf32>
    %1 = arith.truncf %0 : vector<16x128xf32> to vector<16x128xbf16>
    %c0_1 = arith.constant 0 : index
    %c0_2 = arith.constant 0 : index
    %2 = vector.load %arg2[%c0_1, %c0_2] : memref<128x128xbf16, #tpu.memory_space<vmem>>, vector<128x128xbf16>
    %cst = arith.constant dense<0.000000e+00> : vector<16x128xf32>
    %3 = tpu.matmul %1, %2, %cst {dimension_numbers = #tpu.dot_dimension_numbers<[1], [0], [0], [1], [0, 0, 1, 1], [], []>} : vector<16x128xbf16>, vector<128x128xbf16>, vector<16x128xf32> -> vector<16x128xf32>
    %c0_3 = arith.constant 0 : index
    %c0_4 = arith.constant 0 : index
    %4 = vector.load %arg3[%c0_3, %c0_4] : memref<16x128xf32, #tpu.memory_space<vmem>>, vector<16x128xf32>
    tpu.vector_store %arg3[%c0_3, %c0_4], %3 {strides = array<i32>} : memref<16x128xf32, #tpu.memory_space<vmem>>, vector<16x128xf32>,
    return
  }
  func.func @transform_0(%arg0: i32) -> (i32, i32) {
    %c0_i32 = arith.constant 0 : i32
    %c0_i32_0 = arith.constant 0 : i32
    %c0_i32_1 = arith.constant 0 : i32
    return %c0_i32, %c0_i32_0 : i32, i32
  }
  func.func @transform_1(%arg0: i32) -> (i32, i32) {
    %c0_i32 = arith.constant 0 : i32
    %c0_i32_0 = arith.constant 0 : i32
    %c0_i32_1 = arith.constant 0 : i32
    return %c0_i32, %c0_i32_0 : i32, i32
  }
  func.func @transform_2(%arg0: i32) -> (i32, i32) {
    %c0_i32 = arith.constant 0 : i32
    %c0_i32_0 = arith.constant 0 : i32
    %c0_i32_1 = arith.constant 0 : i32
    return %c0_i32, %c0_i32_0 : i32, i32
  }
}

</mosaic_0001>

<bundles_post_ra>
// kernel: _transformer_forward.12
= control target key start
LH: loop header
LB: loop body
LE: loop exit
PB: predicated region body
PF: predicated region fallthrough
CT: control target
= control target key end

     0   :  { %s740_s12 = smov 0   ;;  %s912_s0 = inlined_call_operand.vmem [shape: f32[2,8,128], index: 0, kind: input, shape index: {}]   ;;  %s913_s1 = inlined_call_operand.vmem [shape: bf16[128,256], index: 1, kind: input, shape index: {}]   ;;  %s914_s2 = inlined_call_operand.vmem [shape: bf16[256,128], index: 2, kind: input, shape index: {}]   ;;  %s915_s3 = inlined_call_operand.vmem [shape: f32[2,8,128], index: 3, kind: output, shape index: {}]  }
   0x1 LB: > { %s529_s13 = sadd.s32 4294967295, %s717_s12   ;;  %p533_p0 = scmp.ge.s32.totalorder %s717_s12, 1  ;;  %s717_s12 = sphi %s740_s12, %s13_s12  }
   0x2   : > { %p136_p1 = scmp.lt.s32.totalorder %s717_s12, 3 }
   0x4   : > { %p137_p2 = pnand %p533_p0, %p136_p1 }
   0x5   : > { %p158_p3 = scmp.lt.s32.totalorder (!%p137_p2), %s529_s13, 1 }
   0x6   : > { %140 = sbr.rel (%p137_p2) target bundleno = 574 (0x23e), region = 32 }
   0xb   : > { %v594_v0 = vld [vmem:[%s913_s1 + $0x70] sm:$0xf]  ;;  %v681_v1 = vld [vmem:[%s913_s1 + $0x74] sm:$0xf0]  ;;  %v680_v2 = vld [vmem:[%s913_s1 + $0x74] sm:$0xf] }
   0xc   : > { %v595_v3 = vor.u32 %v681_v1, %v594_v0  ;;  %v596_v4 = vld [vmem:[%s913_s1 + $0x78] sm:$0xf0]  ;;  %v586_v5 = vld [vmem:[%s913_s1 + $0x60] sm:$0xf]  ;;  %v679_v6 = vld [vmem:[%s913_s1 + $0x64] sm:$0xf0] }
   0xd   : > { %v599_v7 = vor.u32 %v680_v2, %v596_v4  ;;  %v678_v8 = vld [vmem:[%s913_s1 + $0x64] sm:$0xf]  ;;  %v588_v9 = vld [vmem:[%s913_s1 + $0x68] sm:$0xf0]  ;;  %v587_v10 = vor.u32 %v679_v6, %v586_v5  ;;  %v578_v12 = vld [vmem:[%s913_s1 + $0x50] sm:$0xf] }
   0xe   : > { %264 = vmatpush.bf16.msra.mxu0 %v595_v3  ;;  %v591_v11 = vor.u32 %v678_v8, %v588_v9  ;;  %v677_v13 = vld [vmem:[%s913_s1 + $0x54] sm:$0xf0]  ;;  %v676_v14 = vld [vmem:[%s913_s1 + $0x54] sm:$0xf]  ;;  %v580_v15 = vld [vmem:[%s913_s1 + $0x58] sm:$0xf0] }
   0xf   : > { %277 = vmatpush.bf16.msra.mxu1 %v599_v7  ;;  %v579_v16 = vor.u32 %v677_v13, %v578_v12  ;;  %v583_v17 = vor.u32 %v676_v14, %v580_v15  ;;  %v570_v18 = vld [vmem:[%s913_s1 + $0x40] sm:$0xf]  ;;  %v675_v19 = vld [vmem:[%s913_s1 + $0x44] sm:$0xf0]  ;;  %v674_v20 = vld [vmem:[%s913_s1 + $0x44] sm:$0xf] }
  0x10   : > { %v572_v21 = vld [vmem:[%s913_s1 + $0x48] sm:$0xf0]  ;;  %v689_v22 = vld [vmem:[%s914_s2 + $0x38] sm:$0xff]  ;;  %v571_v23 = vor.u32 %v675_v19, %v570_v18  ;;  %v562_v26 = vld [vmem:[%s913_s1 + $0x30] sm:$0xf]  ;;  %s917_s13 = smov (!%p158_p3, %s529_s13), 1 }
  0x11   : > { %v697_v24 = vld [vmem:[%s914_s2 + $0x78] sm:$0xff]  ;;  %v575_v25 = vor.u32 %v674_v20, %v572_v21  ;;  %422 = vmatpush.bf16.msra.mxu2 %v689_v22  ;;  %v688_v28 = vld [vmem:[%s914_s2 + $0x30] sm:$0xff]  ;;  %v554_v34 = vld [vmem:[%s913_s1 + $0x20] sm:$0xf]  ;;  %s534_s7 = sshll.u32 %s917_s13, 3 }
  0x12   : > { %265 = vmatpush.bf16.msra.mxu0 %v587_v10  ;;  %v673_v27 = vld [vmem:[%s913_s1 + $0x34] sm:$0xf0]  ;;  %v672_v29 = vld [vmem:[%s913_s1 + $0x34] sm:$0xf]  ;;  %v564_v30 = vld [vmem:[%s913_s1 + $0x38] sm:$0xf0]  ;;  %435 = vmatpush.bf16.msra.mxu3 %v697_v24  ;;  %s161_s18 = scalar_lea.vmem %s912_s0, %s534_s7  ;;  %s165_s17 = scalar_lea.vmem %s915_s3, %s534_s7 }
  0x13   : > { %278 = vmatpush.bf16.msra.mxu1 %v591_v11  ;;  %v696_v31 = vld [vmem:[%s914_s2 + $0x70] sm:$0xff]  ;;  %v563_v32 = vor.u32 %v673_v27, %v562_v26  ;;  %v567_v33 = vor.u32 %v672_v29, %v564_v30  ;;  %v671_v35 = vld [vmem:[%s913_s1 + $0x24] sm:$0xf0]  ;;  %v670_v37 = vld [vmem:[%s913_s1 + $0x24] sm:$0xf] }
  0x14   : > { %v687_v36 = vld [vmem:[%s914_s2 + $0x28] sm:$0xff]  ;;  %v555_v40 = vor.u32 %v671_v35, %v554_v34  ;;  %v546_v42 = vld [vmem:[%s913_s1 + $0x10] sm:$0xf]  ;;  %v669_v43 = vld [vmem:[%s913_s1 + $0x14] sm:$0xf0] }
  0x15   : > { %423 = vmatpush.bf16.msra.mxu2 %v688_v28  ;;  %v556_v38 = vld [vmem:[%s913_s1 + $0x28] sm:$0xf0]  ;;  %v686_v44 = vld [vmem:[%s914_s2 + $0x20] sm:$0xff]  ;;  %v668_v45 = vld [vmem:[%s913_s1 + $0x14] sm:$0xf]  ;;  %v547_v48 = vor.u32 %v669_v43, %v546_v42 }
  0x16   : > { %266 = vmatpush.bf16.msra.mxu0 %v579_v16  ;;  %436 = vmatpush.bf16.msra.mxu3 %v696_v31  ;;  %v695_v39 = vld [vmem:[%s914_s2 + $0x68] sm:$0xff]  ;;  %v559_v41 = vor.u32 %v670_v37, %v556_v38  ;;  %v548_v46 = vld [vmem:[%s913_s1 + $0x18] sm:$0xf0]  ;;  %v694_v47 = vld [vmem:[%s914_s2 + $0x60] sm:$0xff]  ;;  %v719_v16 = vmov 128.0  }
  0x17   : > { %279 = vmatpush.bf16.msra.mxu1 %v583_v17  ;;  %v551_v49 = vor.u32 %v668_v45, %v548_v46  ;;  %v538_v50 = vld [vmem:[%s913_s1] sm:$0xf]  ;;  %v667_v51 = vld [vmem:[%s913_s1 + $0x4] sm:$0xf0]  ;;  %v685_v52 = vld [vmem:[%s914_s2 + $0x18] sm:$0xff]  ;;  %707 = vrcp.f32 %v719_v16 }
  0x18   : > { %v666_v53 = vld [vmem:[%s913_s1 + $0x4] sm:$0xf]  ;;  %v540_v54 = vld [vmem:[%s913_s1 + $0x8] sm:$0xf0]  ;;  %v693_v55 = vld [vmem:[%s914_s2 + $0x58] sm:$0xff]  ;;  %v539_v56 = vor.u32 %v667_v51, %v538_v50 }
  0x19   : > { %424 = vmatpush.bf16.msra.mxu2 %v687_v36  ;;  %v166_v57 = vld [vmem:[%s161_s18] sm:$0xff]  ;;  %v543_v58 = vor.u32 %v666_v53, %v540_v54  ;;  %v684_v59 = vld [vmem:[%s914_s2 + $0x10] sm:$0xff]  ;;  %v683_v62 = vld [vmem:[%s914_s2 + $0x8] sm:$0xff] }
  0x1a   : > { %267 = vmatpush.bf16.msra.mxu0 %v571_v23  ;;  %437 = vmatpush.bf16.msra.mxu3 %v695_v39  ;;  %v692_v60 = vld [vmem:[%s914_s2 + $0x50] sm:$0xff]  ;;  %v167_v61 = vpack.c.bf16 %v166_v57, %v166_v57  ;;  %v691_v63 = vld [vmem:[%s914_s2 + $0x48] sm:$0xff]  ;;  %v682_v0 = vld [vmem:[%s914_s2] sm:$0xff] }
  0x1b   : > { %280 = vmatpush.bf16.msra.mxu1 %v575_v25  ;;  %v690_v1 = vld [vmem:[%s914_s2 + $0x40] sm:$0xff] }
  0x1d   : > { %425 = vmatpush.bf16.msra.mxu2 %v686_v44  ;;  %v708_v17 = vpop.eup %707 }
  0x1e   : > { %268 = vmatpush.bf16.msra.mxu0 %v563_v32  ;;  %438 = vmatpush.bf16.msra.mxu3 %v694_v47  ;;  %v451_v18 = vmul.f32 128.0, %v708_v17  ;;  %vm455_vm0 = vweird.f32 %v708_v17 }
  0x1f   : > { %281 = vmatpush.bf16.msra.mxu1 %v567_v33 }
  0x20   : > { %v452_v19 = vsub.f32 1.0, %v451_v18 }
  0x21   : > { %426 = vmatpush.bf16.msra.mxu2 %v685_v52 }
  0x22   : > { %269 = vmatpush.bf16.msra.mxu0 %v555_v40  ;;  %439 = vmatpush.bf16.msra.mxu3 %v693_v55  ;;  %v453_v20 = vmul.f32 %v708_v17, %v452_v19 }
  0x23   : > { %282 = vmatpush.bf16.msra.mxu1 %v559_v41 }
  0x24   : > { %v454_v21 = vadd.f32 %v708_v17, %v453_v20 }
  0x25   : > { %427 = vmatpush.bf16.msra.mxu2 %v684_v59 }
  0x26   : > { %270 = vmatpush.bf16.msra.mxu0 %v547_v48  ;;  %440 = vmatpush.bf16.msra.mxu3 %v692_v60  ;;  %v456_v22 = vsel %vm455_vm0, %v708_v17, %v454_v21 }
  0x27   : > { %283 = vmatpush.bf16.msra.mxu1 %v551_v49 }
  0x29   : > { %428 = vmatpush.bf16.msra.mxu2 %v683_v62 }
  0x2a   : > { %271 = vmatpush.bf16.msra.mxu0 %v539_v56  ;;  %441 = vmatpush.bf16.msra.mxu3 %v691_v63 }
  0x2b   : > { %284 = vmatpush.bf16.msra.mxu1 %v543_v58 }
  0x2d   : > { %272 = vmatmul.bf16.vlgmr.msra.gmra.mxu0 %v167_v61  ;;  %429 = vmatpush.bf16.msra.mxu2 %v682_v0 }
  0x2e   : > { %285 = vmatmul.bf16.vlgmr.msra.gmra.mxu1 %v167_v61  ;;  %442 = vmatpush.bf16.msra.mxu3 %v690_v1 }
  0xaa   : > { %v273_v2 = vpop.f32.mrf.mxu0 }
  0xab   : > { %v290_v3 = vmax.f32 %v273_v2, 0.0  ;;  %v286_v4 = vpop.f32.mrf.mxu1 }
  0xac   : > { %v291_v5 = vmax.f32 %v286_v4, 0.0 }
  0xad   : > { %v292_v6 = vpack.c.bf16 %v290_v3, %v290_v3 }
  0xae   : > { %v293_v7 = vpack.c.bf16 %v291_v5, %v291_v5 }
  0xaf   : > { %430 = vmatmul.bf16.vlgmr.msra.gmra.mxu2 %v292_v6 }
  0xb0   : > { %443 = vmatmul.bf16.vlgmr.msra.gmra.mxu3 %v293_v7 }
  0xb2   : > { %v275_v8 = vpop.f32.mrf.mxu0 }
  0xb3   : > { %v288_v9 = vpop.f32.mrf.mxu1 }
 0x132   : > { %v431_v10 = vpop.f32.mrf.mxu2 }
 0x133   : > { %v432_v11 = vadd.f32 %v431_v10, %v166_v57  ;;  %v444_v12 = vpop.f32.mrf.mxu3 }
 0x135   : > { %v445_v13 = vadd.f32 %v444_v12, %v432_v11 }
 0x137   : > { %448 = vadd.xlane.f32.xlu0 %v445_v13 }
 0x13a   : > { %v433_v14 = vpop.f32.mrf.mxu2 }
 0x13b   : > { %v446_v15 = vpop.f32.mrf.mxu3 }
 0x1aa   : > { %v449_v23 = vpop.xlane.xlu0 %448 }
 0x1ab   : > { %v457_v24 = vmul.f32 %v456_v22, %v449_v23 }
 0x1ad   : > { %v458_v25 = vsub.f32 %v445_v13, %v457_v24 }
 0x1af   : > { %v459_v26 = vmul.f32 %v458_v25, %v458_v25 }
 0x1b1   : > { %460 = vadd.xlane.f32.xlu0 %v459_v26 }
 0x224   : > { %v461_v27 = vpop.xlane.xlu0 %460 }
 0x225   : > { %v462_v28 = vmul.f32 %v461_v27, %v456_v22 }
 0x227   : > { %v463_v29 = vadd.f32 1e-05, %v462_v28 }
 0x229   : > { %709 = vrsqrt.f32 %v463_v29  ;;  %vm470_vm2 = vweird.f32 %v463_v29 }
 0x22f   : > { %v710_v30 = vpop.eup %709 }
 0x230   : > { %v465_v31 = vmul.f32 %v710_v30, %v463_v29  ;;  %vm471_vm1 = vweird.f32 %v710_v30 }
 0x231   : > { %vm472_vm3 = vmor %vm470_vm2, %vm471_vm1 }
 0x232   : > { %v466_v32 = vmul.f32 %v710_v30, %v465_v31 }
 0x234   : > { %v467_v33 = vmul.f32 0.5, %v466_v32 }
 0x236   : > { %v468_v34 = vsub.f32 1.5, %v467_v33 }
 0x238   : > { %v469_v35 = vmul.f32 %v710_v30, %v468_v34 }
 0x23a   : > { %v473_v36 = vsel %vm472_vm3, %v710_v30, %v469_v35 }
 0x23b   : > { %v474_v37 = vmul.f32 %v473_v36, %v458_v25 }
 0x23d   : > { %475 = vst [vmem:[%s165_s17] sm:$0xff] %v474_v37 }
 0x23e PF: > { %s13_s12 = sadd.s32 1, %s717_s12  }
 0x23f   : > { %p10_p4 = scmp.ge.s32.totalorder %s13_s12, 4  }
 0x241   :  { %12 = sbr.rel (!%p10_p4) target bundleno = 1 (0x1), region = 62 }

// kernel: _transformer_forward.11
= control target key start
LH: loop header
LB: loop body
LE: loop exit
PB: predicated region body
PF: predicated region fallthrough
CT: control target
= control target key end

     0   :  { %13 = vsyncpa [#allocation3], 0  ;;  %s1443_s24 = smov 0   ;;  %s1682_s0 = inlined_call_operand.vmem [shape: f32[2,8,128], index: 0, kind: input, shape index: {}, may-alias: {0,1}]   ;;  %s1683_s1 = inlined_call_operand.vmem [shape: f32[2,8,128], index: 1, kind: input, shape index: {}, may-alias: {0,1}]   ;;  %s1684_s2 = inlined_call_operand.vmem [shape: f32[2,8,8], index: 2, kind: input, shape index: {}]   ;;  %s1685_s3 = inlined_call_operand.vmem [shape: bf16[128,128], index: 3, kind: input, shape index: {}]   ;;  %s1686_s4 = inlined_call_operand.vmem [shape: bf16[128,256], index: 4, kind: input, shape index: {}]   ;;  %s1687_s5 = inlined_call_operand.hbm [shape: bf16[128,128], index: 5, kind: input, shape index: {}]   ;;  %s1688_s6 = inlined_call_operand.vmem [shape: f32[2,8,128], index: 6, kind: output, shape index: {0}]   ;;  %s1689_s7 = inlined_call_operand.vmem [shape: f32[2,8,32], index: 7, kind: output, shape index: {1}]  }
   0x1 LB: > { %s234_s27 = sshll.u32 %s1687_s5, 4  ;;  %s1452_s28 = sadd.s32 4294967295, %s1391_s24   ;;  %s1391_s24 = sphi %s1443_s24, %s19_s24   ;;  %s235_s27 = int_to_ptr.hbm [resolvable:$true] %s234_s27 }
   0x2   : > { %p1119_p0 = scmp.ge.s32.totalorder %s1391_s24, 1  ;;  %p217_p1 = scmp.lt.s32.totalorder %s1391_s24, 3 }
   0x3   : > { %p1311_p2 = scmp.eq.s32.totalorder %s1452_s28, 0  ;;  %s1393_s29 = smov [#allocation2]  }
   0x4   : > { %p218_p3 = pnand %p1119_p0, %p217_p1  ;;  %s236_s30 = sshll.u32 %s1393_s29, 4  ;;  %s237_s30 = int_to_ptr.vmem [resolvable:$true] %s236_s30 }
   0x5   : > { %s1394_s8 = smov 64   ;;  %s1395_s9 = smov 4  }
   0x6   : > { %p1307_p4 = pneg %p218_p3  ;;  %273 = sbr.rel (%p218_p3) target bundleno = 2013 (0x7dd), region = 44 }
   0x8   : > { %p1308_p5 = pnand %p1311_p2, %p1307_p4 }
   0xa   : > { %1310 = dma.hbm_to_vmem [thread:$0]  (!%p1308_p5), %s235_s27, 1024, %s237_s30, [#allocation3], %s1394_s8, %s1394_s8, %s1395_s9  }
   0xb   : > { %1386 = dma.done.wait (%p1311_p2), [#allocation3], 1024  }
   0xc   : > { %1388 = vsyncadd (%p1311_p2), [#allocation3], 4294966272  ;;  %v1278_v0 = vld [vmem:[%s1685_s3 + $0x38] sm:$0xff]  ;;  %v1219_v1 = vld [vmem:[%s1686_s4 + $0x70] sm:$0xf]  ;;  %p316_p6 = scmp.lt.s32.totalorder %s1452_s28, 1 }
   0xd   : > { %v1294_v2 = vld [vmem:[%s1686_s4 + $0x74] sm:$0xf0]  ;;  %v1211_v4 = vld [vmem:[%s1686_s4 + $0x60] sm:$0xf]  ;;  %v1292_v5 = vld [vmem:[%s1686_s4 + $0x64] sm:$0xf0]  ;;  %404 = vmatpush.bf16.msra.mxu0 %v1278_v0 }
   0xe   : > { %v1220_v3 = vor.u32 %v1294_v2, %v1219_v1  ;;  %v1277_v6 = vld [vmem:[%s1685_s3 + $0x30] sm:$0xff]  ;;  %v1212_v7 = vor.u32 %v1292_v5, %v1211_v4  ;;  %v1290_v9 = vld [vmem:[%s1686_s4 + $0x54] sm:$0xf0]  ;;  %v1276_v10 = vld [vmem:[%s1685_s3 + $0x28] sm:$0xff]  ;;  %s1691_s28 = smov (!%p316_p6, %s1452_s28), 1  ;;  %vm540_vm0 = vcmask 261120  }
   0xf   : > { %v1203_v8 = vld [vmem:[%s1686_s4 + $0x50] sm:$0xf]  ;;  %v1195_v12 = vld [vmem:[%s1686_s4 + $0x40] sm:$0xf]  ;;  %v1288_v13 = vld [vmem:[%s1686_s4 + $0x44] sm:$0xf0] }
  0x10   : > { %514 = vmatpush.bf16.msra.mxu1 %v1220_v3  ;;  %v1204_v11 = vor.u32 %v1290_v9, %v1203_v8  ;;  %v1293_v14 = vld [vmem:[%s1686_s4 + $0x74] sm:$0xf]  ;;  %v1221_v15 = vld [vmem:[%s1686_s4 + $0x78] sm:$0xf0]  ;;  %v1291_v16 = vld [vmem:[%s1686_s4 + $0x64] sm:$0xf]  ;;  %v1196_v20 = vor.u32 %v1288_v13, %v1195_v12 }
  0x11   : > { %405 = vmatpush.bf16.msra.mxu0 %v1277_v6  ;;  %v1213_v17 = vld [vmem:[%s1686_s4 + $0x68] sm:$0xf0]  ;;  %v1275_v18 = vld [vmem:[%s1685_s3 + $0x20] sm:$0xff]  ;;  %v1224_v19 = vor.u32 %v1293_v14, %v1221_v15  ;;  %v1187_v21 = vld [vmem:[%s1686_s4 + $0x30] sm:$0xf]  ;;  %s1543_s25 = sshll.u32 %s1691_s28, 3 }
  0x12   : > { %v1286_v22 = vld [vmem:[%s1686_s4 + $0x34] sm:$0xf0]  ;;  %v1216_v23 = vor.u32 %v1291_v16, %v1213_v17  ;;  %v1289_v24 = vld [vmem:[%s1686_s4 + $0x54] sm:$0xf]  ;;  %v1205_v25 = vld [vmem:[%s1686_s4 + $0x58] sm:$0xf0]  ;;  %s319_s11 = scalar_lea.vmem %s1682_s0, %s1543_s25  ;;  %s323_s18 = scalar_lea.vmem %s1683_s1, %s1543_s25 }
  0x13   : > { %527 = vmatpush.bf16.msra.mxu2 %v1224_v19  ;;  %v1274_v26 = vld [vmem:[%s1685_s3 + $0x18] sm:$0xff]  ;;  %v1188_v27 = vor.u32 %v1286_v22, %v1187_v21  ;;  %v1179_v28 = vld [vmem:[%s1686_s4 + $0x20] sm:$0xf]  ;;  %v1284_v29 = vld [vmem:[%s1686_s4 + $0x24] sm:$0xf0]  ;;  %v1208_v30 = vor.u32 %v1289_v24, %v1205_v25  ;;  %s1396_s12 = smov 96   ;;  %s327_s17 = scalar_lea.vmem %s1684_s2, %s1543_s25 }
  0x14   : > { %515 = vmatpush.bf16.msra.mxu1 %v1212_v7  ;;  %v1287_v31 = vld [vmem:[%s1686_s4 + $0x44] sm:$0xf]  ;;  %v1197_v32 = vld [vmem:[%s1686_s4 + $0x48] sm:$0xf0]  ;;  %v1273_v33 = vld [vmem:[%s1685_s3 + $0x10] sm:$0xff]  ;;  %v1180_v34 = vor.u32 %v1284_v29, %v1179_v28  ;;  %s1397_s13 = smov 64   ;;  %s335_s23 = scalar_lea.vmem %s1689_s7, %s1543_s25 }
  0x15   : > { %406 = vmatpush.bf16.msra.mxu0 %v1276_v10  ;;  %v1171_v35 = vld [vmem:[%s1686_s4 + $0x10] sm:$0xf]  ;;  %v1282_v36 = vld [vmem:[%s1686_s4 + $0x14] sm:$0xf0]  ;;  %v1200_v37 = vor.u32 %v1287_v31, %v1197_v32  ;;  %v1285_v38 = vld [vmem:[%s1686_s4 + $0x34] sm:$0xf]  ;;  %s331_s29 = scalar_lea.vmem %s1688_s6, %s1543_s25 }
  0x16   : > { %v1189_v39 = vld [vmem:[%s1686_s4 + $0x38] sm:$0xf0]  ;;  %v1272_v40 = vld [vmem:[%s1685_s3 + $0x8] sm:$0xff]  ;;  %v1172_v41 = vor.u32 %v1282_v36, %v1171_v35  ;;  %v1163_v42 = vld [vmem:[%s1686_s4] sm:$0xf]  ;;  %s1398_s14 = smov 32  }
  0x17   : > { %528 = vmatpush.bf16.msra.mxu2 %v1216_v23  ;;  %v1280_v43 = vld [vmem:[%s1686_s4 + $0x4] sm:$0xf0]  ;;  %v1192_v44 = vor.u32 %v1285_v38, %v1189_v39  ;;  %v1283_v45 = vld [vmem:[%s1686_s4 + $0x24] sm:$0xf]  ;;  %v1181_v46 = vld [vmem:[%s1686_s4 + $0x28] sm:$0xf0] }
  0x18   : > { %516 = vmatpush.bf16.msra.mxu1 %v1204_v11  ;;  %v1271_v47 = vld [vmem:[%s1685_s3] sm:$0xff]  ;;  %v1164_v49 = vor.u32 %v1280_v43, %v1163_v42  ;;  %v1184_v51 = vor.u32 %v1283_v45, %v1181_v46  ;;  %v1281_v53 = vld [vmem:[%s1686_s4 + $0x14] sm:$0xf]  ;;  %v1173_v54 = vld [vmem:[%s1686_s4 + $0x18] sm:$0xf0]  ;;  %vm570_vm2 = vcmask 64512  }
  0x19   : > { %407 = vmatpush.bf16.msra.mxu0 %v1275_v18  ;;  %v1577_v48 = vld [vmem:[%s319_s11] sm:$0xff]  ;;  %v1176_v56 = vor.u32 %v1281_v53, %v1173_v54  ;;  %v1165_v58 = vld [vmem:[%s1686_s4 + $0x8] sm:$0xf0]  ;;  %s1400_s19 = smov 16   ;;  %s1401_s20 = smov 24  }
  0x1a   : > { %v337_v50 = vld [vmem:[%s323_s18] sm:$0xff]  ;;  %v339_v52 = vpack.c.bf16 %v1577_v48, %v1577_v48  ;;  %s1399_s18 = smov 8  }
  0x1b   : > { %529 = vmatpush.bf16.msra.mxu2 %v1208_v30  ;;  %v417_v55 = vpack.c.bf16 %v337_v50, %v337_v50  ;;  %v1279_v57 = vld [vmem:[%s1686_s4 + $0x4] sm:$0xf] }
  0x1c   : > { %517 = vmatpush.bf16.msra.mxu1 %v1196_v20  ;;  %v1168_v59 = vor.u32 %v1279_v57, %v1165_v58  ;;  %v1613_v5 = vld [vmem:[%s327_s17] sm:$0xff] }
  0x1d   : > { %408 = vmatpush.bf16.msra.mxu0 %v1274_v26  ;;  %vm568_vm1 = vcmp.gt.f32.partialorder %v1613_v5, 0.0 }
  0x1f   : > { %530 = vmatpush.bf16.msra.mxu2 %v1200_v37 }
  0x20   : > { %518 = vmatpush.bf16.msra.mxu1 %v1188_v27 }
  0x21   : > { %409 = vmatpush.bf16.msra.mxu0 %v1273_v33 }
  0x23   : > { %531 = vmatpush.bf16.msra.mxu2 %v1192_v44 }
  0x24   : > { %519 = vmatpush.bf16.msra.mxu1 %v1180_v34 }
  0x25   : > { %410 = vmatpush.bf16.msra.mxu0 %v1272_v40 }
  0x27   : > { %532 = vmatpush.bf16.msra.mxu2 %v1184_v51 }
  0x28   : > { %520 = vmatpush.bf16.msra.mxu1 %v1172_v41 }
  0x29   : > { %411 = vmatpush.bf16.msra.mxu0 %v1271_v47 }
  0x2b   : > { %533 = vmatpush.bf16.msra.mxu2 %v1176_v56 }
  0x2c   : > { %521 = vmatpush.bf16.msra.mxu1 %v1164_v49  ;;  %412 = vmatmul.bf16.vlgmr.msra.gmra.mxu0 %v339_v52 }
  0x2f   : > { %522 = vmatmul.bf16.vlgmr.msra.gmra.mxu1 %v417_v55  ;;  %534 = vmatpush.bf16.msra.mxu2 %v1168_v59 }
  0x32   : > { %535 = vmatmul.bf16.vlgmr.msra.gmra.mxu2 %v417_v55 }
  0xa9   : > { %v1593_v60 = vpop.f32.mrf.mxu0 }
  0xac   : > { %v523_v61 = vpop.f32.mrf.mxu1 }
  0xad   : > { %620 = vrot.lane.b32.xlu1 %v523_v61, %s1396_s12  ;;  %1225 = vmatpush.xpose.msk.msra.mxu3 %vm540_vm0, %v523_v61 }
  0xb0   : > { %1226 = vmatmul.msk.f32.vlgmr.msra.gmra.mxu3 %vm540_vm0, %v1593_v60 }
  0xb1   : > { %v415_v62 = vpop.f32.mrf.mxu0 }
  0xb4   : > { %v525_v63 = vpop.f32.mrf.mxu1 }
  0xb5   : > { %618 = vrot.lane.b32.xlu1 %v1593_v60, %s1396_s12  ;;  %v1601_v0 = vpop.f32.mrf.mxu2 }
  0xb6   : > { %613 = vmatpush.msrb.mxu3 %v1601_v0 }
  0xbd   : > { %701 = vrot.lane.b32.xlu1 %v523_v61, %s1397_s13  ;;  %v538_v1 = vpop.f32.mrf.mxu2 }
  0xc5   : > { %781 = vrot.lane.b32.xlu1 %v523_v61, %s1398_s14 }
  0xcd   : > { %779 = vrot.lane.b32.xlu1 %v1593_v60, %s1398_s14 }
 0x11f   : > { %v621_v2 = vpop.permute.xlu1 %620 }
 0x120   : > { %1228 = vmatpush.xpose.msk.msra.mxu3 %vm540_vm0, %v621_v2 }
 0x127   : > { %v619_v3 = vpop.permute.xlu1 %618 }
 0x12f   : > { %v702_v4 = vpop.permute.xlu1 %701 }
 0x133   : > { %v564_v6 = vpop.f32.mrf.mxu3 }
 0x134   : > { %v567_v7 = vmul.f32 0.17677669, %v564_v6 }
 0x136   : > { %v569_v8 = vsel %vm568_vm1, -1e+09, %v567_v7 }
 0x137   : > { %v782_v9 = vpop.permute.xlu1 %781  ;;  %v571_v10 = vsel %vm570_vm2, %v569_v8, -inf }
 0x138   : > { %1234 = vmatpush.xpose.msk.msrb.mxu0 %vm540_vm0, %v782_v9  ;;  %572 = vmax.xlane.f32.xlu0 %v571_v10 }
 0x13f   : > { %v780_v11 = vpop.permute.xlu1 %779 }
 0x140   : > { %1235 = vmatmul.msk.f32.vlgmr.msrb.gmra.mxu0 %vm540_vm0, %v780_v11 }
 0x1ab   : > { %v573_v12 = vpop.xlane.xlu0 %572 }
 0x1ac   : > { %v574_v13 = vsub.f32 %v569_v8, %v573_v12 }
 0x1ae   : > { %v575_v14 = vmul.f32 1.442695, %v574_v13 }
 0x1b0   : > { %1331 = vpow2.f32 %v575_v14 }
 0x1b6   : > { %v1332_v15 = vpop.eup %1331 }
 0x1b7   : > { %v577_v16 = vsel %vm570_vm2, %v1332_v15, 0.0 }
 0x1b8   : > { %578 = vadd.xlane.f32.xlu0 %v577_v16 }
 0x1bd   : > { %v804_v17 = vpop.f32.mrf.mxu0 }
 0x1be   : > { %v807_v18 = vmul.f32 0.17677669, %v804_v17 }
 0x1c0   : > { %v1624_v19 = vsel %vm568_vm1, -1e+09, %v807_v18 }
 0x1c1   : > { %v809_v20 = vsel %vm570_vm2, %v1624_v19, -inf }
 0x1c2   : > { %810 = vmax.xlane.f32.xlu1 %v809_v20 }
 0x1cc   : > { %673 = vrot.lane.b32.xlu0 %v1601_v0, %s1396_s12 }
 0x1db   : > { %833 = vrot.lane.b32.xlu1 %v1601_v0, %s1398_s14 }
 0x22b   : > { %v579_v21 = vpop.xlane.xlu0 %578 }
 0x22c   : > { %1333 = vrcp.f32 %v579_v21  ;;  %v591_v25 = vand.u32 2147483648, %v579_v21  ;;  %v589_v27 = vand.u32 2147483647, %v579_v21  ;;  %vm585_vm4 = vweird.f32 %v579_v21 }
 0x22e   : > { %v592_v29 = vor.u32 1.1754944e-38, %v591_v25  ;;  %vm590_vm6 = vcmp.eq.f32.partialorder %v589_v27, 8.507059e+37 }
 0x232   : > { %v1334_v22 = vpop.eup %1333 }
 0x233   : > { %v581_v23 = vmul.f32 %v1334_v22, %v579_v21  ;;  %vm586_vm3 = vweird.f32 %v1334_v22 }
 0x234   : > { %vm587_vm5 = vmor %vm585_vm4, %vm586_vm3 }
 0x235   : > { %v582_v24 = vsub.f32 1.0, %v581_v23  ;;  %v811_v34 = vpop.xlane.xlu1 %810 }
 0x236   : > { %v812_v61 = vsub.f32 %v1624_v19, %v811_v34 }
 0x237   : > { %v583_v26 = vmul.f32 %v1334_v22, %v582_v24 }
 0x238   : > { %v813_v62 = vmul.f32 1.442695, %v812_v61 }
 0x239   : > { %v584_v28 = vadd.f32 %v1334_v22, %v583_v26 }
 0x23b   : > { %v588_v30 = vsel %vm587_vm5, %v1334_v22, %v584_v28  ;;  %vm992_vm5 = vcmask 130048  }
 0x23c   : > { %v593_v31 = vsel %vm590_vm6, %v592_v29, %v588_v30  ;;  %vm994_vm6 = vcmask 195584  }
 0x23d   : > { %v1632_v32 = vmul.f32 %v1332_v15, %v593_v31 }
 0x23e   : > { %v674_v33 = vpop.permute.xlu0 %673 }
 0x23f   : > { %1227 = vmatmul.msk.f32.vlgmr.msrb.gmra.mxu3 %vm570_vm2, %v1632_v32 }
 0x240   : > { %694 = vmatpush.msrb.mxu3 %v674_v33 }
 0x247   : > { %1229 = vmatmul.msk.f32.vlgmr.msra.gmra.mxu3 %vm540_vm0, %v619_v3 }
 0x248   : > { %1231 = vmatpush.xpose.msk.msra.mxu3 %vm540_vm0, %v702_v4 }
 0x24d   : > { %v834_v35 = vpop.permute.xlu1 %833 }
 0x24e   : > { %854 = vmatpush.msrb.mxu1 %v834_v35 }
 0x2c2   : > { %v1638_v36 = vpop.f32.mrf.mxu3 }
 0x2ca   : > { %v643_v37 = vpop.f32.mrf.mxu3 }
 0x2cb   : > { %v646_v38 = vmul.f32 0.17677669, %v643_v37 }
 0x2cd   : > { %v647_v39 = vsel %vm568_vm1, -1e+09, %v646_v38 }
 0x2ce   : > { %v648_v40 = vsel %vm570_vm2, %v647_v39, -inf }
 0x2cf   : > { %649 = vmax.xlane.f32.xlu2 %v648_v40  ;;  %v1301_v40 = vld [vmem:[#allocation2 + $0x30] sm:$0xff] }
 0x342   : > { %v650_v41 = vpop.xlane.xlu2 %649 }
 0x343   : > { %v651_v42 = vsub.f32 %v647_v39, %v650_v41  ;;  %v1302_v39 = vld [vmem:[#allocation2 + $0x38] sm:$0xff] }
 0x344   : > { %941 = vmatpush.bf16.msrb.mxu2 %v1302_v39 }
 0x345   : > { %v652_v43 = vmul.f32 1.442695, %v651_v42  ;;  %v1300_v42 = vld [vmem:[#allocation2 + $0x28] sm:$0xff] }
 0x347   : > { %1335 = vpow2.f32 %v652_v43  ;;  %v1299_v43 = vld [vmem:[#allocation2 + $0x20] sm:$0xff] }
 0x348   : > { %942 = vmatpush.bf16.msrb.mxu2 %v1301_v40 }
 0x34c   : > { %943 = vmatpush.bf16.msrb.mxu2 %v1300_v42 }
 0x34d   : > { %v1336_v44 = vpop.eup %1335 }
 0x34e   : > { %v654_v45 = vsel %vm570_vm2, %v1336_v44, 0.0 }
 0x34f   : > { %655 = vadd.xlane.f32.xlu2 %v654_v45  ;;  %v1298_v45 = vld [vmem:[#allocation2 + $0x18] sm:$0xff] }
 0x350   : > { %944 = vmatpush.bf16.msrb.mxu2 %v1299_v43 }
 0x354   : > { %945 = vmatpush.bf16.msrb.mxu2 %v1298_v45 }
 0x367   : > { %699 = vrot.lane.b32.xlu2 %v1593_v60, %s1397_s13 }
 0x3c2   : > { %v656_v46 = vpop.xlane.xlu2 %655 }
 0x3c3   : > { %1337 = vrcp.f32 %v656_v46  ;;  %v668_v51 = vand.u32 2147483648, %v656_v46  ;;  %v666_v53 = vand.u32 2147483647, %v656_v46  ;;  %vm662_vm8 = vweird.f32 %v656_v46 }
 0x3c4   : > { %1339 = vpow2.f32 %v813_v62 }
 0x3c5   : > { %v669_v55 = vor.u32 1.1754944e-38, %v668_v51  ;;  %vm667_vm10 = vcmp.eq.f32.partialorder %v666_v53, 8.507059e+37 }
 0x3c9   : > { %v1338_v47 = vpop.eup %1337 }
 0x3ca   : > { %v658_v49 = vmul.f32 %v1338_v47, %v656_v46  ;;  %vm663_vm7 = vweird.f32 %v1338_v47  ;;  %v700_v59 = vpop.permute.xlu2 %699  ;;  %v1340_v4 = vpop.eup %1339 }
 0x3cb   : > { %vm664_vm9 = vmor %vm662_vm8, %vm663_vm7  ;;  %v815_v6 = vsel %vm570_vm2, %v1340_v4, 0.0  ;;  %vm872_vm7 = vcmask 523264   ;;  %vm874_vm8 = vcmask 785408  }
 0x3cc   : > { %v659_v50 = vsub.f32 1.0, %v658_v49 }
 0x3ce   : > { %v660_v52 = vmul.f32 %v1338_v47, %v659_v50  ;;  %v1296_v50 = vld [vmem:[#allocation2 + $0x8] sm:$0xff] }
 0x3d0   : > { %v661_v54 = vadd.f32 %v1338_v47, %v660_v52 }
 0x3d2   : > { %v665_v56 = vsel %vm664_vm9, %v1338_v47, %v661_v54  ;;  %v1297_v47 = vld [vmem:[#allocation2 + $0x10] sm:$0xff] }
 0x3d3   : > { %v670_v57 = vsel %vm667_vm10, %v669_v55, %v665_v56  ;;  %946 = vmatpush.bf16.msrb.mxu2 %v1297_v47  ;;  %v1295_v55 = vld [vmem:[#allocation2] sm:$0xff] }
 0x3d4   : > { %v1646_v58 = vmul.f32 %v1336_v44, %v670_v57 }
 0x3d6   : > { %1230 = vmatmul.msk.f32.vlgmr.msrb.gmra.mxu3 %vm570_vm2, %v1646_v58 }
 0x3d7   : > { %947 = vmatpush.bf16.msrb.mxu2 %v1296_v50 }
 0x3db   : > { %948 = vmatpush.bf16.msrb.mxu2 %v1295_v55 }
 0x3de   : > { %1232 = vmatmul.msk.f32.vlgmr.msra.gmra.mxu3 %vm540_vm0, %v700_v59 }
 0x459   : > { %v696_v60 = vpop.f32.mrf.mxu3 }
 0x461   : > { %v724_v63 = vpop.f32.mrf.mxu3 }
 0x462   : > { %v727_v1 = vmul.f32 0.17677669, %v724_v63  ;;  %v1402_v63 = vmov 128.0  }
 0x464   : > { %v728_v2 = vsel %vm568_vm1, -1e+09, %v727_v1 }
 0x465   : > { %v729_v3 = vsel %vm570_vm2, %v728_v2, -inf }
 0x466   : > { %730 = vmax.xlane.f32.xlu0 %v729_v3 }
 0x46e   : > { %816 = vadd.xlane.f32.xlu0 %v815_v6 }
 0x482   : > { %860 = vrot.lane.b32.xlu0 %v696_v60, %s1398_s14 }
 0x4d9   : > { %v731_v7 = vpop.xlane.xlu0 %730 }
 0x4da   : > { %v732_v8 = vsub.f32 %v728_v2, %v731_v7 }
 0x4dc   : > { %v733_v9 = vmul.f32 1.442695, %v732_v8 }
 0x4de   : > { %1341 = vpow2.f32 %v733_v9 }
 0x4e1   : > { %v817_v10 = vpop.xlane.xlu0 %816 }
 0x4e2   : > { %1343 = vrcp.f32 %v817_v10  ;;  %v829_v15 = vand.u32 2147483648, %v817_v10  ;;  %v827_v17 = vand.u32 2147483647, %v817_v10  ;;  %vm823_vm12 = vweird.f32 %v817_v10 }
 0x4e4   : > { %v1342_v11 = vpop.eup %1341  ;;  %v830_v19 = vor.u32 1.1754944e-38, %v829_v15  ;;  %vm828_vm14 = vcmp.eq.f32.partialorder %v827_v17, 8.507059e+37 }
 0x4e5   : > { %v735_v12 = vsel %vm570_vm2, %v1342_v11, 0.0 }
 0x4e6   : > { %736 = vadd.xlane.f32.xlu2 %v735_v12 }
 0x4e8   : > { %v1344_v5 = vpop.eup %1343 }
 0x4e9   : > { %v819_v13 = vmul.f32 %v1344_v5, %v817_v10  ;;  %vm824_vm11 = vweird.f32 %v1344_v5 }
 0x4ea   : > { %vm825_vm13 = vmor %vm823_vm12, %vm824_vm11 }
 0x4eb   : > { %v820_v14 = vsub.f32 1.0, %v819_v13 }
 0x4ed   : > { %v821_v16 = vmul.f32 %v1344_v5, %v820_v14 }
 0x4ef   : > { %v822_v18 = vadd.f32 %v1344_v5, %v821_v16 }
 0x4f1   : > { %v826_v20 = vsel %vm825_vm13, %v1344_v5, %v822_v18 }
 0x4f2   : > { %v831_v21 = vsel %vm828_vm14, %v830_v19, %v826_v20 }
 0x4f3   : > { %v832_v22 = vmul.f32 %v1340_v4, %v831_v21 }
 0x4f4   : > { %v861_v38 = vpop.permute.xlu0 %860 }
 0x4f5   : > { %1236 = vmatmul.msk.f32.vlgmr.msrb.gmra.mxu1 %vm570_vm2, %v832_v22  ;;  %v871_v56 = vsel %vm540_vm0, %v1638_v36, %v861_v38 }
 0x4fe   : > { %753 = vrot.lane.b32.xlu2 %v1601_v0, %s1397_s13 }
 0x559   : > { %v737_v23 = vpop.xlane.xlu2 %736 }
 0x55a   : > { %1345 = vrcp.f32 %v737_v23  ;;  %v749_v28 = vand.u32 2147483648, %v737_v23  ;;  %v747_v30 = vand.u32 2147483647, %v737_v23  ;;  %vm743_vm1 = vweird.f32 %v737_v23 }
 0x55b   : > { %1347 = vrcp.f32 %v1402_v63 }
 0x55c   : > { %v750_v33 = vor.u32 1.1754944e-38, %v749_v28  ;;  %vm748_vm4 = vcmp.eq.f32.partialorder %v747_v30, 8.507059e+37 }
 0x560   : > { %v1346_v24 = vpop.eup %1345 }
 0x561   : > { %v739_v25 = vmul.f32 %v1346_v24, %v737_v23  ;;  %v754_v26 = vpop.permute.xlu2 %753  ;;  %vm744_vm15 = vweird.f32 %v1346_v24  ;;  %v1348_v1 = vpop.eup %1347 }
 0x562   : > { %774 = vmatpush.msrb.mxu3 %v754_v26  ;;  %vm745_vm3 = vmor %vm743_vm1, %vm744_vm15  ;;  %v957_v2 = vmul.f32 128.0, %v1348_v1 }
 0x563   : > { %v740_v27 = vsub.f32 1.0, %v739_v25 }
 0x564   : > { %v958_v3 = vsub.f32 1.0, %v957_v2 }
 0x565   : > { %v741_v29 = vmul.f32 %v1346_v24, %v740_v27 }
 0x566   : > { %v959_v4 = vmul.f32 %v1348_v1, %v958_v3 }
 0x567   : > { %v742_v31 = vadd.f32 %v1346_v24, %v741_v29 }
 0x568   : > { %v960_v6 = vadd.f32 %v1348_v1, %v959_v4 }
 0x569   : > { %v746_v34 = vsel %vm745_vm3, %v1346_v24, %v742_v31 }
 0x56a   : > { %v751_v35 = vsel %vm748_vm4, %v750_v33, %v746_v34 }
 0x56b   : > { %v752_v37 = vmul.f32 %v1342_v11, %v751_v35 }
 0x56d   : > { %1233 = vmatmul.msk.f32.vlgmr.msrb.gmra.mxu3 %vm570_vm2, %v752_v37 }
 0x572   : > { %v856_v0 = vpop.f32.mrf.mxu1 }
 0x573   : > { %868 = vrot.lane.b32.xlu0 %v856_v0, %s1396_s12 }
 0x57b   : > { %982 = vrot.lane.b32.xlu0 %v1646_v58, %s1399_s18 }
 0x583   : > { %985 = vrot.lane.b32.xlu0 %v752_v37, %s1400_s19 }
 0x58b   : > { %988 = vrot.lane.b32.xlu0 %v832_v22, %s1401_s20 }
 0x5e5   : > { %v869_v41 = vpop.permute.xlu0 %868 }
 0x5ed   : > { %v983_v44 = vpop.permute.xlu0 %982 }
 0x5ee   : > { %v991_v51 = vsel %vm570_vm2, %v1632_v32, %v983_v44  ;;  %vm961_vm2 = vweird.f32 %v1348_v1 }
 0x5ef   : > { %v962_v7 = vsel %vm961_vm2, %v1348_v1, %v960_v6 }
 0x5f0   : > { %v776_v46 = vpop.f32.mrf.mxu3 }
 0x5f1   : > { %864 = vrot.lane.b32.xlu2 %v776_v46, %s1397_s13 }
 0x5f5   : > { %v986_v49 = vpop.permute.xlu0 %985 }
 0x5f6   : > { %v993_v52 = vsel %vm992_vm5, %v991_v51, %v986_v49 }
 0x5fd   : > { %v989_v53 = vpop.permute.xlu0 %988 }
 0x5fe   : > { %v995_v54 = vsel %vm994_vm6, %v993_v52, %v989_v53 }
 0x5ff   : > { %996 = vst.msk [vmem:[%s335_s23] sm:$0xff] %vm540_vm0, %v995_v54 }
 0x64b   : > { %v865_v57 = vpop.permute.xlu2 %864 }
 0x64c   : > { %v873_v58 = vsel %vm872_vm7, %v871_v56, %v865_v57 }
 0x64d   : > { %v875_v59 = vsel %vm874_vm8, %v873_v58, %v869_v41 }
 0x64e   : > { %v876_v32 = vpack.c.bf16 %v875_v59, %v875_v59 }
 0x650   : > { %949 = vmatmul.bf16.vlgmr.msrb.gmra.mxu2 %v876_v32 }
 0x6d3   : > { %v950_v60 = vpop.f32.mrf.mxu2 }
 0x6d4   : > { %v951_v61 = vadd.f32 %v950_v60, %v1577_v48 }
 0x6d6   : > { %954 = vadd.xlane.f32.xlu1 %v951_v61 }
 0x6db   : > { %v952_v62 = vpop.f32.mrf.mxu2 }
 0x749   : > { %v955_v36 = vpop.xlane.xlu1 %954 }
 0x74a   : > { %v963_v8 = vmul.f32 %v962_v7, %v955_v36 }
 0x74c   : > { %v964_v9 = vsub.f32 %v951_v61, %v963_v8 }
 0x74e   : > { %v965_v10 = vmul.f32 %v964_v9, %v964_v9 }
 0x750   : > { %966 = vadd.xlane.f32.xlu2 %v965_v10 }
 0x7c3   : > { %v967_v11 = vpop.xlane.xlu2 %966 }
 0x7c4   : > { %v968_v12 = vmul.f32 %v967_v11, %v962_v7 }
 0x7c6   : > { %v969_v48 = vadd.f32 1e-05, %v968_v12 }
 0x7c8   : > { %1349 = vrsqrt.f32 %v969_v48  ;;  %vm976_vm9 = vweird.f32 %v969_v48 }
 0x7ce   : > { %v1350_v5 = vpop.eup %1349 }
 0x7cf   : > { %v971_v13 = vmul.f32 %v1350_v5, %v969_v48  ;;  %vm977_vm0 = vweird.f32 %v1350_v5 }
 0x7d0   : > { %vm978_vm10 = vmor %vm976_vm9, %vm977_vm0 }
 0x7d1   : > { %v972_v14 = vmul.f32 %v1350_v5, %v971_v13 }
 0x7d3   : > { %v973_v15 = vmul.f32 0.5, %v972_v14 }
 0x7d5   : > { %v974_v16 = vsub.f32 1.5, %v973_v15 }
 0x7d7   : > { %v975_v17 = vmul.f32 %v1350_v5, %v974_v16 }
 0x7d9   : > { %v979_v18 = vsel %vm978_vm10, %v1350_v5, %v975_v17 }
 0x7da   : > { %v980_v19 = vmul.f32 %v979_v18, %v964_v9 }
 0x7dc   : > { %981 = vst [vmem:[%s331_s29] sm:$0xff] %v980_v19 }
 0x7dd PF: > { %s19_s24 = sadd.s32 1, %s1391_s24  }
 0x7de   : > { %p16_p7 = scmp.ge.s32.totalorder %s19_s24, 4  }
 0x7e0   :  { %18 = sbr.rel (!%p16_p7) target bundleno = 1 (0x1), region = 97 }
 0x7e5   :  { %1030 = vsyncpa [#allocation3], 1 }
 0x7e6   :  { %1032 = vsyncpa [#allocation3 + $0x1], 1 }

// kernel: _transformer_forward.17
= control target key start
LH: loop header
LB: loop body
LE: loop exit
PB: predicated region body
PF: predicated region fallthrough
CT: control target
= control target key end

     0   :  { %8 = vsyncpa [#allocation3], 0  ;;  %s952_s0 = inlined_call_operand.vmem [shape: f32[2,8,128], index: 0, kind: input, shape index: {}]   ;;  %s953_s1 = inlined_call_operand.hbm [shape: bf16[128,256], index: 1, kind: input, shape index: {}]   ;;  %s954_s2 = inlined_call_operand.hbm [shape: bf16[256,128], index: 2, kind: input, shape index: {}]   ;;  %s955_s3 = inlined_call_operand.vmem [shape: f32[2,8,128], index: 3, kind: output, shape index: {}]  }
   0x1   :  { %9 = vsyncpa [#allocation5], 0  ;;  %s899_s12 = smov 0  }
   0x2 LB: > { %s125_s15 = sshll.u32 %s953_s1, 4  ;;  %s908_s16 = sadd.s32 4294967295, %s870_s12   ;;  %s870_s12 = sphi %s899_s12, %s15_s12   ;;  %s126_s15 = int_to_ptr.hbm [resolvable:$true] %s125_s15 }
   0x3   : > { %p587_p0 = scmp.ge.s32.totalorder %s870_s12, 1  ;;  %p114_p1 = scmp.lt.s32.totalorder %s870_s12, 3 }
   0x4   : > { %p773_p2 = scmp.eq.s32.totalorder %s908_s16, 0  ;;  %s872_s18 = smov [#allocation2]  }
   0x5   : > { %p913_p3 = pnand %p587_p0, %p114_p1  ;;  %s127_s19 = sshll.u32 %s872_s18, 4  ;;  %s128_s19 = int_to_ptr.vmem [resolvable:$true] %s127_s19 }
   0x6   : > { %s139_s22 = sshll.u32 %s954_s2, 4  ;;  %s873_s23 = smov [#allocation4]   ;;  %s140_s22 = int_to_ptr.hbm [resolvable:$true] %s139_s22 }
   0x7   : > { %p766_p4 = pneg %p913_p3  ;;  %s141_s24 = sshll.u32 %s873_s23, 4  ;;  %s142_s24 = int_to_ptr.vmem [resolvable:$true] %s141_s24 }
   0x8   : > { %s874_s25 = smov 128   ;;  %s875_s26 = smov 8  }
   0x9   : > { %p767_p5 = pnand %p773_p2, %p766_p4  ;;  %s876_s27 = smov 64  }
   0xa   : > { %s877_s28 = smov 4   ;;  %164 = sbr.rel (%p913_p3) target bundleno = 581 (0x245), region = 32 }
   0xb   : > { %769 = dma.hbm_to_vmem [thread:$0]  (!%p767_p5), %s126_s15, 2048, %s128_s19, [#allocation3], %s874_s25, %s874_s25, %s875_s26  }
   0xc   : > { %772 = dma.hbm_to_vmem [thread:$0]  (!%p767_p5), %s140_s22, 2048, %s142_s24, [#allocation5], %s876_s27, %s876_s27, %s877_s28  }
   0xf   : > { %861 = dma.done.wait (%p773_p2), [#allocation3], 2048  }
  0x10   : > { %863 = vsyncadd (%p773_p2), [#allocation3], 4294965248 }
  0x11   : > { %865 = dma.done.wait (%p773_p2), [#allocation5], 2048  }
  0x12   : > { %867 = vsyncadd (%p773_p2), [#allocation5], 4294965248  ;;  %v654_v0 = vld [vmem:[#allocation2 + $0x70] sm:$0xf]  ;;  %v741_v1 = vld [vmem:[#allocation2 + $0x74] sm:$0xf0] }
  0x13   : > { %v740_v2 = vld [vmem:[#allocation2 + $0x74] sm:$0xf]  ;;  %v655_v3 = vor.u32 %v741_v1, %v654_v0  ;;  %v656_v4 = vld [vmem:[#allocation2 + $0x78] sm:$0xf0]  ;;  %v646_v5 = vld [vmem:[#allocation2 + $0x60] sm:$0xf] }
  0x14   : > { %v739_v6 = vld [vmem:[#allocation2 + $0x64] sm:$0xf0]  ;;  %v659_v7 = vor.u32 %v740_v2, %v656_v4  ;;  %v738_v8 = vld [vmem:[#allocation2 + $0x64] sm:$0xf]  ;;  %v648_v9 = vld [vmem:[#allocation2 + $0x68] sm:$0xf0] }
  0x15   : > { %298 = vmatpush.bf16.msra.mxu0 %v655_v3  ;;  %v647_v10 = vor.u32 %v739_v6, %v646_v5  ;;  %v651_v11 = vor.u32 %v738_v8, %v648_v9  ;;  %v638_v12 = vld [vmem:[#allocation2 + $0x50] sm:$0xf]  ;;  %v737_v13 = vld [vmem:[#allocation2 + $0x54] sm:$0xf0]  ;;  %v736_v14 = vld [vmem:[#allocation2 + $0x54] sm:$0xf] }
  0x16   : > { %311 = vmatpush.bf16.msra.mxu1 %v659_v7  ;;  %v640_v15 = vld [vmem:[#allocation2 + $0x58] sm:$0xf0]  ;;  %v639_v16 = vor.u32 %v737_v13, %v638_v12  ;;  %v630_v18 = vld [vmem:[#allocation2 + $0x40] sm:$0xf]  ;;  %v735_v19 = vld [vmem:[#allocation2 + $0x44] sm:$0xf0] }
  0x17   : > { %v643_v17 = vor.u32 %v736_v14, %v640_v15  ;;  %v734_v20 = vld [vmem:[#allocation2 + $0x44] sm:$0xf]  ;;  %v632_v21 = vld [vmem:[#allocation2 + $0x48] sm:$0xf0]  ;;  %v631_v22 = vor.u32 %v735_v19, %v630_v18  ;;  %v749_v23 = vld [vmem:[#allocation4 + $0x38] sm:$0xff]  ;;  %p192_p6 = scmp.lt.s32.totalorder %s908_s16, 1 }
  0x18   : > { %v757_v24 = vld [vmem:[#allocation4 + $0x78] sm:$0xff]  ;;  %v635_v25 = vor.u32 %v734_v20, %v632_v21  ;;  %v622_v26 = vld [vmem:[#allocation2 + $0x30] sm:$0xf]  ;;  %v732_v28 = vld [vmem:[#allocation2 + $0x34] sm:$0xf]  ;;  %456 = vmatpush.bf16.msra.mxu2 %v749_v23 }
  0x19   : > { %299 = vmatpush.bf16.msra.mxu0 %v647_v10  ;;  %v733_v27 = vld [vmem:[#allocation2 + $0x34] sm:$0xf0]  ;;  %v624_v29 = vld [vmem:[#allocation2 + $0x38] sm:$0xf0]  ;;  %469 = vmatpush.bf16.msra.mxu3 %v757_v24  ;;  %v748_v30 = vld [vmem:[#allocation4 + $0x30] sm:$0xff]  ;;  %s958_s16 = smov (!%p192_p6, %s908_s16), 1 }
  0x1a   : > { %312 = vmatpush.bf16.msra.mxu1 %v651_v11  ;;  %v756_v31 = vld [vmem:[#allocation4 + $0x70] sm:$0xff]  ;;  %v623_v32 = vor.u32 %v733_v27, %v622_v26  ;;  %v627_v33 = vor.u32 %v732_v28, %v624_v29  ;;  %v614_v34 = vld [vmem:[#allocation2 + $0x20] sm:$0xf]  ;;  %v731_v35 = vld [vmem:[#allocation2 + $0x24] sm:$0xf0]  ;;  %s594_s29 = sshll.u32 %s958_s16, 3 }
  0x1b   : > { %v730_v36 = vld [vmem:[#allocation2 + $0x24] sm:$0xf]  ;;  %v616_v37 = vld [vmem:[#allocation2 + $0x28] sm:$0xf0]  ;;  %v615_v40 = vor.u32 %v731_v35, %v614_v34  ;;  %v606_v42 = vld [vmem:[#allocation2 + $0x10] sm:$0xf]  ;;  %s195_s5 = scalar_lea.vmem %s952_s0, %s594_s29  ;;  %s199_s8 = scalar_lea.vmem %s955_s3, %s594_s29 }
  0x1c   : > { %457 = vmatpush.bf16.msra.mxu2 %v748_v30  ;;  %v747_v38 = vld [vmem:[#allocation4 + $0x28] sm:$0xff]  ;;  %v619_v41 = vor.u32 %v730_v36, %v616_v37  ;;  %v729_v43 = vld [vmem:[#allocation2 + $0x14] sm:$0xf0]  ;;  %v728_v44 = vld [vmem:[#allocation2 + $0x14] sm:$0xf] }
  0x1d   : > { %300 = vmatpush.bf16.msra.mxu0 %v639_v16  ;;  %470 = vmatpush.bf16.msra.mxu3 %v756_v31  ;;  %v755_v39 = vld [vmem:[#allocation4 + $0x68] sm:$0xff]  ;;  %v608_v45 = vld [vmem:[#allocation2 + $0x18] sm:$0xf0]  ;;  %v746_v46 = vld [vmem:[#allocation4 + $0x20] sm:$0xff]  ;;  %v607_v48 = vor.u32 %v729_v43, %v606_v42  ;;  %v878_v16 = vmov 128.0  }
  0x1e   : > { %313 = vmatpush.bf16.msra.mxu1 %v643_v17  ;;  %v754_v47 = vld [vmem:[#allocation4 + $0x60] sm:$0xff]  ;;  %v611_v49 = vor.u32 %v728_v44, %v608_v45  ;;  %v727_v51 = vld [vmem:[#allocation2 + $0x4] sm:$0xf0]  ;;  %v600_v53 = vld [vmem:[#allocation2 + $0x8] sm:$0xf0]  ;;  %792 = vrcp.f32 %v878_v16 }
  0x1f   : > { %v598_v50 = vld [vmem:[#allocation2] sm:$0xf]  ;;  %v726_v52 = vld [vmem:[#allocation2 + $0x4] sm:$0xf]  ;;  %v745_v54 = vld [vmem:[#allocation4 + $0x18] sm:$0xff] }
  0x20   : > { %458 = vmatpush.bf16.msra.mxu2 %v747_v38  ;;  %v753_v55 = vld [vmem:[#allocation4 + $0x58] sm:$0xff]  ;;  %v599_v56 = vor.u32 %v727_v51, %v598_v50  ;;  %v200_v57 = vld [vmem:[%s195_s5] sm:$0xff]  ;;  %v603_v58 = vor.u32 %v726_v52, %v600_v53  ;;  %v744_v59 = vld [vmem:[#allocation4 + $0x10] sm:$0xff] }
  0x21   : > { %301 = vmatpush.bf16.msra.mxu0 %v631_v22  ;;  %471 = vmatpush.bf16.msra.mxu3 %v755_v39  ;;  %v752_v60 = vld [vmem:[#allocation4 + $0x50] sm:$0xff]  ;;  %v201_v61 = vpack.c.bf16 %v200_v57, %v200_v57  ;;  %v743_v62 = vld [vmem:[#allocation4 + $0x8] sm:$0xff]  ;;  %v742_v0 = vld [vmem:[#allocation4] sm:$0xff] }
  0x22   : > { %314 = vmatpush.bf16.msra.mxu1 %v635_v25  ;;  %v751_v63 = vld [vmem:[#allocation4 + $0x48] sm:$0xff]  ;;  %v750_v1 = vld [vmem:[#allocation4 + $0x40] sm:$0xff] }
  0x24   : > { %459 = vmatpush.bf16.msra.mxu2 %v746_v46  ;;  %v793_v17 = vpop.eup %792 }
  0x25   : > { %302 = vmatpush.bf16.msra.mxu0 %v623_v32  ;;  %472 = vmatpush.bf16.msra.mxu3 %v754_v47  ;;  %v485_v18 = vmul.f32 128.0, %v793_v17  ;;  %vm489_vm0 = vweird.f32 %v793_v17 }
  0x26   : > { %315 = vmatpush.bf16.msra.mxu1 %v627_v33 }
  0x27   : > { %v486_v19 = vsub.f32 1.0, %v485_v18 }
  0x28   : > { %460 = vmatpush.bf16.msra.mxu2 %v745_v54 }
  0x29   : > { %303 = vmatpush.bf16.msra.mxu0 %v615_v40  ;;  %473 = vmatpush.bf16.msra.mxu3 %v753_v55  ;;  %v487_v20 = vmul.f32 %v793_v17, %v486_v19 }
  0x2a   : > { %316 = vmatpush.bf16.msra.mxu1 %v619_v41 }
  0x2b   : > { %v488_v21 = vadd.f32 %v793_v17, %v487_v20 }
  0x2c   : > { %461 = vmatpush.bf16.msra.mxu2 %v744_v59 }
  0x2d   : > { %304 = vmatpush.bf16.msra.mxu0 %v607_v48  ;;  %474 = vmatpush.bf16.msra.mxu3 %v752_v60  ;;  %v490_v22 = vsel %vm489_vm0, %v793_v17, %v488_v21 }
  0x2e   : > { %317 = vmatpush.bf16.msra.mxu1 %v611_v49 }
  0x30   : > { %462 = vmatpush.bf16.msra.mxu2 %v743_v62 }
  0x31   : > { %305 = vmatpush.bf16.msra.mxu0 %v599_v56  ;;  %475 = vmatpush.bf16.msra.mxu3 %v751_v63 }
  0x32   : > { %318 = vmatpush.bf16.msra.mxu1 %v603_v58 }
  0x34   : > { %306 = vmatmul.bf16.vlgmr.msra.gmra.mxu0 %v201_v61  ;;  %463 = vmatpush.bf16.msra.mxu2 %v742_v0 }
  0x35   : > { %319 = vmatmul.bf16.vlgmr.msra.gmra.mxu1 %v201_v61  ;;  %476 = vmatpush.bf16.msra.mxu3 %v750_v1 }
  0xb1   : > { %v307_v2 = vpop.f32.mrf.mxu0 }
  0xb2   : > { %v324_v3 = vmax.f32 %v307_v2, 0.0  ;;  %v320_v4 = vpop.f32.mrf.mxu1 }
  0xb3   : > { %v325_v5 = vmax.f32 %v320_v4, 0.0 }
  0xb4   : > { %v326_v6 = vpack.c.bf16 %v324_v3, %v324_v3 }
  0xb5   : > { %v327_v7 = vpack.c.bf16 %v325_v5, %v325_v5 }
  0xb6   : > { %464 = vmatmul.bf16.vlgmr.msra.gmra.mxu2 %v326_v6 }
  0xb7   : > { %477 = vmatmul.bf16.vlgmr.msra.gmra.mxu3 %v327_v7 }
  0xb9   : > { %v309_v8 = vpop.f32.mrf.mxu0 }
  0xba   : > { %v322_v9 = vpop.f32.mrf.mxu1 }
 0x139   : > { %v465_v10 = vpop.f32.mrf.mxu2 }
 0x13a   : > { %v466_v11 = vadd.f32 %v465_v10, %v200_v57  ;;  %v478_v12 = vpop.f32.mrf.mxu3 }
 0x13c   : > { %v479_v13 = vadd.f32 %v478_v12, %v466_v11 }
 0x13e   : > { %482 = vadd.xlane.f32.xlu0 %v479_v13 }
 0x141   : > { %v467_v14 = vpop.f32.mrf.mxu2 }
 0x142   : > { %v480_v15 = vpop.f32.mrf.mxu3 }
 0x1b1   : > { %v483_v23 = vpop.xlane.xlu0 %482 }
 0x1b2   : > { %v491_v24 = vmul.f32 %v490_v22, %v483_v23 }
 0x1b4   : > { %v492_v25 = vsub.f32 %v479_v13, %v491_v24 }
 0x1b6   : > { %v493_v26 = vmul.f32 %v492_v25, %v492_v25 }
 0x1b8   : > { %494 = vadd.xlane.f32.xlu0 %v493_v26 }
 0x22b   : > { %v495_v27 = vpop.xlane.xlu0 %494 }
 0x22c   : > { %v496_v28 = vmul.f32 %v495_v27, %v490_v22 }
 0x22e   : > { %v497_v29 = vadd.f32 1e-05, %v496_v28 }
 0x230   : > { %794 = vrsqrt.f32 %v497_v29  ;;  %vm504_vm2 = vweird.f32 %v497_v29 }
 0x236   : > { %v795_v30 = vpop.eup %794 }
 0x237   : > { %v499_v31 = vmul.f32 %v795_v30, %v497_v29  ;;  %vm505_vm1 = vweird.f32 %v795_v30 }
 0x238   : > { %vm506_vm3 = vmor %vm504_vm2, %vm505_vm1 }
 0x239   : > { %v500_v32 = vmul.f32 %v795_v30, %v499_v31 }
 0x23b   : > { %v501_v33 = vmul.f32 0.5, %v500_v32 }
 0x23d   : > { %v502_v34 = vsub.f32 1.5, %v501_v33 }
 0x23f   : > { %v503_v35 = vmul.f32 %v795_v30, %v502_v34 }
 0x241   : > { %v507_v36 = vsel %vm506_vm3, %v795_v30, %v503_v35 }
 0x242   : > { %v508_v37 = vmul.f32 %v507_v36, %v492_v25 }
 0x244   : > { %509 = vst [vmem:[%s199_s8] sm:$0xff] %v508_v37 }
 0x245 PF: > { %s15_s12 = sadd.s32 1, %s870_s12  }
 0x246   : > { %p12_p7 = scmp.ge.s32.totalorder %s15_s12, 4  }
 0x248   :  { %14 = sbr.rel (!%p12_p7) target bundleno = 2 (0x2), region = 71 }
 0x24d   :  { %529 = vsyncpa [#allocation3], 1 }
 0x24e   :  { %531 = vsyncpa [#allocation3 + $0x1], 1 }
 0x24f   :  { %532 = vsyncpa [#allocation5], 1 }

// kernel: _transformer_forward.21
= control target key start
LH: loop header
LB: loop body
LE: loop exit
PB: predicated region body
PF: predicated region fallthrough
CT: control target
= control target key end

     0   :  { %7 = vsyncpa [#allocation3], 0  ;;  %s261_s0 = inlined_call_operand.vmem [shape: f32[16,128], index: 0, kind: input, shape index: {}]   ;;  %s262_s1 = inlined_call_operand.hbm [shape: bf16[128,128], index: 1, kind: input, shape index: {}]   ;;  %s263_s2 = inlined_call_operand.hbm [shape: f32[16,128], index: 2, kind: output, shape index: {}]  }
   0x1   :  { %8 = vsyncpa [#allocation4], 0  ;;  %s15_s11 = sshll.u32 %s262_s1, 4  ;;  %s228_s12 = smov [#allocation2]   ;;  %s16_s11 = int_to_ptr.hbm [resolvable:$true] %s15_s11 }
   0x2   :  { %s17_s13 = sshll.u32 %s228_s12, 4  ;;  %s229_s14 = smov 64   ;;  %s18_s13 = int_to_ptr.vmem [resolvable:$true] %s17_s13 }
   0x3   :  { %s230_s15 = smov 4  }
   0x4   :  { %23 = dma.hbm_to_vmem [thread:$0]  %s16_s11, 1024, %s18_s13, [#allocation3], %s229_s14, %s229_s14, %s230_s15  }
   0x5   :  { %224 = dma.done.wait [#allocation3], 1024  }
   0x6   :  { %225 = vsyncadd [#allocation3], 4294966272  ;;  %v169_v0 = vld [vmem:[#allocation2 + $0x38] sm:$0xff]  ;;  %v168_v1 = vld [vmem:[#allocation2 + $0x30] sm:$0xff]  ;;  %s231_s19 = smov [#allocation5]   ;;  %s117_s23 = sshll.u32 %s263_s2, 4  ;;  %s118_s23 = int_to_ptr.hbm [resolvable:$true] %s117_s23 }
   0x7   :  { %95 = vmatpush.bf16.msra.mxu0 %v169_v0  ;;  %v167_v2 = vld [vmem:[#allocation2 + $0x28] sm:$0xff]  ;;  %v166_v3 = vld [vmem:[#allocation2 + $0x20] sm:$0xff]  ;;  %v165_v4 = vld [vmem:[#allocation2 + $0x18] sm:$0xff]  ;;  %s115_s20 = sshll.u32 %s231_s19, 4  ;;  %s232_s24 = smov 128   ;;  %s116_s20 = int_to_ptr.vmem [resolvable:$true] %s115_s20 }
   0x8   :  { %v164_v5 = vld [vmem:[#allocation2 + $0x10] sm:$0xff]  ;;  %v163_v6 = vld [vmem:[#allocation2 + $0x8] sm:$0xff]  ;;  %v162_v7 = vld [vmem:[#allocation2] sm:$0xff]  ;;  %s233_s25 = smov 8  }
   0x9   :  { %v28_v8 = vld [vmem:[%s261_s0] sm:$0xff]  ;;  %v29_v9 = vld [vmem:[%s261_s0 + $0x8] sm:$0xff] }
   0xa   :  { %v30_v10 = vpack.c.bf16 %v29_v9, %v28_v8 }
   0xb   :  { %96 = vmatpush.bf16.msra.mxu0 %v168_v1 }
   0xf   :  { %97 = vmatpush.bf16.msra.mxu0 %v167_v2 }
  0x13   :  { %98 = vmatpush.bf16.msra.mxu0 %v166_v3 }
  0x17   :  { %99 = vmatpush.bf16.msra.mxu0 %v165_v4 }
  0x1b   :  { %100 = vmatpush.bf16.msra.mxu0 %v164_v5 }
  0x1f   :  { %101 = vmatpush.bf16.msra.mxu0 %v163_v6 }
  0x23   :  { %102 = vmatpush.bf16.msra.mxu0 %v162_v7 }
  0x26   :  { %103 = vmatmul.bf16.vlgmr.msra.gmra.mxu0 %v30_v10 }
  0xa3   :  { %v104_v11 = vpop.f32.mrf.mxu0 }
  0xa4   :  { %109 = vst [vmem:[#allocation5] sm:$0xff] %v104_v11 }
  0xab   :  { %v106_v12 = vpop.f32.mrf.mxu0 }
  0xac   :  { %110 = vst [vmem:[#allocation5 + $0x8] sm:$0xff] %v106_v12 }
  0xad   :  { %123 = dma.vmem_to_hbm [thread:$0]  %s116_s20, 256, %s118_s23, [#allocation4], %s232_s24, %s232_s24, %s233_s25  }
  0xae   :  { %226 = dma.done.wait [#allocation4], 256  }
  0xaf   :  { %227 = vsyncadd [#allocation4], 4294967040 }
  0xb0   :  { %128 = vsyncpa [#allocation3], 1 }
  0xb1   :  { %129 = vsyncpa [#allocation4], 1 }

// kernel: _transformer_forward.13
= control target key start
LH: loop header
LB: loop body
LE: loop exit
PB: predicated region body
PF: predicated region fallthrough
CT: control target
= control target key end

     0   :  { %13 = vsyncpa [#allocation3], 0  ;;  %s1753_s0 = inlined_call_operand.vmem [shape: f32[2,8,128], index: 0, kind: input, shape index: {}, may-alias: {0,1}]   ;;  %s1754_s1 = inlined_call_operand.vmem [shape: f32[2,8,128], index: 1, kind: input, shape index: {}, may-alias: {0,1}]   ;;  %s1755_s2 = inlined_call_operand.vmem [shape: f32[2,8,8], index: 2, kind: input, shape index: {}]   ;;  %s1756_s3 = inlined_call_operand.hbm [shape: bf16[128,128], index: 3, kind: input, shape index: {}]   ;;  %s1757_s4 = inlined_call_operand.vmem [shape: bf16[128,256], index: 4, kind: input, shape index: {}]   ;;  %s1758_s5 = inlined_call_operand.hbm [shape: bf16[128,128], index: 5, kind: input, shape index: {}]   ;;  %s1759_s6 = inlined_call_operand.vmem [shape: f32[2,8,128], index: 6, kind: output, shape index: {0}]   ;;  %s1760_s7 = inlined_call_operand.vmem [shape: f32[2,8,32], index: 7, kind: output, shape index: {1}]  }
   0x1   :  { %14 = vsyncpa [#allocation5], 0  ;;  %s1517_s24 = smov 0  }
   0x2 LB: > { %s229_s27 = sshll.u32 %s1756_s3, 4  ;;  %s1526_s28 = sadd.s32 4294967295, %s1464_s24   ;;  %s1464_s24 = sphi %s1517_s24, %s20_s24   ;;  %s230_s27 = int_to_ptr.hbm [resolvable:$true] %s229_s27 }
   0x3   : > { %p1146_p0 = scmp.ge.s32.totalorder %s1464_s24, 1  ;;  %p218_p1 = scmp.lt.s32.totalorder %s1464_s24, 3 }
   0x4   : > { %p1347_p2 = scmp.eq.s32.totalorder %s1526_s28, 0  ;;  %s1466_s30 = smov [#allocation2]  }
   0x5   : > { %p1531_p3 = pnand %p1146_p0, %p218_p1  ;;  %s231_s8 = sshll.u32 %s1466_s30, 4  ;;  %s232_s8 = int_to_ptr.vmem [resolvable:$true] %s231_s8 }
   0x6   : > { %s246_s11 = sshll.u32 %s1758_s5, 4  ;;  %s1467_s12 = smov [#allocation4]   ;;  %s247_s11 = int_to_ptr.hbm [resolvable:$true] %s246_s11 }
   0x7   : > { %p1340_p4 = pneg %p1531_p3  ;;  %s248_s13 = sshll.u32 %s1467_s12, 4  ;;  %s249_s13 = int_to_ptr.vmem [resolvable:$true] %s248_s13 }
   0x8   : > { %s1468_s14 = smov 64   ;;  %s1469_s15 = smov 4  }
   0x9   : > { %p1341_p5 = pnand %p1347_p2, %p1340_p4  ;;  %285 = sbr.rel (%p1531_p3) target bundleno = 2018 (0x7e2), region = 44 }
   0xb   : > { %1343 = dma.hbm_to_vmem [thread:$0]  (!%p1341_p5), %s230_s27, 1024, %s232_s8, [#allocation3], %s1468_s14, %s1468_s14, %s1469_s15  }
   0xc   : > { %1346 = dma.hbm_to_vmem [thread:$0]  (!%p1341_p5), %s247_s11, 1024, %s249_s13, [#allocation5], %s1468_s14, %s1468_s14, %s1469_s15  }
   0xe   : > { %1455 = dma.done.wait (%p1347_p2), [#allocation3], 1024  }
   0xf   : > { %1457 = vsyncadd (%p1347_p2), [#allocation3], 4294966272 }
  0x10   : > { %1459 = dma.done.wait (%p1347_p2), [#allocation5], 1024  }
  0x11   : > { %1461 = vsyncadd (%p1347_p2), [#allocation5], 4294966272  ;;  %v1307_v0 = vld [vmem:[#allocation2 + $0x38] sm:$0xff]  ;;  %v1248_v1 = vld [vmem:[%s1757_s4 + $0x70] sm:$0xf]  ;;  %p333_p6 = scmp.lt.s32.totalorder %s1526_s28, 1 }
  0x12   : > { %v1323_v2 = vld [vmem:[%s1757_s4 + $0x74] sm:$0xf0]  ;;  %v1240_v4 = vld [vmem:[%s1757_s4 + $0x60] sm:$0xf]  ;;  %v1321_v5 = vld [vmem:[%s1757_s4 + $0x64] sm:$0xf0]  ;;  %421 = vmatpush.bf16.msra.mxu0 %v1307_v0 }
  0x13   : > { %v1249_v3 = vor.u32 %v1323_v2, %v1248_v1  ;;  %v1306_v6 = vld [vmem:[#allocation2 + $0x30] sm:$0xff]  ;;  %v1241_v7 = vor.u32 %v1321_v5, %v1240_v4  ;;  %v1319_v9 = vld [vmem:[%s1757_s4 + $0x54] sm:$0xf0]  ;;  %v1305_v10 = vld [vmem:[#allocation2 + $0x28] sm:$0xff]  ;;  %s1763_s28 = smov (!%p333_p6, %s1526_s28), 1  ;;  %vm557_vm0 = vcmask 261120  }
  0x14   : > { %v1232_v8 = vld [vmem:[%s1757_s4 + $0x50] sm:$0xf]  ;;  %v1224_v12 = vld [vmem:[%s1757_s4 + $0x40] sm:$0xf]  ;;  %v1317_v13 = vld [vmem:[%s1757_s4 + $0x44] sm:$0xf0] }
  0x15   : > { %531 = vmatpush.bf16.msra.mxu1 %v1249_v3  ;;  %v1233_v11 = vor.u32 %v1319_v9, %v1232_v8  ;;  %v1322_v14 = vld [vmem:[%s1757_s4 + $0x74] sm:$0xf]  ;;  %v1250_v15 = vld [vmem:[%s1757_s4 + $0x78] sm:$0xf0]  ;;  %v1320_v16 = vld [vmem:[%s1757_s4 + $0x64] sm:$0xf]  ;;  %v1225_v20 = vor.u32 %v1317_v13, %v1224_v12 }
  0x16   : > { %422 = vmatpush.bf16.msra.mxu0 %v1306_v6  ;;  %v1242_v17 = vld [vmem:[%s1757_s4 + $0x68] sm:$0xf0]  ;;  %v1304_v18 = vld [vmem:[#allocation2 + $0x20] sm:$0xff]  ;;  %v1253_v19 = vor.u32 %v1322_v14, %v1250_v15  ;;  %v1216_v21 = vld [vmem:[%s1757_s4 + $0x30] sm:$0xf]  ;;  %s1620_s18 = sshll.u32 %s1763_s28, 3 }
  0x17   : > { %v1315_v22 = vld [vmem:[%s1757_s4 + $0x34] sm:$0xf0]  ;;  %v1245_v23 = vor.u32 %v1320_v16, %v1242_v17  ;;  %v1318_v24 = vld [vmem:[%s1757_s4 + $0x54] sm:$0xf]  ;;  %v1234_v25 = vld [vmem:[%s1757_s4 + $0x58] sm:$0xf0]  ;;  %s336_s28 = scalar_lea.vmem %s1753_s0, %s1620_s18  ;;  %s340_s10 = scalar_lea.vmem %s1754_s1, %s1620_s18 }
  0x18   : > { %544 = vmatpush.bf16.msra.mxu2 %v1253_v19  ;;  %v1303_v26 = vld [vmem:[#allocation2 + $0x18] sm:$0xff]  ;;  %v1217_v27 = vor.u32 %v1315_v22, %v1216_v21  ;;  %v1208_v28 = vld [vmem:[%s1757_s4 + $0x20] sm:$0xf]  ;;  %v1313_v29 = vld [vmem:[%s1757_s4 + $0x24] sm:$0xf0]  ;;  %v1237_v30 = vor.u32 %v1318_v24, %v1234_v25  ;;  %s1470_s25 = smov 96   ;;  %s344_s30 = scalar_lea.vmem %s1755_s2, %s1620_s18 }
  0x19   : > { %532 = vmatpush.bf16.msra.mxu1 %v1241_v7  ;;  %v1316_v31 = vld [vmem:[%s1757_s4 + $0x44] sm:$0xf]  ;;  %v1226_v32 = vld [vmem:[%s1757_s4 + $0x48] sm:$0xf0]  ;;  %v1302_v33 = vld [vmem:[#allocation2 + $0x10] sm:$0xff]  ;;  %v1209_v34 = vor.u32 %v1313_v29, %v1208_v28  ;;  %s1472_s26 = smov 32   ;;  %s352_s13 = scalar_lea.vmem %s1760_s7, %s1620_s18 }
  0x1a   : > { %423 = vmatpush.bf16.msra.mxu0 %v1305_v10  ;;  %v1200_v35 = vld [vmem:[%s1757_s4 + $0x10] sm:$0xf]  ;;  %v1311_v36 = vld [vmem:[%s1757_s4 + $0x14] sm:$0xf0]  ;;  %v1229_v37 = vor.u32 %v1316_v31, %v1226_v32  ;;  %v1314_v38 = vld [vmem:[%s1757_s4 + $0x34] sm:$0xf]  ;;  %s348_s16 = scalar_lea.vmem %s1759_s6, %s1620_s18 }
  0x1b   : > { %v1218_v39 = vld [vmem:[%s1757_s4 + $0x38] sm:$0xf0]  ;;  %v1301_v40 = vld [vmem:[#allocation2 + $0x8] sm:$0xff]  ;;  %v1201_v41 = vor.u32 %v1311_v36, %v1200_v35  ;;  %v1192_v42 = vld [vmem:[%s1757_s4] sm:$0xf]  ;;  %vm587_vm2 = vcmask 64512  }
  0x1c   : > { %545 = vmatpush.bf16.msra.mxu2 %v1245_v23  ;;  %v1309_v43 = vld [vmem:[%s1757_s4 + $0x4] sm:$0xf0]  ;;  %v1221_v44 = vor.u32 %v1314_v38, %v1218_v39  ;;  %v1312_v45 = vld [vmem:[%s1757_s4 + $0x24] sm:$0xf]  ;;  %v1210_v46 = vld [vmem:[%s1757_s4 + $0x28] sm:$0xf0] }
  0x1d   : > { %533 = vmatpush.bf16.msra.mxu1 %v1233_v11  ;;  %v1300_v47 = vld [vmem:[#allocation2] sm:$0xff]  ;;  %v1193_v49 = vor.u32 %v1309_v43, %v1192_v42  ;;  %v1213_v51 = vor.u32 %v1312_v45, %v1210_v46  ;;  %v1310_v53 = vld [vmem:[%s1757_s4 + $0x14] sm:$0xf]  ;;  %v1202_v54 = vld [vmem:[%s1757_s4 + $0x18] sm:$0xf0]  ;;  %s1473_s8 = smov 8  }
  0x1e   : > { %424 = vmatpush.bf16.msra.mxu0 %v1304_v18  ;;  %v1648_v48 = vld [vmem:[%s336_s28] sm:$0xff]  ;;  %v1205_v56 = vor.u32 %v1310_v53, %v1202_v54  ;;  %v1194_v58 = vld [vmem:[%s1757_s4 + $0x8] sm:$0xf0]  ;;  %s1471_s28 = smov 64   ;;  %s1474_s9 = smov 16  }
  0x1f   : > { %v354_v50 = vld [vmem:[%s340_s10] sm:$0xff]  ;;  %v356_v52 = vpack.c.bf16 %v1648_v48, %v1648_v48  ;;  %s1475_s10 = smov 24  }
  0x20   : > { %546 = vmatpush.bf16.msra.mxu2 %v1237_v30  ;;  %v434_v55 = vpack.c.bf16 %v354_v50, %v354_v50  ;;  %v1308_v57 = vld [vmem:[%s1757_s4 + $0x4] sm:$0xf] }
  0x21   : > { %534 = vmatpush.bf16.msra.mxu1 %v1225_v20  ;;  %v1197_v59 = vor.u32 %v1308_v57, %v1194_v58  ;;  %v1684_v5 = vld [vmem:[%s344_s30] sm:$0xff] }
  0x22   : > { %425 = vmatpush.bf16.msra.mxu0 %v1303_v26  ;;  %vm585_vm1 = vcmp.gt.f32.partialorder %v1684_v5, 0.0 }
  0x24   : > { %547 = vmatpush.bf16.msra.mxu2 %v1229_v37 }
  0x25   : > { %535 = vmatpush.bf16.msra.mxu1 %v1217_v27 }
  0x26   : > { %426 = vmatpush.bf16.msra.mxu0 %v1302_v33 }
  0x28   : > { %548 = vmatpush.bf16.msra.mxu2 %v1221_v44 }
  0x29   : > { %536 = vmatpush.bf16.msra.mxu1 %v1209_v34 }
  0x2a   : > { %427 = vmatpush.bf16.msra.mxu0 %v1301_v40 }
  0x2c   : > { %549 = vmatpush.bf16.msra.mxu2 %v1213_v51 }
  0x2d   : > { %537 = vmatpush.bf16.msra.mxu1 %v1201_v41 }
  0x2e   : > { %428 = vmatpush.bf16.msra.mxu0 %v1300_v47 }
  0x30   : > { %550 = vmatpush.bf16.msra.mxu2 %v1205_v56 }
  0x31   : > { %538 = vmatpush.bf16.msra.mxu1 %v1193_v49  ;;  %429 = vmatmul.bf16.vlgmr.msra.gmra.mxu0 %v356_v52 }
  0x34   : > { %539 = vmatmul.bf16.vlgmr.msra.gmra.mxu1 %v434_v55  ;;  %551 = vmatpush.bf16.msra.mxu2 %v1197_v59 }
  0x37   : > { %552 = vmatmul.bf16.vlgmr.msra.gmra.mxu2 %v434_v55 }
  0xae   : > { %v1664_v60 = vpop.f32.mrf.mxu0 }
  0xb1   : > { %v540_v61 = vpop.f32.mrf.mxu1 }
  0xb2   : > { %637 = vrot.lane.b32.xlu1 %v540_v61, %s1470_s25  ;;  %1254 = vmatpush.xpose.msk.msra.mxu3 %vm557_vm0, %v540_v61 }
  0xb5   : > { %1255 = vmatmul.msk.f32.vlgmr.msra.gmra.mxu3 %vm557_vm0, %v1664_v60 }
  0xb6   : > { %v432_v62 = vpop.f32.mrf.mxu0 }
  0xb9   : > { %v542_v63 = vpop.f32.mrf.mxu1 }
  0xba   : > { %635 = vrot.lane.b32.xlu1 %v1664_v60, %s1470_s25  ;;  %v1672_v0 = vpop.f32.mrf.mxu2 }
  0xbb   : > { %630 = vmatpush.msrb.mxu3 %v1672_v0 }
  0xc2   : > { %718 = vrot.lane.b32.xlu1 %v540_v61, %s1471_s28  ;;  %v555_v1 = vpop.f32.mrf.mxu2 }
  0xca   : > { %798 = vrot.lane.b32.xlu1 %v540_v61, %s1472_s26 }
  0xd2   : > { %796 = vrot.lane.b32.xlu1 %v1664_v60, %s1472_s26 }
 0x124   : > { %v638_v2 = vpop.permute.xlu1 %637 }
 0x125   : > { %1257 = vmatpush.xpose.msk.msra.mxu3 %vm557_vm0, %v638_v2 }
 0x12c   : > { %v636_v3 = vpop.permute.xlu1 %635 }
 0x134   : > { %v719_v4 = vpop.permute.xlu1 %718 }
 0x138   : > { %v581_v6 = vpop.f32.mrf.mxu3 }
 0x139   : > { %v584_v7 = vmul.f32 0.17677669, %v581_v6 }
 0x13b   : > { %v586_v8 = vsel %vm585_vm1, -1e+09, %v584_v7 }
 0x13c   : > { %v799_v9 = vpop.permute.xlu1 %798  ;;  %v588_v10 = vsel %vm587_vm2, %v586_v8, -inf }
 0x13d   : > { %1263 = vmatpush.xpose.msk.msrb.mxu0 %vm557_vm0, %v799_v9  ;;  %589 = vmax.xlane.f32.xlu0 %v588_v10 }
 0x144   : > { %v797_v11 = vpop.permute.xlu1 %796 }
 0x145   : > { %1264 = vmatmul.msk.f32.vlgmr.msrb.gmra.mxu0 %vm557_vm0, %v797_v11 }
 0x1b0   : > { %v590_v12 = vpop.xlane.xlu0 %589 }
 0x1b1   : > { %v591_v13 = vsub.f32 %v586_v8, %v590_v12 }
 0x1b3   : > { %v592_v14 = vmul.f32 1.442695, %v591_v13 }
 0x1b5   : > { %1370 = vpow2.f32 %v592_v14 }
 0x1bb   : > { %v1371_v15 = vpop.eup %1370 }
 0x1bc   : > { %v594_v16 = vsel %vm587_vm2, %v1371_v15, 0.0 }
 0x1bd   : > { %595 = vadd.xlane.f32.xlu0 %v594_v16 }
 0x1c2   : > { %v821_v17 = vpop.f32.mrf.mxu0 }
 0x1c3   : > { %v824_v18 = vmul.f32 0.17677669, %v821_v17 }
 0x1c5   : > { %v1695_v19 = vsel %vm585_vm1, -1e+09, %v824_v18 }
 0x1c6   : > { %v826_v20 = vsel %vm587_vm2, %v1695_v19, -inf }
 0x1c7   : > { %827 = vmax.xlane.f32.xlu1 %v826_v20 }
 0x1d1   : > { %690 = vrot.lane.b32.xlu0 %v1672_v0, %s1470_s25 }
 0x1e0   : > { %850 = vrot.lane.b32.xlu1 %v1672_v0, %s1472_s26 }
 0x230   : > { %v596_v21 = vpop.xlane.xlu0 %595 }
 0x231   : > { %1372 = vrcp.f32 %v596_v21  ;;  %v608_v25 = vand.u32 2147483648, %v596_v21  ;;  %v606_v27 = vand.u32 2147483647, %v596_v21  ;;  %vm602_vm4 = vweird.f32 %v596_v21 }
 0x233   : > { %v609_v29 = vor.u32 1.1754944e-38, %v608_v25  ;;  %vm607_vm6 = vcmp.eq.f32.partialorder %v606_v27, 8.507059e+37 }
 0x237   : > { %v1373_v22 = vpop.eup %1372 }
 0x238   : > { %v598_v23 = vmul.f32 %v1373_v22, %v596_v21  ;;  %vm603_vm3 = vweird.f32 %v1373_v22 }
 0x239   : > { %vm604_vm5 = vmor %vm602_vm4, %vm603_vm3 }
 0x23a   : > { %v599_v24 = vsub.f32 1.0, %v598_v23  ;;  %v828_v34 = vpop.xlane.xlu1 %827 }
 0x23b   : > { %v829_v61 = vsub.f32 %v1695_v19, %v828_v34 }
 0x23c   : > { %v600_v26 = vmul.f32 %v1373_v22, %v599_v24 }
 0x23d   : > { %v830_v62 = vmul.f32 1.442695, %v829_v61 }
 0x23e   : > { %v601_v28 = vadd.f32 %v1373_v22, %v600_v26 }
 0x240   : > { %v605_v30 = vsel %vm604_vm5, %v1373_v22, %v601_v28  ;;  %vm1009_vm5 = vcmask 130048  }
 0x241   : > { %v610_v31 = vsel %vm607_vm6, %v609_v29, %v605_v30  ;;  %vm1011_vm6 = vcmask 195584  }
 0x242   : > { %v1703_v32 = vmul.f32 %v1371_v15, %v610_v31 }
 0x243   : > { %v691_v33 = vpop.permute.xlu0 %690 }
 0x244   : > { %1256 = vmatmul.msk.f32.vlgmr.msrb.gmra.mxu3 %vm587_vm2, %v1703_v32 }
 0x245   : > { %711 = vmatpush.msrb.mxu3 %v691_v33 }
 0x24c   : > { %1258 = vmatmul.msk.f32.vlgmr.msra.gmra.mxu3 %vm557_vm0, %v636_v3 }
 0x24d   : > { %1260 = vmatpush.xpose.msk.msra.mxu3 %vm557_vm0, %v719_v4 }
 0x252   : > { %v851_v35 = vpop.permute.xlu1 %850 }
 0x253   : > { %871 = vmatpush.msrb.mxu1 %v851_v35 }
 0x2c7   : > { %v1709_v36 = vpop.f32.mrf.mxu3 }
 0x2cf   : > { %v660_v37 = vpop.f32.mrf.mxu3 }
 0x2d0   : > { %v663_v38 = vmul.f32 0.17677669, %v660_v37 }
 0x2d2   : > { %v664_v39 = vsel %vm585_vm1, -1e+09, %v663_v38 }
 0x2d3   : > { %v665_v40 = vsel %vm587_vm2, %v664_v39, -inf }
 0x2d4   : > { %666 = vmax.xlane.f32.xlu2 %v665_v40  ;;  %v1330_v40 = vld [vmem:[#allocation4 + $0x30] sm:$0xff] }
 0x347   : > { %v667_v41 = vpop.xlane.xlu2 %666 }
 0x348   : > { %v668_v42 = vsub.f32 %v664_v39, %v667_v41  ;;  %v1331_v39 = vld [vmem:[#allocation4 + $0x38] sm:$0xff] }
 0x349   : > { %958 = vmatpush.bf16.msrb.mxu2 %v1331_v39 }
 0x34a   : > { %v669_v43 = vmul.f32 1.442695, %v668_v42  ;;  %v1329_v42 = vld [vmem:[#allocation4 + $0x28] sm:$0xff] }
 0x34c   : > { %1374 = vpow2.f32 %v669_v43  ;;  %v1328_v43 = vld [vmem:[#allocation4 + $0x20] sm:$0xff] }
 0x34d   : > { %959 = vmatpush.bf16.msrb.mxu2 %v1330_v40 }
 0x351   : > { %960 = vmatpush.bf16.msrb.mxu2 %v1329_v42 }
 0x352   : > { %v1375_v44 = vpop.eup %1374 }
 0x353   : > { %v671_v45 = vsel %vm587_vm2, %v1375_v44, 0.0 }
 0x354   : > { %672 = vadd.xlane.f32.xlu2 %v671_v45  ;;  %v1327_v45 = vld [vmem:[#allocation4 + $0x18] sm:$0xff] }
 0x355   : > { %961 = vmatpush.bf16.msrb.mxu2 %v1328_v43 }
 0x359   : > { %962 = vmatpush.bf16.msrb.mxu2 %v1327_v45 }
 0x36c   : > { %716 = vrot.lane.b32.xlu2 %v1664_v60, %s1471_s28 }
 0x3c7   : > { %v673_v46 = vpop.xlane.xlu2 %672 }
 0x3c8   : > { %1376 = vrcp.f32 %v673_v46  ;;  %v685_v51 = vand.u32 2147483648, %v673_v46  ;;  %v683_v53 = vand.u32 2147483647, %v673_v46  ;;  %vm679_vm8 = vweird.f32 %v673_v46 }
 0x3c9   : > { %1378 = vpow2.f32 %v830_v62 }
 0x3ca   : > { %v686_v55 = vor.u32 1.1754944e-38, %v685_v51  ;;  %vm684_vm10 = vcmp.eq.f32.partialorder %v683_v53, 8.507059e+37 }
 0x3ce   : > { %v1377_v47 = vpop.eup %1376 }
 0x3cf   : > { %v675_v49 = vmul.f32 %v1377_v47, %v673_v46  ;;  %vm680_vm7 = vweird.f32 %v1377_v47  ;;  %v717_v59 = vpop.permute.xlu2 %716  ;;  %v1379_v4 = vpop.eup %1378 }
 0x3d0   : > { %vm681_vm9 = vmor %vm679_vm8, %vm680_vm7  ;;  %v832_v6 = vsel %vm587_vm2, %v1379_v4, 0.0  ;;  %vm889_vm7 = vcmask 523264   ;;  %vm891_vm8 = vcmask 785408  }
 0x3d1   : > { %v676_v50 = vsub.f32 1.0, %v675_v49 }
 0x3d3   : > { %v677_v52 = vmul.f32 %v1377_v47, %v676_v50  ;;  %v1325_v50 = vld [vmem:[#allocation4 + $0x8] sm:$0xff] }
 0x3d5   : > { %v678_v54 = vadd.f32 %v1377_v47, %v677_v52 }
 0x3d7   : > { %v682_v56 = vsel %vm681_vm9, %v1377_v47, %v678_v54  ;;  %v1326_v47 = vld [vmem:[#allocation4 + $0x10] sm:$0xff] }
 0x3d8   : > { %v687_v57 = vsel %vm684_vm10, %v686_v55, %v682_v56  ;;  %963 = vmatpush.bf16.msrb.mxu2 %v1326_v47  ;;  %v1324_v55 = vld [vmem:[#allocation4] sm:$0xff] }
 0x3d9   : > { %v1717_v58 = vmul.f32 %v1375_v44, %v687_v57 }
 0x3db   : > { %1259 = vmatmul.msk.f32.vlgmr.msrb.gmra.mxu3 %vm587_vm2, %v1717_v58 }
 0x3dc   : > { %964 = vmatpush.bf16.msrb.mxu2 %v1325_v50 }
 0x3e0   : > { %965 = vmatpush.bf16.msrb.mxu2 %v1324_v55 }
 0x3e3   : > { %1261 = vmatmul.msk.f32.vlgmr.msra.gmra.mxu3 %vm557_vm0, %v717_v59 }
 0x45e   : > { %v713_v60 = vpop.f32.mrf.mxu3 }
 0x466   : > { %v741_v63 = vpop.f32.mrf.mxu3 }
 0x467   : > { %v744_v1 = vmul.f32 0.17677669, %v741_v63  ;;  %v1476_v63 = vmov 128.0  }
 0x469   : > { %v745_v2 = vsel %vm585_vm1, -1e+09, %v744_v1 }
 0x46a   : > { %v746_v3 = vsel %vm587_vm2, %v745_v2, -inf }
 0x46b   : > { %747 = vmax.xlane.f32.xlu0 %v746_v3 }
 0x473   : > { %833 = vadd.xlane.f32.xlu0 %v832_v6 }
 0x487   : > { %877 = vrot.lane.b32.xlu0 %v713_v60, %s1472_s26 }
 0x4de   : > { %v748_v7 = vpop.xlane.xlu0 %747 }
 0x4df   : > { %v749_v8 = vsub.f32 %v745_v2, %v748_v7 }
 0x4e1   : > { %v750_v9 = vmul.f32 1.442695, %v749_v8 }
 0x4e3   : > { %1380 = vpow2.f32 %v750_v9 }
 0x4e6   : > { %v834_v10 = vpop.xlane.xlu0 %833 }
 0x4e7   : > { %1382 = vrcp.f32 %v834_v10  ;;  %v846_v15 = vand.u32 2147483648, %v834_v10  ;;  %v844_v17 = vand.u32 2147483647, %v834_v10  ;;  %vm840_vm12 = vweird.f32 %v834_v10 }
 0x4e9   : > { %v1381_v11 = vpop.eup %1380  ;;  %v847_v19 = vor.u32 1.1754944e-38, %v846_v15  ;;  %vm845_vm14 = vcmp.eq.f32.partialorder %v844_v17, 8.507059e+37 }
 0x4ea   : > { %v752_v12 = vsel %vm587_vm2, %v1381_v11, 0.0 }
 0x4eb   : > { %753 = vadd.xlane.f32.xlu2 %v752_v12 }
 0x4ed   : > { %v1383_v5 = vpop.eup %1382 }
 0x4ee   : > { %v836_v13 = vmul.f32 %v1383_v5, %v834_v10  ;;  %vm841_vm11 = vweird.f32 %v1383_v5 }
 0x4ef   : > { %vm842_vm13 = vmor %vm840_vm12, %vm841_vm11 }
 0x4f0   : > { %v837_v14 = vsub.f32 1.0, %v836_v13 }
 0x4f2   : > { %v838_v16 = vmul.f32 %v1383_v5, %v837_v14 }
 0x4f4   : > { %v839_v18 = vadd.f32 %v1383_v5, %v838_v16 }
 0x4f6   : > { %v843_v20 = vsel %vm842_vm13, %v1383_v5, %v839_v18 }
 0x4f7   : > { %v848_v21 = vsel %vm845_vm14, %v847_v19, %v843_v20 }
 0x4f8   : > { %v849_v22 = vmul.f32 %v1379_v4, %v848_v21 }
 0x4f9   : > { %v878_v38 = vpop.permute.xlu0 %877 }
 0x4fa   : > { %1265 = vmatmul.msk.f32.vlgmr.msrb.gmra.mxu1 %vm587_vm2, %v849_v22  ;;  %v888_v56 = vsel %vm557_vm0, %v1709_v36, %v878_v38 }
 0x503   : > { %770 = vrot.lane.b32.xlu2 %v1672_v0, %s1471_s28 }
 0x55e   : > { %v754_v23 = vpop.xlane.xlu2 %753 }
 0x55f   : > { %1384 = vrcp.f32 %v754_v23  ;;  %v766_v28 = vand.u32 2147483648, %v754_v23  ;;  %v764_v30 = vand.u32 2147483647, %v754_v23  ;;  %vm760_vm1 = vweird.f32 %v754_v23 }
 0x560   : > { %1386 = vrcp.f32 %v1476_v63 }
 0x561   : > { %v767_v33 = vor.u32 1.1754944e-38, %v766_v28  ;;  %vm765_vm4 = vcmp.eq.f32.partialorder %v764_v30, 8.507059e+37 }
 0x565   : > { %v1385_v24 = vpop.eup %1384 }
 0x566   : > { %v756_v25 = vmul.f32 %v1385_v24, %v754_v23  ;;  %v771_v26 = vpop.permute.xlu2 %770  ;;  %vm761_vm15 = vweird.f32 %v1385_v24  ;;  %v1387_v1 = vpop.eup %1386 }
 0x567   : > { %791 = vmatpush.msrb.mxu3 %v771_v26  ;;  %vm762_vm3 = vmor %vm760_vm1, %vm761_vm15  ;;  %v974_v2 = vmul.f32 128.0, %v1387_v1 }
 0x568   : > { %v757_v27 = vsub.f32 1.0, %v756_v25 }
 0x569   : > { %v975_v3 = vsub.f32 1.0, %v974_v2 }
 0x56a   : > { %v758_v29 = vmul.f32 %v1385_v24, %v757_v27 }
 0x56b   : > { %v976_v4 = vmul.f32 %v1387_v1, %v975_v3 }
 0x56c   : > { %v759_v31 = vadd.f32 %v1385_v24, %v758_v29 }
 0x56d   : > { %v977_v6 = vadd.f32 %v1387_v1, %v976_v4 }
 0x56e   : > { %v763_v34 = vsel %vm762_vm3, %v1385_v24, %v759_v31 }
 0x56f   : > { %v768_v35 = vsel %vm765_vm4, %v767_v33, %v763_v34 }
 0x570   : > { %v769_v37 = vmul.f32 %v1381_v11, %v768_v35 }
 0x572   : > { %1262 = vmatmul.msk.f32.vlgmr.msrb.gmra.mxu3 %vm587_vm2, %v769_v37 }
 0x577   : > { %v873_v0 = vpop.f32.mrf.mxu1 }
 0x578   : > { %885 = vrot.lane.b32.xlu0 %v873_v0, %s1470_s25 }
 0x580   : > { %999 = vrot.lane.b32.xlu0 %v1717_v58, %s1473_s8 }
 0x588   : > { %1002 = vrot.lane.b32.xlu0 %v769_v37, %s1474_s9 }
 0x590   : > { %1005 = vrot.lane.b32.xlu0 %v849_v22, %s1475_s10 }
 0x5ea   : > { %v886_v41 = vpop.permute.xlu0 %885 }
 0x5f2   : > { %v1000_v44 = vpop.permute.xlu0 %999 }
 0x5f3   : > { %v1008_v51 = vsel %vm587_vm2, %v1703_v32, %v1000_v44  ;;  %vm978_vm2 = vweird.f32 %v1387_v1 }
 0x5f4   : > { %v979_v7 = vsel %vm978_vm2, %v1387_v1, %v977_v6 }
 0x5f5   : > { %v793_v46 = vpop.f32.mrf.mxu3 }
 0x5f6   : > { %881 = vrot.lane.b32.xlu2 %v793_v46, %s1471_s28 }
 0x5fa   : > { %v1003_v49 = vpop.permute.xlu0 %1002 }
 0x5fb   : > { %v1010_v52 = vsel %vm1009_vm5, %v1008_v51, %v1003_v49 }
 0x602   : > { %v1006_v53 = vpop.permute.xlu0 %1005 }
 0x603   : > { %v1012_v54 = vsel %vm1011_vm6, %v1010_v52, %v1006_v53 }
 0x604   : > { %1013 = vst.msk [vmem:[%s352_s13] sm:$0xff] %vm557_vm0, %v1012_v54 }
 0x650   : > { %v882_v57 = vpop.permute.xlu2 %881 }
 0x651   : > { %v890_v58 = vsel %vm889_vm7, %v888_v56, %v882_v57 }
 0x652   : > { %v892_v59 = vsel %vm891_vm8, %v890_v58, %v886_v41 }
 0x653   : > { %v893_v32 = vpack.c.bf16 %v892_v59, %v892_v59 }
 0x655   : > { %966 = vmatmul.bf16.vlgmr.msrb.gmra.mxu2 %v893_v32 }
 0x6d8   : > { %v967_v60 = vpop.f32.mrf.mxu2 }
 0x6d9   : > { %v968_v61 = vadd.f32 %v967_v60, %v1648_v48 }
 0x6db   : > { %971 = vadd.xlane.f32.xlu1 %v968_v61 }
 0x6e0   : > { %v969_v62 = vpop.f32.mrf.mxu2 }
 0x74e   : > { %v972_v36 = vpop.xlane.xlu1 %971 }
 0x74f   : > { %v980_v8 = vmul.f32 %v979_v7, %v972_v36 }
 0x751   : > { %v981_v9 = vsub.f32 %v968_v61, %v980_v8 }
 0x753   : > { %v982_v10 = vmul.f32 %v981_v9, %v981_v9 }
 0x755   : > { %983 = vadd.xlane.f32.xlu2 %v982_v10 }
 0x7c8   : > { %v984_v11 = vpop.xlane.xlu2 %983 }
 0x7c9   : > { %v985_v12 = vmul.f32 %v984_v11, %v979_v7 }
 0x7cb   : > { %v986_v48 = vadd.f32 1e-05, %v985_v12 }
 0x7cd   : > { %1388 = vrsqrt.f32 %v986_v48  ;;  %vm993_vm9 = vweird.f32 %v986_v48 }
 0x7d3   : > { %v1389_v5 = vpop.eup %1388 }
 0x7d4   : > { %v988_v13 = vmul.f32 %v1389_v5, %v986_v48  ;;  %vm994_vm0 = vweird.f32 %v1389_v5 }
 0x7d5   : > { %vm995_vm10 = vmor %vm993_vm9, %vm994_vm0 }
 0x7d6   : > { %v989_v14 = vmul.f32 %v1389_v5, %v988_v13 }
 0x7d8   : > { %v990_v15 = vmul.f32 0.5, %v989_v14 }
 0x7da   : > { %v991_v16 = vsub.f32 1.5, %v990_v15 }
 0x7dc   : > { %v992_v17 = vmul.f32 %v1389_v5, %v991_v16 }
 0x7de   : > { %v996_v18 = vsel %vm995_vm10, %v1389_v5, %v992_v17 }
 0x7df   : > { %v997_v19 = vmul.f32 %v996_v18, %v981_v9 }
 0x7e1   : > { %998 = vst [vmem:[%s348_s16] sm:$0xff] %v997_v19 }
 0x7e2 PF: > { %s20_s24 = sadd.s32 1, %s1464_s24  }
 0x7e3   : > { %p17_p7 = scmp.ge.s32.totalorder %s20_s24, 4  }
 0x7e5   :  { %19 = sbr.rel (!%p17_p7) target bundleno = 2 (0x2), region = 101 }
 0x7ea   :  { %1047 = vsyncpa [#allocation3], 1 }
 0x7eb   :  { %1049 = vsyncpa [#allocation3 + $0x1], 1 }
 0x7ec   :  { %1050 = vsyncpa [#allocation5], 1 }

// kernel: _transformer_forward.15
= control target key start
LH: loop header
LB: loop body
LE: loop exit
PB: predicated region body
PF: predicated region fallthrough
CT: control target
= control target key end

     0   :  { %13 = vsyncpa [#allocation3], 0  ;;  %s1742_s0 = inlined_call_operand.vmem [shape: f32[2,8,128], index: 0, kind: input, shape index: {}, may-alias: {0,1}]   ;;  %s1743_s1 = inlined_call_operand.vmem [shape: f32[2,8,128], index: 1, kind: input, shape index: {}, may-alias: {0,1}]   ;;  %s1744_s2 = inlined_call_operand.vmem [shape: f32[2,8,8], index: 2, kind: input, shape index: {}]   ;;  %s1745_s3 = inlined_call_operand.hbm [shape: bf16[128,128], index: 3, kind: input, shape index: {}]   ;;  %s1746_s4 = inlined_call_operand.hbm [shape: bf16[128,256], index: 4, kind: input, shape index: {}]   ;;  %s1747_s5 = inlined_call_operand.hbm [shape: bf16[128,128], index: 5, kind: input, shape index: {}]   ;;  %s1748_s6 = inlined_call_operand.vmem [shape: f32[2,8,128], index: 6, kind: output, shape index: {0}]   ;;  %s1749_s7 = inlined_call_operand.vmem [shape: f32[2,8,32], index: 7, kind: output, shape index: {1}]  }
   0x1   :  { %14 = vsyncpa [#allocation5], 0  ;;  %s1589_s24 = smov 0  }
   0x2 LB: > { %s243_s27 = sshll.u32 %s1746_s4, 4  ;;  %s1598_s28 = sadd.s32 4294967295, %s1533_s24   ;;  %s1533_s24 = sphi %s1589_s24, %s20_s24   ;;  %s244_s27 = int_to_ptr.hbm [resolvable:$true] %s243_s27 }
   0x3   : > { %p1171_p0 = scmp.ge.s32.totalorder %s1533_s24, 1  ;;  %p218_p1 = scmp.lt.s32.totalorder %s1533_s24, 3 }
   0x4   : > { %p1381_p2 = scmp.eq.s32.totalorder %s1598_s28, 0  ;;  %s1535_s30 = smov [#allocation4]  }
   0x5   : > { %p1603_p3 = pnand %p1171_p0, %p218_p1  ;;  %s245_s8 = sshll.u32 %s1535_s30, 4  ;;  %s246_s8 = int_to_ptr.vmem [resolvable:$true] %s245_s8 }
   0x6   : > { %s229_s11 = sshll.u32 %s1745_s3, 4  ;;  %s1536_s13 = smov [#allocation2]   ;;  %s230_s11 = int_to_ptr.hbm [resolvable:$true] %s229_s11 }
   0x7   : > { %p1371_p4 = pneg %p1603_p3  ;;  %s231_s14 = sshll.u32 %s1536_s13, 4  ;;  %s232_s14 = int_to_ptr.vmem [resolvable:$true] %s231_s14 }
   0x8   : > { %s1537_s15 = smov 128   ;;  %s1538_s16 = smov 8  }
   0x9   : > { %p1614_p5 = pnand %p1381_p2, %p1371_p4  ;;  %s257_s19 = sshll.u32 %s1747_s5, 4  ;;  %s258_s19 = int_to_ptr.hbm [resolvable:$true] %s257_s19 }
   0xa   : > { %s1539_s20 = smov 64   ;;  %s1540_s21 = smov 4  }
   0xb   : > { %1377 = dma.hbm_to_vmem [thread:$0]  (!%p1614_p5), %s244_s27, 2048, %s246_s8, [#allocation5], %s1537_s15, %s1537_s15, %s1538_s16  }
   0xc   : > { %1374 = dma.hbm_to_vmem [thread:$0]  (!%p1614_p5), %s230_s11, 1024, %s232_s14, [#allocation3], %s1539_s20, %s1539_s20, %s1540_s21  }
   0xd   : > { %s1541_s22 = smov [#allocation6]   ;;  %296 = sbr.rel (%p1603_p3) target bundleno = 2022 (0x7e6), region = 44 }
   0xe   : > { %s259_s23 = sshll.u32 %s1541_s22, 4  ;;  %s260_s23 = int_to_ptr.vmem [resolvable:$true] %s259_s23 }
   0xf   : > { %1380 = dma.hbm_to_vmem [thread:$0]  (!%p1614_p5), %s258_s19, 1024, %s260_s23, [#allocation5], %s1539_s20, %s1539_s20, %s1540_s21  }
  0x12   : > { %1524 = dma.done.wait (%p1381_p2), [#allocation3], 1024  }
  0x13   : > { %1526 = vsyncadd (%p1381_p2), [#allocation3], 4294966272 }
  0x14   : > { %1528 = dma.done.wait (%p1381_p2), [#allocation5], 3072  }
  0x15   : > { %1530 = vsyncadd (%p1381_p2), [#allocation5], 4294964224  ;;  %v1334_v0 = vld [vmem:[#allocation2 + $0x38] sm:$0xff]  ;;  %v1275_v1 = vld [vmem:[#allocation4 + $0x70] sm:$0xf]  ;;  %p349_p6 = scmp.lt.s32.totalorder %s1598_s28, 1 }
  0x16   : > { %v1350_v2 = vld [vmem:[#allocation4 + $0x74] sm:$0xf0]  ;;  %v1267_v4 = vld [vmem:[#allocation4 + $0x60] sm:$0xf]  ;;  %v1348_v5 = vld [vmem:[#allocation4 + $0x64] sm:$0xf0]  ;;  %437 = vmatpush.bf16.msra.mxu0 %v1334_v0 }
  0x17   : > { %v1276_v3 = vor.u32 %v1350_v2, %v1275_v1  ;;  %v1333_v6 = vld [vmem:[#allocation2 + $0x30] sm:$0xff]  ;;  %v1268_v7 = vor.u32 %v1348_v5, %v1267_v4  ;;  %v1346_v9 = vld [vmem:[#allocation4 + $0x54] sm:$0xf0]  ;;  %v1332_v10 = vld [vmem:[#allocation2 + $0x28] sm:$0xff]  ;;  %s1753_s28 = smov (!%p349_p6, %s1598_s28), 1  ;;  %vm573_vm0 = vcmask 261120  }
  0x18   : > { %v1259_v8 = vld [vmem:[#allocation4 + $0x50] sm:$0xf]  ;;  %v1251_v12 = vld [vmem:[#allocation4 + $0x40] sm:$0xf]  ;;  %v1344_v13 = vld [vmem:[#allocation4 + $0x44] sm:$0xf0] }
  0x19   : > { %547 = vmatpush.bf16.msra.mxu1 %v1276_v3  ;;  %v1260_v11 = vor.u32 %v1346_v9, %v1259_v8  ;;  %v1349_v14 = vld [vmem:[#allocation4 + $0x74] sm:$0xf]  ;;  %v1277_v15 = vld [vmem:[#allocation4 + $0x78] sm:$0xf0]  ;;  %v1347_v16 = vld [vmem:[#allocation4 + $0x64] sm:$0xf]  ;;  %v1252_v20 = vor.u32 %v1344_v13, %v1251_v12 }
  0x1a   : > { %438 = vmatpush.bf16.msra.mxu0 %v1333_v6  ;;  %v1269_v17 = vld [vmem:[#allocation4 + $0x68] sm:$0xf0]  ;;  %v1331_v18 = vld [vmem:[#allocation2 + $0x20] sm:$0xff]  ;;  %v1280_v19 = vor.u32 %v1349_v14, %v1277_v15  ;;  %v1243_v21 = vld [vmem:[#allocation4 + $0x30] sm:$0xf]  ;;  %s1639_s25 = sshll.u32 %s1753_s28, 3 }
  0x1b   : > { %v1342_v22 = vld [vmem:[#allocation4 + $0x34] sm:$0xf0]  ;;  %v1272_v23 = vor.u32 %v1347_v16, %v1269_v17  ;;  %v1345_v24 = vld [vmem:[#allocation4 + $0x54] sm:$0xf]  ;;  %v1261_v25 = vld [vmem:[#allocation4 + $0x58] sm:$0xf0]  ;;  %s352_s29 = scalar_lea.vmem %s1742_s0, %s1639_s25  ;;  %s356_s28 = scalar_lea.vmem %s1743_s1, %s1639_s25 }
  0x1c   : > { %560 = vmatpush.bf16.msra.mxu2 %v1280_v19  ;;  %v1330_v26 = vld [vmem:[#allocation2 + $0x18] sm:$0xff]  ;;  %v1244_v27 = vor.u32 %v1342_v22, %v1243_v21  ;;  %v1235_v28 = vld [vmem:[#allocation4 + $0x20] sm:$0xf]  ;;  %v1340_v29 = vld [vmem:[#allocation4 + $0x24] sm:$0xf0]  ;;  %v1264_v30 = vor.u32 %v1345_v24, %v1261_v25  ;;  %s1542_s9 = smov 96   ;;  %s360_s14 = scalar_lea.vmem %s1744_s2, %s1639_s25 }
  0x1d   : > { %548 = vmatpush.bf16.msra.mxu1 %v1268_v7  ;;  %v1343_v31 = vld [vmem:[#allocation4 + $0x44] sm:$0xf]  ;;  %v1253_v32 = vld [vmem:[#allocation4 + $0x48] sm:$0xf0]  ;;  %v1329_v33 = vld [vmem:[#allocation2 + $0x10] sm:$0xff]  ;;  %v1236_v34 = vor.u32 %v1340_v29, %v1235_v28  ;;  %s1543_s10 = smov 64   ;;  %s368_s20 = scalar_lea.vmem %s1749_s7, %s1639_s25 }
  0x1e   : > { %439 = vmatpush.bf16.msra.mxu0 %v1332_v10  ;;  %v1227_v35 = vld [vmem:[#allocation4 + $0x10] sm:$0xf]  ;;  %v1338_v36 = vld [vmem:[#allocation4 + $0x14] sm:$0xf0]  ;;  %v1256_v37 = vor.u32 %v1343_v31, %v1253_v32  ;;  %v1341_v38 = vld [vmem:[#allocation4 + $0x34] sm:$0xf]  ;;  %s364_s23 = scalar_lea.vmem %s1748_s6, %s1639_s25 }
  0x1f   : > { %v1245_v39 = vld [vmem:[#allocation4 + $0x38] sm:$0xf0]  ;;  %v1328_v40 = vld [vmem:[#allocation2 + $0x8] sm:$0xff]  ;;  %v1228_v41 = vor.u32 %v1338_v36, %v1227_v35  ;;  %v1219_v42 = vld [vmem:[#allocation4] sm:$0xf]  ;;  %s1544_s11 = smov 32  }
  0x20   : > { %561 = vmatpush.bf16.msra.mxu2 %v1272_v23  ;;  %v1336_v43 = vld [vmem:[#allocation4 + $0x4] sm:$0xf0]  ;;  %v1248_v44 = vor.u32 %v1341_v38, %v1245_v39  ;;  %v1339_v45 = vld [vmem:[#allocation4 + $0x24] sm:$0xf]  ;;  %v1237_v46 = vld [vmem:[#allocation4 + $0x28] sm:$0xf0] }
  0x21   : > { %549 = vmatpush.bf16.msra.mxu1 %v1260_v11  ;;  %v1327_v47 = vld [vmem:[#allocation2] sm:$0xff]  ;;  %v1220_v49 = vor.u32 %v1336_v43, %v1219_v42  ;;  %v1240_v51 = vor.u32 %v1339_v45, %v1237_v46  ;;  %v1337_v53 = vld [vmem:[#allocation4 + $0x14] sm:$0xf]  ;;  %v1229_v54 = vld [vmem:[#allocation4 + $0x18] sm:$0xf0]  ;;  %vm603_vm2 = vcmask 64512  }
  0x22   : > { %440 = vmatpush.bf16.msra.mxu0 %v1331_v18  ;;  %v1649_v48 = vld [vmem:[%s352_s29] sm:$0xff]  ;;  %v1232_v56 = vor.u32 %v1337_v53, %v1229_v54  ;;  %v1221_v58 = vld [vmem:[#allocation4 + $0x8] sm:$0xf0]  ;;  %s1545_s15 = smov 8   ;;  %s1546_s16 = smov 16  }
  0x23   : > { %v370_v50 = vld [vmem:[%s356_s28] sm:$0xff]  ;;  %v372_v52 = vpack.c.bf16 %v1649_v48, %v1649_v48  ;;  %s1547_s17 = smov 24  }
  0x24   : > { %562 = vmatpush.bf16.msra.mxu2 %v1264_v30  ;;  %v450_v55 = vpack.c.bf16 %v370_v50, %v370_v50  ;;  %v1335_v57 = vld [vmem:[#allocation4 + $0x4] sm:$0xf] }
  0x25   : > { %550 = vmatpush.bf16.msra.mxu1 %v1252_v20  ;;  %v1224_v59 = vor.u32 %v1335_v57, %v1221_v58  ;;  %v1673_v5 = vld [vmem:[%s360_s14] sm:$0xff] }
  0x26   : > { %441 = vmatpush.bf16.msra.mxu0 %v1330_v26  ;;  %vm601_vm1 = vcmp.gt.f32.partialorder %v1673_v5, 0.0 }
  0x28   : > { %563 = vmatpush.bf16.msra.mxu2 %v1256_v37 }
  0x29   : > { %551 = vmatpush.bf16.msra.mxu1 %v1244_v27 }
  0x2a   : > { %442 = vmatpush.bf16.msra.mxu0 %v1329_v33 }
  0x2c   : > { %564 = vmatpush.bf16.msra.mxu2 %v1248_v44 }
  0x2d   : > { %552 = vmatpush.bf16.msra.mxu1 %v1236_v34 }
  0x2e   : > { %443 = vmatpush.bf16.msra.mxu0 %v1328_v40 }
  0x30   : > { %565 = vmatpush.bf16.msra.mxu2 %v1240_v51 }
  0x31   : > { %553 = vmatpush.bf16.msra.mxu1 %v1228_v41 }
  0x32   : > { %444 = vmatpush.bf16.msra.mxu0 %v1327_v47 }
  0x34   : > { %566 = vmatpush.bf16.msra.mxu2 %v1232_v56 }
  0x35   : > { %554 = vmatpush.bf16.msra.mxu1 %v1220_v49  ;;  %445 = vmatmul.bf16.vlgmr.msra.gmra.mxu0 %v372_v52 }
  0x38   : > { %555 = vmatmul.bf16.vlgmr.msra.gmra.mxu1 %v450_v55  ;;  %567 = vmatpush.bf16.msra.mxu2 %v1224_v59 }
  0x3b   : > { %568 = vmatmul.bf16.vlgmr.msra.gmra.mxu2 %v450_v55 }
  0xb2   : > { %v1653_v60 = vpop.f32.mrf.mxu0 }
  0xb5   : > { %v556_v61 = vpop.f32.mrf.mxu1 }
  0xb6   : > { %653 = vrot.lane.b32.xlu1 %v556_v61, %s1542_s9  ;;  %1281 = vmatpush.xpose.msk.msra.mxu3 %vm573_vm0, %v556_v61 }
  0xb9   : > { %1282 = vmatmul.msk.f32.vlgmr.msra.gmra.mxu3 %vm573_vm0, %v1653_v60 }
  0xba   : > { %v448_v62 = vpop.f32.mrf.mxu0 }
  0xbd   : > { %v558_v63 = vpop.f32.mrf.mxu1 }
  0xbe   : > { %651 = vrot.lane.b32.xlu1 %v1653_v60, %s1542_s9  ;;  %v1661_v0 = vpop.f32.mrf.mxu2 }
  0xbf   : > { %646 = vmatpush.msrb.mxu3 %v1661_v0 }
  0xc6   : > { %734 = vrot.lane.b32.xlu1 %v556_v61, %s1543_s10  ;;  %v571_v1 = vpop.f32.mrf.mxu2 }
  0xce   : > { %814 = vrot.lane.b32.xlu1 %v556_v61, %s1544_s11 }
  0xd6   : > { %812 = vrot.lane.b32.xlu1 %v1653_v60, %s1544_s11 }
 0x128   : > { %v654_v2 = vpop.permute.xlu1 %653 }
 0x129   : > { %1284 = vmatpush.xpose.msk.msra.mxu3 %vm573_vm0, %v654_v2 }
 0x130   : > { %v652_v3 = vpop.permute.xlu1 %651 }
 0x138   : > { %v735_v4 = vpop.permute.xlu1 %734 }
 0x13c   : > { %v597_v6 = vpop.f32.mrf.mxu3 }
 0x13d   : > { %v600_v7 = vmul.f32 0.17677669, %v597_v6 }
 0x13f   : > { %v602_v8 = vsel %vm601_vm1, -1e+09, %v600_v7 }
 0x140   : > { %v815_v9 = vpop.permute.xlu1 %814  ;;  %v604_v10 = vsel %vm603_vm2, %v602_v8, -inf }
 0x141   : > { %1290 = vmatpush.xpose.msk.msrb.mxu0 %vm573_vm0, %v815_v9  ;;  %605 = vmax.xlane.f32.xlu0 %v604_v10 }
 0x148   : > { %v813_v11 = vpop.permute.xlu1 %812 }
 0x149   : > { %1291 = vmatmul.msk.f32.vlgmr.msrb.gmra.mxu0 %vm573_vm0, %v813_v11 }
 0x1b4   : > { %v606_v12 = vpop.xlane.xlu0 %605 }
 0x1b5   : > { %v607_v13 = vsub.f32 %v602_v8, %v606_v12 }
 0x1b7   : > { %v608_v14 = vmul.f32 1.442695, %v607_v13 }
 0x1b9   : > { %1409 = vpow2.f32 %v608_v14 }
 0x1bf   : > { %v1410_v15 = vpop.eup %1409 }
 0x1c0   : > { %v610_v16 = vsel %vm603_vm2, %v1410_v15, 0.0 }
 0x1c1   : > { %611 = vadd.xlane.f32.xlu0 %v610_v16 }
 0x1c6   : > { %v837_v17 = vpop.f32.mrf.mxu0 }
 0x1c7   : > { %v840_v18 = vmul.f32 0.17677669, %v837_v17 }
 0x1c9   : > { %v1684_v19 = vsel %vm601_vm1, -1e+09, %v840_v18 }
 0x1ca   : > { %v842_v20 = vsel %vm603_vm2, %v1684_v19, -inf }
 0x1cb   : > { %843 = vmax.xlane.f32.xlu1 %v842_v20 }
 0x1d5   : > { %706 = vrot.lane.b32.xlu0 %v1661_v0, %s1542_s9 }
 0x1e4   : > { %866 = vrot.lane.b32.xlu1 %v1661_v0, %s1544_s11 }
 0x234   : > { %v612_v21 = vpop.xlane.xlu0 %611 }
 0x235   : > { %1411 = vrcp.f32 %v612_v21  ;;  %v624_v25 = vand.u32 2147483648, %v612_v21  ;;  %v622_v27 = vand.u32 2147483647, %v612_v21  ;;  %vm618_vm4 = vweird.f32 %v612_v21 }
 0x237   : > { %v625_v29 = vor.u32 1.1754944e-38, %v624_v25  ;;  %vm623_vm6 = vcmp.eq.f32.partialorder %v622_v27, 8.507059e+37 }
 0x23b   : > { %v1412_v22 = vpop.eup %1411 }
 0x23c   : > { %v614_v23 = vmul.f32 %v1412_v22, %v612_v21  ;;  %vm619_vm3 = vweird.f32 %v1412_v22 }
 0x23d   : > { %vm620_vm5 = vmor %vm618_vm4, %vm619_vm3 }
 0x23e   : > { %v615_v24 = vsub.f32 1.0, %v614_v23  ;;  %v844_v34 = vpop.xlane.xlu1 %843 }
 0x23f   : > { %v845_v61 = vsub.f32 %v1684_v19, %v844_v34 }
 0x240   : > { %v616_v26 = vmul.f32 %v1412_v22, %v615_v24 }
 0x241   : > { %v846_v62 = vmul.f32 1.442695, %v845_v61 }
 0x242   : > { %v617_v28 = vadd.f32 %v1412_v22, %v616_v26 }
 0x244   : > { %v621_v30 = vsel %vm620_vm5, %v1412_v22, %v617_v28  ;;  %vm1025_vm5 = vcmask 130048  }
 0x245   : > { %v626_v31 = vsel %vm623_vm6, %v625_v29, %v621_v30  ;;  %vm1027_vm6 = vcmask 195584  }
 0x246   : > { %v1692_v32 = vmul.f32 %v1410_v15, %v626_v31 }
 0x247   : > { %v707_v33 = vpop.permute.xlu0 %706 }
 0x248   : > { %1283 = vmatmul.msk.f32.vlgmr.msrb.gmra.mxu3 %vm603_vm2, %v1692_v32 }
 0x249   : > { %727 = vmatpush.msrb.mxu3 %v707_v33 }
 0x250   : > { %1285 = vmatmul.msk.f32.vlgmr.msra.gmra.mxu3 %vm573_vm0, %v652_v3 }
 0x251   : > { %1287 = vmatpush.xpose.msk.msra.mxu3 %vm573_vm0, %v735_v4 }
 0x256   : > { %v867_v35 = vpop.permute.xlu1 %866 }
 0x257   : > { %887 = vmatpush.msrb.mxu1 %v867_v35 }
 0x2cb   : > { %v1698_v36 = vpop.f32.mrf.mxu3 }
 0x2d3   : > { %v676_v37 = vpop.f32.mrf.mxu3 }
 0x2d4   : > { %v679_v38 = vmul.f32 0.17677669, %v676_v37 }
 0x2d6   : > { %v680_v39 = vsel %vm601_vm1, -1e+09, %v679_v38 }
 0x2d7   : > { %v681_v40 = vsel %vm603_vm2, %v680_v39, -inf }
 0x2d8   : > { %682 = vmax.xlane.f32.xlu2 %v681_v40  ;;  %v1357_v40 = vld [vmem:[#allocation6 + $0x30] sm:$0xff] }
 0x34b   : > { %v683_v41 = vpop.xlane.xlu2 %682 }
 0x34c   : > { %v684_v42 = vsub.f32 %v680_v39, %v683_v41  ;;  %v1358_v39 = vld [vmem:[#allocation6 + $0x38] sm:$0xff] }
 0x34d   : > { %974 = vmatpush.bf16.msrb.mxu2 %v1358_v39 }
 0x34e   : > { %v685_v43 = vmul.f32 1.442695, %v684_v42  ;;  %v1356_v42 = vld [vmem:[#allocation6 + $0x28] sm:$0xff] }
 0x350   : > { %1413 = vpow2.f32 %v685_v43  ;;  %v1355_v43 = vld [vmem:[#allocation6 + $0x20] sm:$0xff] }
 0x351   : > { %975 = vmatpush.bf16.msrb.mxu2 %v1357_v40 }
 0x355   : > { %976 = vmatpush.bf16.msrb.mxu2 %v1356_v42 }
 0x356   : > { %v1414_v44 = vpop.eup %1413 }
 0x357   : > { %v687_v45 = vsel %vm603_vm2, %v1414_v44, 0.0 }
 0x358   : > { %688 = vadd.xlane.f32.xlu2 %v687_v45  ;;  %v1354_v45 = vld [vmem:[#allocation6 + $0x18] sm:$0xff] }
 0x359   : > { %977 = vmatpush.bf16.msrb.mxu2 %v1355_v43 }
 0x35d   : > { %978 = vmatpush.bf16.msrb.mxu2 %v1354_v45 }
 0x370   : > { %732 = vrot.lane.b32.xlu2 %v1653_v60, %s1543_s10 }
 0x3cb   : > { %v689_v46 = vpop.xlane.xlu2 %688 }
 0x3cc   : > { %1415 = vrcp.f32 %v689_v46  ;;  %v701_v51 = vand.u32 2147483648, %v689_v46  ;;  %v699_v53 = vand.u32 2147483647, %v689_v46  ;;  %vm695_vm8 = vweird.f32 %v689_v46 }
 0x3cd   : > { %1417 = vpow2.f32 %v846_v62 }
 0x3ce   : > { %v702_v55 = vor.u32 1.1754944e-38, %v701_v51  ;;  %vm700_vm10 = vcmp.eq.f32.partialorder %v699_v53, 8.507059e+37 }
 0x3d2   : > { %v1416_v47 = vpop.eup %1415 }
 0x3d3   : > { %v691_v49 = vmul.f32 %v1416_v47, %v689_v46  ;;  %vm696_vm7 = vweird.f32 %v1416_v47  ;;  %v733_v59 = vpop.permute.xlu2 %732  ;;  %v1418_v4 = vpop.eup %1417 }
 0x3d4   : > { %vm697_vm9 = vmor %vm695_vm8, %vm696_vm7  ;;  %v848_v6 = vsel %vm603_vm2, %v1418_v4, 0.0  ;;  %vm905_vm7 = vcmask 523264   ;;  %vm907_vm8 = vcmask 785408  }
 0x3d5   : > { %v692_v50 = vsub.f32 1.0, %v691_v49 }
 0x3d7   : > { %v693_v52 = vmul.f32 %v1416_v47, %v692_v50  ;;  %v1352_v50 = vld [vmem:[#allocation6 + $0x8] sm:$0xff] }
 0x3d9   : > { %v694_v54 = vadd.f32 %v1416_v47, %v693_v52 }
 0x3db   : > { %v698_v56 = vsel %vm697_vm9, %v1416_v47, %v694_v54  ;;  %v1353_v47 = vld [vmem:[#allocation6 + $0x10] sm:$0xff] }
 0x3dc   : > { %v703_v57 = vsel %vm700_vm10, %v702_v55, %v698_v56  ;;  %979 = vmatpush.bf16.msrb.mxu2 %v1353_v47  ;;  %v1351_v55 = vld [vmem:[#allocation6] sm:$0xff] }
 0x3dd   : > { %v1706_v58 = vmul.f32 %v1414_v44, %v703_v57 }
 0x3df   : > { %1286 = vmatmul.msk.f32.vlgmr.msrb.gmra.mxu3 %vm603_vm2, %v1706_v58 }
 0x3e0   : > { %980 = vmatpush.bf16.msrb.mxu2 %v1352_v50 }
 0x3e4   : > { %981 = vmatpush.bf16.msrb.mxu2 %v1351_v55 }
 0x3e7   : > { %1288 = vmatmul.msk.f32.vlgmr.msra.gmra.mxu3 %vm573_vm0, %v733_v59 }
 0x462   : > { %v729_v60 = vpop.f32.mrf.mxu3 }
 0x46a   : > { %v757_v63 = vpop.f32.mrf.mxu3 }
 0x46b   : > { %v760_v1 = vmul.f32 0.17677669, %v757_v63  ;;  %v1548_v63 = vmov 128.0  }
 0x46d   : > { %v761_v2 = vsel %vm601_vm1, -1e+09, %v760_v1 }
 0x46e   : > { %v762_v3 = vsel %vm603_vm2, %v761_v2, -inf }
 0x46f   : > { %763 = vmax.xlane.f32.xlu0 %v762_v3 }
 0x477   : > { %849 = vadd.xlane.f32.xlu0 %v848_v6 }
 0x48b   : > { %893 = vrot.lane.b32.xlu0 %v729_v60, %s1544_s11 }
 0x4e2   : > { %v764_v7 = vpop.xlane.xlu0 %763 }
 0x4e3   : > { %v765_v8 = vsub.f32 %v761_v2, %v764_v7 }
 0x4e5   : > { %v766_v9 = vmul.f32 1.442695, %v765_v8 }
 0x4e7   : > { %1419 = vpow2.f32 %v766_v9 }
 0x4ea   : > { %v850_v10 = vpop.xlane.xlu0 %849 }
 0x4eb   : > { %1421 = vrcp.f32 %v850_v10  ;;  %v862_v15 = vand.u32 2147483648, %v850_v10  ;;  %v860_v17 = vand.u32 2147483647, %v850_v10  ;;  %vm856_vm12 = vweird.f32 %v850_v10 }
 0x4ed   : > { %v1420_v11 = vpop.eup %1419  ;;  %v863_v19 = vor.u32 1.1754944e-38, %v862_v15  ;;  %vm861_vm14 = vcmp.eq.f32.partialorder %v860_v17, 8.507059e+37 }
 0x4ee   : > { %v768_v12 = vsel %vm603_vm2, %v1420_v11, 0.0 }
 0x4ef   : > { %769 = vadd.xlane.f32.xlu2 %v768_v12 }
 0x4f1   : > { %v1422_v5 = vpop.eup %1421 }
 0x4f2   : > { %v852_v13 = vmul.f32 %v1422_v5, %v850_v10  ;;  %vm857_vm11 = vweird.f32 %v1422_v5 }
 0x4f3   : > { %vm858_vm13 = vmor %vm856_vm12, %vm857_vm11 }
 0x4f4   : > { %v853_v14 = vsub.f32 1.0, %v852_v13 }
 0x4f6   : > { %v854_v16 = vmul.f32 %v1422_v5, %v853_v14 }
 0x4f8   : > { %v855_v18 = vadd.f32 %v1422_v5, %v854_v16 }
 0x4fa   : > { %v859_v20 = vsel %vm858_vm13, %v1422_v5, %v855_v18 }
 0x4fb   : > { %v864_v21 = vsel %vm861_vm14, %v863_v19, %v859_v20 }
 0x4fc   : > { %v865_v22 = vmul.f32 %v1418_v4, %v864_v21 }
 0x4fd   : > { %v894_v38 = vpop.permute.xlu0 %893 }
 0x4fe   : > { %1292 = vmatmul.msk.f32.vlgmr.msrb.gmra.mxu1 %vm603_vm2, %v865_v22  ;;  %v904_v56 = vsel %vm573_vm0, %v1698_v36, %v894_v38 }
 0x507   : > { %786 = vrot.lane.b32.xlu2 %v1661_v0, %s1543_s10 }
 0x562   : > { %v770_v23 = vpop.xlane.xlu2 %769 }
 0x563   : > { %1423 = vrcp.f32 %v770_v23  ;;  %v782_v28 = vand.u32 2147483648, %v770_v23  ;;  %v780_v30 = vand.u32 2147483647, %v770_v23  ;;  %vm776_vm1 = vweird.f32 %v770_v23 }
 0x564   : > { %1425 = vrcp.f32 %v1548_v63 }
 0x565   : > { %v783_v33 = vor.u32 1.1754944e-38, %v782_v28  ;;  %vm781_vm4 = vcmp.eq.f32.partialorder %v780_v30, 8.507059e+37 }
 0x569   : > { %v1424_v24 = vpop.eup %1423 }
 0x56a   : > { %v772_v25 = vmul.f32 %v1424_v24, %v770_v23  ;;  %v787_v26 = vpop.permute.xlu2 %786  ;;  %vm777_vm15 = vweird.f32 %v1424_v24  ;;  %v1426_v1 = vpop.eup %1425 }
 0x56b   : > { %807 = vmatpush.msrb.mxu3 %v787_v26  ;;  %vm778_vm3 = vmor %vm776_vm1, %vm777_vm15  ;;  %v990_v2 = vmul.f32 128.0, %v1426_v1 }
 0x56c   : > { %v773_v27 = vsub.f32 1.0, %v772_v25 }
 0x56d   : > { %v991_v3 = vsub.f32 1.0, %v990_v2 }
 0x56e   : > { %v774_v29 = vmul.f32 %v1424_v24, %v773_v27 }
 0x56f   : > { %v992_v4 = vmul.f32 %v1426_v1, %v991_v3 }
 0x570   : > { %v775_v31 = vadd.f32 %v1424_v24, %v774_v29 }
 0x571   : > { %v993_v6 = vadd.f32 %v1426_v1, %v992_v4 }
 0x572   : > { %v779_v34 = vsel %vm778_vm3, %v1424_v24, %v775_v31 }
 0x573   : > { %v784_v35 = vsel %vm781_vm4, %v783_v33, %v779_v34 }
 0x574   : > { %v785_v37 = vmul.f32 %v1420_v11, %v784_v35 }
 0x576   : > { %1289 = vmatmul.msk.f32.vlgmr.msrb.gmra.mxu3 %vm603_vm2, %v785_v37 }
 0x57b   : > { %v889_v0 = vpop.f32.mrf.mxu1 }
 0x57c   : > { %901 = vrot.lane.b32.xlu0 %v889_v0, %s1542_s9 }
 0x584   : > { %1015 = vrot.lane.b32.xlu0 %v1706_v58, %s1545_s15 }
 0x58c   : > { %1018 = vrot.lane.b32.xlu0 %v785_v37, %s1546_s16 }
 0x594   : > { %1021 = vrot.lane.b32.xlu0 %v865_v22, %s1547_s17 }
 0x5ee   : > { %v902_v41 = vpop.permute.xlu0 %901 }
 0x5f6   : > { %v1016_v44 = vpop.permute.xlu0 %1015 }
 0x5f7   : > { %v1024_v51 = vsel %vm603_vm2, %v1692_v32, %v1016_v44  ;;  %vm994_vm2 = vweird.f32 %v1426_v1 }
 0x5f8   : > { %v995_v7 = vsel %vm994_vm2, %v1426_v1, %v993_v6 }
 0x5f9   : > { %v809_v46 = vpop.f32.mrf.mxu3 }
 0x5fa   : > { %897 = vrot.lane.b32.xlu2 %v809_v46, %s1543_s10 }
 0x5fe   : > { %v1019_v49 = vpop.permute.xlu0 %1018 }
 0x5ff   : > { %v1026_v52 = vsel %vm1025_vm5, %v1024_v51, %v1019_v49 }
 0x606   : > { %v1022_v53 = vpop.permute.xlu0 %1021 }
 0x607   : > { %v1028_v54 = vsel %vm1027_vm6, %v1026_v52, %v1022_v53 }
 0x608   : > { %1029 = vst.msk [vmem:[%s368_s20] sm:$0xff] %vm573_vm0, %v1028_v54 }
 0x654   : > { %v898_v57 = vpop.permute.xlu2 %897 }
 0x655   : > { %v906_v58 = vsel %vm905_vm7, %v904_v56, %v898_v57 }
 0x656   : > { %v908_v59 = vsel %vm907_vm8, %v906_v58, %v902_v41 }
 0x657   : > { %v909_v32 = vpack.c.bf16 %v908_v59, %v908_v59 }
 0x659   : > { %982 = vmatmul.bf16.vlgmr.msrb.gmra.mxu2 %v909_v32 }
 0x6dc   : > { %v983_v60 = vpop.f32.mrf.mxu2 }
 0x6dd   : > { %v984_v61 = vadd.f32 %v983_v60, %v1649_v48 }
 0x6df   : > { %987 = vadd.xlane.f32.xlu1 %v984_v61 }
 0x6e4   : > { %v985_v62 = vpop.f32.mrf.mxu2 }
 0x752   : > { %v988_v36 = vpop.xlane.xlu1 %987 }
 0x753   : > { %v996_v8 = vmul.f32 %v995_v7, %v988_v36 }
 0x755   : > { %v997_v9 = vsub.f32 %v984_v61, %v996_v8 }
 0x757   : > { %v998_v10 = vmul.f32 %v997_v9, %v997_v9 }
 0x759   : > { %999 = vadd.xlane.f32.xlu2 %v998_v10 }
 0x7cc   : > { %v1000_v11 = vpop.xlane.xlu2 %999 }
 0x7cd   : > { %v1001_v12 = vmul.f32 %v1000_v11, %v995_v7 }
 0x7cf   : > { %v1002_v48 = vadd.f32 1e-05, %v1001_v12 }
 0x7d1   : > { %1427 = vrsqrt.f32 %v1002_v48  ;;  %vm1009_vm9 = vweird.f32 %v1002_v48 }
 0x7d7   : > { %v1428_v5 = vpop.eup %1427 }
 0x7d8   : > { %v1004_v13 = vmul.f32 %v1428_v5, %v1002_v48  ;;  %vm1010_vm0 = vweird.f32 %v1428_v5 }
 0x7d9   : > { %vm1011_vm10 = vmor %vm1009_vm9, %vm1010_vm0 }
 0x7da   : > { %v1005_v14 = vmul.f32 %v1428_v5, %v1004_v13 }
 0x7dc   : > { %v1006_v15 = vmul.f32 0.5, %v1005_v14 }
 0x7de   : > { %v1007_v16 = vsub.f32 1.5, %v1006_v15 }
 0x7e0   : > { %v1008_v17 = vmul.f32 %v1428_v5, %v1007_v16 }
 0x7e2   : > { %v1012_v18 = vsel %vm1011_vm10, %v1428_v5, %v1008_v17 }
 0x7e3   : > { %v1013_v19 = vmul.f32 %v1012_v18, %v997_v9 }
 0x7e5   : > { %1014 = vst [vmem:[%s364_s23] sm:$0xff] %v1013_v19 }
 0x7e6 PF: > { %s20_s24 = sadd.s32 1, %s1533_s24  }
 0x7e7   : > { %p17_p7 = scmp.ge.s32.totalorder %s20_s24, 4  }
 0x7e9   :  { %19 = sbr.rel (!%p17_p7) target bundleno = 2 (0x2), region = 105 }
 0x7ee   :  { %1063 = vsyncpa [#allocation3], 1 }
 0x7ef   :  { %1065 = vsyncpa [#allocation3 + $0x1], 1 }
 0x7f0   :  { %1066 = vsyncpa [#allocation5], 1 }

</bundles_post_ra>
